<compile_context>
chip_gen: v6e
topology: v6e:2x2x1
jax: 0.10.0
libtpu: 0.0.40
codegen_flags: <defaults>
</compile_context>

<pallas_src>
import functools

import jax
import jax.numpy as jnp
from jax.experimental import pallas as pl
from jax.experimental.pallas import tpu as pltpu


def _conv2d_vpu_kernel(w_ref, b_ref, x_ref, o_ref, *, Cin, Cout, KH, KW, Ho, Wo):
    """Direct conv as shifted VPU multiply-adds (one batch image per grid step).

    w_ref : SMEM (Cout*Cin*KH*KW,) f32   flattened OIHW weights (scalar reads)
    b_ref : SMEM (Cout,)           f32   bias
    x_ref : VMEM (Cin, H, W)             one image, W on the lane axis
    o_ref : VMEM (Cout, Ho, Wo)          one output image (NCHW layout)
    """
    # One f32 accumulator per output channel, initialized with the bias.
    accs = [jnp.full((Ho, Wo), b_ref[co], jnp.float32) for co in range(Cout)]

    # Static (fully unrolled) tap loops: 27 shifted window loads, 162 scalar*vector FMAs.
    for ci in range(Cin):
        for kh in range(KH):
            for kw in range(KW):
                xs = x_ref[ci, kh:kh + Ho, kw:kw + Wo]          # (Ho, Wo) window
                for co in range(Cout):
                    w = w_ref[((co * Cin + ci) * KH + kh) * KW + kw]
                    accs[co] = accs[co] + w * xs

    for co in range(Cout):
        o_ref[co] = accs[co].astype(o_ref.dtype)


def conv2d_pallas(x_nchw, weight, bias):
    """Conv2d(Cin, Cout, K, stride=1, padding=0) with PyTorch NCHW/OIHW semantics."""
    N, Cin, H, W = x_nchw.shape
    Cout, Cin_w, KH, KW = weight.shape
    assert Cin == Cin_w
    Ho, Wo = H - KH + 1, W - KW + 1

    # Tiny parameter tensors -> flattened 1-D SMEM residents (avoids the 2-D
    # SMEM [8,128] padding blowup); read back as scalars inside the kernel.
    w_flat = weight.reshape(-1).astype(jnp.float32)
    b_flat = bias.reshape(-1).astype(jnp.float32)

    kernel = functools.partial(
        _conv2d_vpu_kernel, Cin=Cin, Cout=Cout, KH=KH, KW=KW, Ho=Ho, Wo=Wo)

    return pl.pallas_call(
        kernel,
        out_shape=jax.ShapeDtypeStruct((N, Cout, Ho, Wo), x_nchw.dtype),
        grid=(N,),
        in_specs=[
            pl.BlockSpec(memory_space=pltpu.MemorySpace.SMEM),              # weights
            pl.BlockSpec(memory_space=pltpu.MemorySpace.SMEM),              # bias
            pl.BlockSpec((None, Cin, H, W), lambda n: (n, 0, 0, 0)),        # x[n]
        ],
        out_specs=pl.BlockSpec((None, Cout, Ho, Wo), lambda n: (n, 0, 0, 0)),
        compiler_params=pltpu.CompilerParams(
            dimension_semantics=("parallel",)),
    )(w_flat, b_flat, x_nchw)


if __name__ == "__main__":
    key = jax.random.PRNGKey(0)
    k_x, k_w, k_b = jax.random.split(key, 3)

    # Shapes implied by the module: Conv2d(3, 6, 3, 1, padding=0).
    N, Cin, H, W = 2, 3, 16, 16
    Cout, KH, KW = 6, 3, 3

    x = jax.random.normal(k_x, (N, Cin, H, W), dtype=jnp.float32)

    # Deterministic parameter init (PyTorch-style uniform(-1/sqrt(fan_in), +1/sqrt(fan_in))).
    fan_in = Cin * KH * KW
    bound = 1.0 / jnp.sqrt(jnp.float32(fan_in))
    weight = jax.random.uniform(k_w, (Cout, Cin, KH, KW),
                                minval=-bound, maxval=bound, dtype=jnp.float32)
    bias = jax.random.uniform(k_b, (Cout,), minval=-bound, maxval=bound,
                              dtype=jnp.float32)

    y = conv2d_pallas(x, weight, bias)
    y = jax.block_until_ready(y)
    assert y.shape == (N, Cout, H - KH + 1, W - KW + 1), y.shape

    # Reference check against XLA conv (same NCHW / OIHW convention as PyTorch).
    y_ref = jax.lax.conv_general_dilated(
        x, weight, window_strides=(1, 1), padding="VALID",
        dimension_numbers=("NCHW", "OIHW", "NCHW"),
    ) + bias.reshape(1, Cout, 1, 1)
    assert jnp.allclose(y, y_ref, atol=1e-4, rtol=1e-4), float(jnp.max(jnp.abs(y - y_ref)))

    print("KERNEL_OK")
</pallas_src>

<mosaic_0001>
module attributes {stable_mosaic.version = 11 : i64} {
  func.func @_conv2d_vpu_kernel(%arg0: i32, %arg1: memref<162xf32, #tpu.memory_space<smem>>, %arg2: memref<6xf32, #tpu.memory_space<smem>>, %arg3: memref<1x3x16x16xf32, #tpu.memory_space<vmem>>, %arg4: memref<1x6x14x14xf32, #tpu.memory_space<vmem>>) attributes {dimension_semantics = [#tpu.dimension_semantics<parallel>], iteration_bounds = array<i64: 2>, scalar_prefetch = 0 : i64, scratch_operands = 0 : i64, tpu.core_type = #tpu.core_type<tc>, window_params = [{transform_indices = @transform_0, window_bounds = array<i64: 162>}, {transform_indices = @transform_1, window_bounds = array<i64: 6>}, {transform_indices = @transform_2, window_bounds = array<i64: 1, 3, 16, 16>}, {transform_indices = @transform_3, window_bounds = array<i64: 1, 6, 14, 14>}]} {
    %c0 = arith.constant 0 : index
    %0 = memref.load %arg2[%c0] : memref<6xf32, #tpu.memory_space<smem>>
    %1 = vector.broadcast %0 : f32 to vector<14x14xf32>
    %c1 = arith.constant 1 : index
    %2 = memref.load %arg2[%c1] : memref<6xf32, #tpu.memory_space<smem>>
    %3 = vector.broadcast %2 : f32 to vector<14x14xf32>
    %c2 = arith.constant 2 : index
    %4 = memref.load %arg2[%c2] : memref<6xf32, #tpu.memory_space<smem>>
    %5 = vector.broadcast %4 : f32 to vector<14x14xf32>
    %c3 = arith.constant 3 : index
    %6 = memref.load %arg2[%c3] : memref<6xf32, #tpu.memory_space<smem>>
    %7 = vector.broadcast %6 : f32 to vector<14x14xf32>
    %c4 = arith.constant 4 : index
    %8 = memref.load %arg2[%c4] : memref<6xf32, #tpu.memory_space<smem>>
    %9 = vector.broadcast %8 : f32 to vector<14x14xf32>
    %c5 = arith.constant 5 : index
    %10 = memref.load %arg2[%c5] : memref<6xf32, #tpu.memory_space<smem>>
    %11 = vector.broadcast %10 : f32 to vector<14x14xf32>
    %c0_0 = arith.constant 0 : index
    %c0_1 = arith.constant 0 : index
    %c0_2 = arith.constant 0 : index
    %c0_3 = arith.constant 0 : index
    %12 = vector.load %arg3[%c0_0, %c0_1, %c0_2, %c0_3] : memref<1x3x16x16xf32, #tpu.memory_space<vmem>>, vector<1x1x14x14xf32>
    %13 = vector.shape_cast %12 : vector<1x1x14x14xf32> to vector<14x14xf32>
    %c0_4 = arith.constant 0 : index
    %14 = memref.load %arg1[%c0_4] : memref<162xf32, #tpu.memory_space<smem>>
    %15 = vector.broadcast %14 : f32 to vector<14x14xf32>
    %16 = arith.mulf %15, %13 : vector<14x14xf32>
    %17 = arith.addf %1, %16 : vector<14x14xf32>
    %c27 = arith.constant 27 : index
    %18 = memref.load %arg1[%c27] : memref<162xf32, #tpu.memory_space<smem>>
    %19 = vector.broadcast %18 : f32 to vector<14x14xf32>
    %20 = arith.mulf %19, %13 : vector<14x14xf32>
    %21 = arith.addf %3, %20 : vector<14x14xf32>
    %c54 = arith.constant 54 : index
    %22 = memref.load %arg1[%c54] : memref<162xf32, #tpu.memory_space<smem>>
    %23 = vector.broadcast %22 : f32 to vector<14x14xf32>
    %24 = arith.mulf %23, %13 : vector<14x14xf32>
    %25 = arith.addf %5, %24 : vector<14x14xf32>
    %c81 = arith.constant 81 : index
    %26 = memref.load %arg1[%c81] : memref<162xf32, #tpu.memory_space<smem>>
    %27 = vector.broadcast %26 : f32 to vector<14x14xf32>
    %28 = arith.mulf %27, %13 : vector<14x14xf32>
    %29 = arith.addf %7, %28 : vector<14x14xf32>
    %c108 = arith.constant 108 : index
    %30 = memref.load %arg1[%c108] : memref<162xf32, #tpu.memory_space<smem>>
    %31 = vector.broadcast %30 : f32 to vector<14x14xf32>
    %32 = arith.mulf %31, %13 : vector<14x14xf32>
    %33 = arith.addf %9, %32 : vector<14x14xf32>
    %c135 = arith.constant 135 : index
    %34 = memref.load %arg1[%c135] : memref<162xf32, #tpu.memory_space<smem>>
    %35 = vector.broadcast %34 : f32 to vector<14x14xf32>
    %36 = arith.mulf %35, %13 : vector<14x14xf32>
    %37 = arith.addf %11, %36 : vector<14x14xf32>
    %c0_5 = arith.constant 0 : index
    %c0_6 = arith.constant 0 : index
    %c0_7 = arith.constant 0 : index
    %c1_8 = arith.constant 1 : index
    %38 = vector.load %arg3[%c0_5, %c0_6, %c0_7, %c1_8] : memref<1x3x16x16xf32, #tpu.memory_space<vmem>>, vector<1x1x14x14xf32>
    %39 = vector.shape_cast %38 : vector<1x1x14x14xf32> to vector<14x14xf32>
    %c1_9 = arith.constant 1 : index
    %40 = memref.load %arg1[%c1_9] : memref<162xf32, #tpu.memory_space<smem>>
    %41 = vector.broadcast %40 : f32 to vector<14x14xf32>
    %42 = arith.mulf %41, %39 : vector<14x14xf32>
    %43 = arith.addf %17, %42 : vector<14x14xf32>
    %c28 = arith.constant 28 : index
    %44 = memref.load %arg1[%c28] : memref<162xf32, #tpu.memory_space<smem>>
    %45 = vector.broadcast %44 : f32 to vector<14x14xf32>
    %46 = arith.mulf %45, %39 : vector<14x14xf32>
    %47 = arith.addf %21, %46 : vector<14x14xf32>
    %c55 = arith.constant 55 : index
    %48 = memref.load %arg1[%c55] : memref<162xf32, #tpu.memory_space<smem>>
    %49 = vector.broadcast %48 : f32 to vector<14x14xf32>
    %50 = arith.mulf %49, %39 : vector<14x14xf32>
    %51 = arith.addf %25, %50 : vector<14x14xf32>
    %c82 = arith.constant 82 : index
    %52 = memref.load %arg1[%c82] : memref<162xf32, #tpu.memory_space<smem>>
    %53 = vector.broadcast %52 : f32 to vector<14x14xf32>
    %54 = arith.mulf %53, %39 : vector<14x14xf32>
    %55 = arith.addf %29, %54 : vector<14x14xf32>
    %c109 = arith.constant 109 : index
    %56 = memref.load %arg1[%c109] : memref<162xf32, #tpu.memory_space<smem>>
    %57 = vector.broadcast %56 : f32 to vector<14x14xf32>
    %58 = arith.mulf %57, %39 : vector<14x14xf32>
    %59 = arith.addf %33, %58 : vector<14x14xf32>
    %c136 = arith.constant 136 : index
    %60 = memref.load %arg1[%c136] : memref<162xf32, #tpu.memory_space<smem>>
    %61 = vector.broadcast %60 : f32 to vector<14x14xf32>
    %62 = arith.mulf %61, %39 : vector<14x14xf32>
    %63 = arith.addf %37, %62 : vector<14x14xf32>
    %c0_10 = arith.constant 0 : index
    %c0_11 = arith.constant 0 : index
    %c0_12 = arith.constant 0 : index
    %c2_13 = arith.constant 2 : index
    %64 = vector.load %arg3[%c0_10, %c0_11, %c0_12, %c2_13] : memref<1x3x16x16xf32, #tpu.memory_space<vmem>>, vector<1x1x14x14xf32>
    %65 = vector.shape_cast %64 : vector<1x1x14x14xf32> to vector<14x14xf32>
    %c2_14 = arith.constant 2 : index
    %66 = memref.load %arg1[%c2_14] : memref<162xf32, #tpu.memory_space<smem>>
    %67 = vector.broadcast %66 : f32 to vector<14x14xf32>
    %68 = arith.mulf %67, %65 : vector<14x14xf32>
    %69 = arith.addf %43, %68 : vector<14x14xf32>
    %c29 = arith.constant 29 : index
    %70 = memref.load %arg1[%c29] : memref<162xf32, #tpu.memory_space<smem>>
    %71 = vector.broadcast %70 : f32 to vector<14x14xf32>
    %72 = arith.mulf %71, %65 : vector<14x14xf32>
    %73 = arith.addf %47, %72 : vector<14x14xf32>
    %c56 = arith.constant 56 : index
    %74 = memref.load %arg1[%c56] : memref<162xf32, #tpu.memory_space<smem>>
    %75 = vector.broadcast %74 : f32 to vector<14x14xf32>
    %76 = arith.mulf %75, %65 : vector<14x14xf32>
    %77 = arith.addf %51, %76 : vector<14x14xf32>
    %c83 = arith.constant 83 : index
    %78 = memref.load %arg1[%c83] : memref<162xf32, #tpu.memory_space<smem>>
    %79 = vector.broadcast %78 : f32 to vector<14x14xf32>
    %80 = arith.mulf %79, %65 : vector<14x14xf32>
    %81 = arith.addf %55, %80 : vector<14x14xf32>
    %c110 = arith.constant 110 : index
    %82 = memref.load %arg1[%c110] : memref<162xf32, #tpu.memory_space<smem>>
    %83 = vector.broadcast %82 : f32 to vector<14x14xf32>
    %84 = arith.mulf %83, %65 : vector<14x14xf32>
    %85 = arith.addf %59, %84 : vector<14x14xf32>
    %c137 = arith.constant 137 : index
    %86 = memref.load %arg1[%c137] : memref<162xf32, #tpu.memory_space<smem>>
    %87 = vector.broadcast %86 : f32 to vector<14x14xf32>
    %88 = arith.mulf %87, %65 : vector<14x14xf32>
    %89 = arith.addf %63, %88 : vector<14x14xf32>
    %c0_15 = arith.constant 0 : index
    %c0_16 = arith.constant 0 : index
    %c1_17 = arith.constant 1 : index
    %c0_18 = arith.constant 0 : index
    %90 = vector.load %arg3[%c0_15, %c0_16, %c1_17, %c0_18] : memref<1x3x16x16xf32, #tpu.memory_space<vmem>>, vector<1x1x14x14xf32>
    %91 = vector.shape_cast %90 : vector<1x1x14x14xf32> to vector<14x14xf32>
    %c3_19 = arith.constant 3 : index
    %92 = memref.load %arg1[%c3_19] : memref<162xf32, #tpu.memory_space<smem>>
    %93 = vector.broadcast %92 : f32 to vector<14x14xf32>
    %94 = arith.mulf %93, %91 : vector<14x14xf32>
    %95 = arith.addf %69, %94 : vector<14x14xf32>
    %c30 = arith.constant 30 : index
    %96 = memref.load %arg1[%c30] : memref<162xf32, #tpu.memory_space<smem>>
    %97 = vector.broadcast %96 : f32 to vector<14x14xf32>
    %98 = arith.mulf %97, %91 : vector<14x14xf32>
    %99 = arith.addf %73, %98 : vector<14x14xf32>
    %c57 = arith.constant 57 : index
    %100 = memref.load %arg1[%c57] : memref<162xf32, #tpu.memory_space<smem>>
    %101 = vector.broadcast %100 : f32 to vector<14x14xf32>
    %102 = arith.mulf %101, %91 : vector<14x14xf32>
    %103 = arith.addf %77, %102 : vector<14x14xf32>
    %c84 = arith.constant 84 : index
    %104 = memref.load %arg1[%c84] : memref<162xf32, #tpu.memory_space<smem>>
    %105 = vector.broadcast %104 : f32 to vector<14x14xf32>
    %106 = arith.mulf %105, %91 : vector<14x14xf32>
    %107 = arith.addf %81, %106 : vector<14x14xf32>
    %c111 = arith.constant 111 : index
    %108 = memref.load %arg1[%c111] : memref<162xf32, #tpu.memory_space<smem>>
    %109 = vector.broadcast %108 : f32 to vector<14x14xf32>
    %110 = arith.mulf %109, %91 : vector<14x14xf32>
    %111 = arith.addf %85, %110 : vector<14x14xf32>
    %c138 = arith.constant 138 : index
    %112 = memref.load %arg1[%c138] : memref<162xf32, #tpu.memory_space<smem>>
    %113 = vector.broadcast %112 : f32 to vector<14x14xf32>
    %114 = arith.mulf %113, %91 : vector<14x14xf32>
    %115 = arith.addf %89, %114 : vector<14x14xf32>
    %c0_20 = arith.constant 0 : index
    %c0_21 = arith.constant 0 : index
    %c1_22 = arith.constant 1 : index
    %c1_23 = arith.constant 1 : index
    %116 = vector.load %arg3[%c0_20, %c0_21, %c1_22, %c1_23] : memref<1x3x16x16xf32, #tpu.memory_space<vmem>>, vector<1x1x14x14xf32>
    %117 = vector.shape_cast %116 : vector<1x1x14x14xf32> to vector<14x14xf32>
    %c4_24 = arith.constant 4 : index
    %118 = memref.load %arg1[%c4_24] : memref<162xf32, #tpu.memory_space<smem>>
    %119 = vector.broadcast %118 : f32 to vector<14x14xf32>
    %120 = arith.mulf %119, %117 : vector<14x14xf32>
    %121 = arith.addf %95, %120 : vector<14x14xf32>
    %c31 = arith.constant 31 : index
    %122 = memref.load %arg1[%c31] : memref<162xf32, #tpu.memory_space<smem>>
    %123 = vector.broadcast %122 : f32 to vector<14x14xf32>
    %124 = arith.mulf %123, %117 : vector<14x14xf32>
    %125 = arith.addf %99, %124 : vector<14x14xf32>
    %c58 = arith.constant 58 : index
    %126 = memref.load %arg1[%c58] : memref<162xf32, #tpu.memory_space<smem>>
    %127 = vector.broadcast %126 : f32 to vector<14x14xf32>
    %128 = arith.mulf %127, %117 : vector<14x14xf32>
    %129 = arith.addf %103, %128 : vector<14x14xf32>
    %c85 = arith.constant 85 : index
    %130 = memref.load %arg1[%c85] : memref<162xf32, #tpu.memory_space<smem>>
    %131 = vector.broadcast %130 : f32 to vector<14x14xf32>
    %132 = arith.mulf %131, %117 : vector<14x14xf32>
    %133 = arith.addf %107, %132 : vector<14x14xf32>
    %c112 = arith.constant 112 : index
    %134 = memref.load %arg1[%c112] : memref<162xf32, #tpu.memory_space<smem>>
    %135 = vector.broadcast %134 : f32 to vector<14x14xf32>
    %136 = arith.mulf %135, %117 : vector<14x14xf32>
    %137 = arith.addf %111, %136 : vector<14x14xf32>
    %c139 = arith.constant 139 : index
    %138 = memref.load %arg1[%c139] : memref<162xf32, #tpu.memory_space<smem>>
    %139 = vector.broadcast %138 : f32 to vector<14x14xf32>
    %140 = arith.mulf %139, %117 : vector<14x14xf32>
    %141 = arith.addf %115, %140 : vector<14x14xf32>
    %c0_25 = arith.constant 0 : index
    %c0_26 = arith.constant 0 : index
    %c1_27 = arith.constant 1 : index
    %c2_28 = arith.constant 2 : index
    %142 = vector.load %arg3[%c0_25, %c0_26, %c1_27, %c2_28] : memref<1x3x16x16xf32, #tpu.memory_space<vmem>>, vector<1x1x14x14xf32>
    %143 = vector.shape_cast %142 : vector<1x1x14x14xf32> to vector<14x14xf32>
    %c5_29 = arith.constant 5 : index
    %144 = memref.load %arg1[%c5_29] : memref<162xf32, #tpu.memory_space<smem>>
    %145 = vector.broadcast %144 : f32 to vector<14x14xf32>
    %146 = arith.mulf %145, %143 : vector<14x14xf32>
    %147 = arith.addf %121, %146 : vector<14x14xf32>
    %c32 = arith.constant 32 : index
    %148 = memref.load %arg1[%c32] : memref<162xf32, #tpu.memory_space<smem>>
    %149 = vector.broadcast %148 : f32 to vector<14x14xf32>
    %150 = arith.mulf %149, %143 : vector<14x14xf32>
    %151 = arith.addf %125, %150 : vector<14x14xf32>
    %c59 = arith.constant 59 : index
    %152 = memref.load %arg1[%c59] : memref<162xf32, #tpu.memory_space<smem>>
    %153 = vector.broadcast %152 : f32 to vector<14x14xf32>
    %154 = arith.mulf %153, %143 : vector<14x14xf32>
    %155 = arith.addf %129, %154 : vector<14x14xf32>
    %c86 = arith.constant 86 : index
    %156 = memref.load %arg1[%c86] : memref<162xf32, #tpu.memory_space<smem>>
    %157 = vector.broadcast %156 : f32 to vector<14x14xf32>
    %158 = arith.mulf %157, %143 : vector<14x14xf32>
    %159 = arith.addf %133, %158 : vector<14x14xf32>
    %c113 = arith.constant 113 : index
    %160 = memref.load %arg1[%c113] : memref<162xf32, #tpu.memory_space<smem>>
    %161 = vector.broadcast %160 : f32 to vector<14x14xf32>
    %162 = arith.mulf %161, %143 : vector<14x14xf32>
    %163 = arith.addf %137, %162 : vector<14x14xf32>
    %c140 = arith.constant 140 : index
    %164 = memref.load %arg1[%c140] : memref<162xf32, #tpu.memory_space<smem>>
    %165 = vector.broadcast %164 : f32 to vector<14x14xf32>
    %166 = arith.mulf %165, %143 : vector<14x14xf32>
    %167 = arith.addf %141, %166 : vector<14x14xf32>
    %c0_30 = arith.constant 0 : index
    %c0_31 = arith.constant 0 : index
    %c2_32 = arith.constant 2 : index
    %c0_33 = arith.constant 0 : index
    %168 = vector.load %arg3[%c0_30, %c0_31, %c2_32, %c0_33] : memref<1x3x16x16xf32, #tpu.memory_space<vmem>>, vector<1x1x14x14xf32>
    %169 = vector.shape_cast %168 : vector<1x1x14x14xf32> to vector<14x14xf32>
    %c6 = arith.constant 6 : index
    %170 = memref.load %arg1[%c6] : memref<162xf32, #tpu.memory_space<smem>>
    %171 = vector.broadcast %170 : f32 to vector<14x14xf32>
    %172 = arith.mulf %171, %169 : vector<14x14xf32>
    %173 = arith.addf %147, %172 : vector<14x14xf32>
    %c33 = arith.constant 33 : index
    %174 = memref.load %arg1[%c33] : memref<162xf32, #tpu.memory_space<smem>>
    %175 = vector.broadcast %174 : f32 to vector<14x14xf32>
    %176 = arith.mulf %175, %169 : vector<14x14xf32>
    %177 = arith.addf %151, %176 : vector<14x14xf32>
    %c60 = arith.constant 60 : index
    %178 = memref.load %arg1[%c60] : memref<162xf32, #tpu.memory_space<smem>>
    %179 = vector.broadcast %178 : f32 to vector<14x14xf32>
    %180 = arith.mulf %179, %169 : vector<14x14xf32>
    %181 = arith.addf %155, %180 : vector<14x14xf32>
    %c87 = arith.constant 87 : index
    %182 = memref.load %arg1[%c87] : memref<162xf32, #tpu.memory_space<smem>>
    %183 = vector.broadcast %182 : f32 to vector<14x14xf32>
    %184 = arith.mulf %183, %169 : vector<14x14xf32>
    %185 = arith.addf %159, %184 : vector<14x14xf32>
    %c114 = arith.constant 114 : index
    %186 = memref.load %arg1[%c114] : memref<162xf32, #tpu.memory_space<smem>>
    %187 = vector.broadcast %186 : f32 to vector<14x14xf32>
    %188 = arith.mulf %187, %169 : vector<14x14xf32>
    %189 = arith.addf %163, %188 : vector<14x14xf32>
    %c141 = arith.constant 141 : index
    %190 = memref.load %arg1[%c141] : memref<162xf32, #tpu.memory_space<smem>>
    %191 = vector.broadcast %190 : f32 to vector<14x14xf32>
    %192 = arith.mulf %191, %169 : vector<14x14xf32>
    %193 = arith.addf %167, %192 : vector<14x14xf32>
    %c0_34 = arith.constant 0 : index
    %c0_35 = arith.constant 0 : index
    %c2_36 = arith.constant 2 : index
    %c1_37 = arith.constant 1 : index
    %194 = vector.load %arg3[%c0_34, %c0_35, %c2_36, %c1_37] : memref<1x3x16x16xf32, #tpu.memory_space<vmem>>, vector<1x1x14x14xf32>
    %195 = vector.shape_cast %194 : vector<1x1x14x14xf32> to vector<14x14xf32>
    %c7 = arith.constant 7 : index
    %196 = memref.load %arg1[%c7] : memref<162xf32, #tpu.memory_space<smem>>
    %197 = vector.broadcast %196 : f32 to vector<14x14xf32>
    %198 = arith.mulf %197, %195 : vector<14x14xf32>
    %199 = arith.addf %173, %198 : vector<14x14xf32>
    %c34 = arith.constant 34 : index
    %200 = memref.load %arg1[%c34] : memref<162xf32, #tpu.memory_space<smem>>
    %201 = vector.broadcast %200 : f32 to vector<14x14xf32>
    %202 = arith.mulf %201, %195 : vector<14x14xf32>
    %203 = arith.addf %177, %202 : vector<14x14xf32>
    %c61 = arith.constant 61 : index
    %204 = memref.load %arg1[%c61] : memref<162xf32, #tpu.memory_space<smem>>
    %205 = vector.broadcast %204 : f32 to vector<14x14xf32>
    %206 = arith.mulf %205, %195 : vector<14x14xf32>
    %207 = arith.addf %181, %206 : vector<14x14xf32>
    %c88 = arith.constant 88 : index
    %208 = memref.load %arg1[%c88] : memref<162xf32, #tpu.memory_space<smem>>
    %209 = vector.broadcast %208 : f32 to vector<14x14xf32>
    %210 = arith.mulf %209, %195 : vector<14x14xf32>
    %211 = arith.addf %185, %210 : vector<14x14xf32>
    %c115 = arith.constant 115 : index
    %212 = memref.load %arg1[%c115] : memref<162xf32, #tpu.memory_space<smem>>
    %213 = vector.broadcast %212 : f32 to vector<14x14xf32>
    %214 = arith.mulf %213, %195 : vector<14x14xf32>
    %215 = arith.addf %189, %214 : vector<14x14xf32>
    %c142 = arith.constant 142 : index
    %216 = memref.load %arg1[%c142] : memref<162xf32, #tpu.memory_space<smem>>
    %217 = vector.broadcast %216 : f32 to vector<14x14xf32>
    %218 = arith.mulf %217, %195 : vector<14x14xf32>
    %219 = arith.addf %193, %218 : vector<14x14xf32>
    %c0_38 = arith.constant 0 : index
    %c0_39 = arith.constant 0 : index
    %c2_40 = arith.constant 2 : index
    %c2_41 = arith.constant 2 : index
    %220 = vector.load %arg3[%c0_38, %c0_39, %c2_40, %c2_41] : memref<1x3x16x16xf32, #tpu.memory_space<vmem>>, vector<1x1x14x14xf32>
    %221 = vector.shape_cast %220 : vector<1x1x14x14xf32> to vector<14x14xf32>
    %c8 = arith.constant 8 : index
    %222 = memref.load %arg1[%c8] : memref<162xf32, #tpu.memory_space<smem>>
    %223 = vector.broadcast %222 : f32 to vector<14x14xf32>
    %224 = arith.mulf %223, %221 : vector<14x14xf32>
    %225 = arith.addf %199, %224 : vector<14x14xf32>
    %c35 = arith.constant 35 : index
    %226 = memref.load %arg1[%c35] : memref<162xf32, #tpu.memory_space<smem>>
    %227 = vector.broadcast %226 : f32 to vector<14x14xf32>
    %228 = arith.mulf %227, %221 : vector<14x14xf32>
    %229 = arith.addf %203, %228 : vector<14x14xf32>
    %c62 = arith.constant 62 : index
    %230 = memref.load %arg1[%c62] : memref<162xf32, #tpu.memory_space<smem>>
    %231 = vector.broadcast %230 : f32 to vector<14x14xf32>
    %232 = arith.mulf %231, %221 : vector<14x14xf32>
    %233 = arith.addf %207, %232 : vector<14x14xf32>
    %c89 = arith.constant 89 : index
    %234 = memref.load %arg1[%c89] : memref<162xf32, #tpu.memory_space<smem>>
    %235 = vector.broadcast %234 : f32 to vector<14x14xf32>
    %236 = arith.mulf %235, %221 : vector<14x14xf32>
    %237 = arith.addf %211, %236 : vector<14x14xf32>
    %c116 = arith.constant 116 : index
    %238 = memref.load %arg1[%c116] : memref<162xf32, #tpu.memory_space<smem>>
    %239 = vector.broadcast %238 : f32 to vector<14x14xf32>
    %240 = arith.mulf %239, %221 : vector<14x14xf32>
    %241 = arith.addf %215, %240 : vector<14x14xf32>
    %c143 = arith.constant 143 : index
    %242 = memref.load %arg1[%c143] : memref<162xf32, #tpu.memory_space<smem>>
    %243 = vector.broadcast %242 : f32 to vector<14x14xf32>
    %244 = arith.mulf %243, %221 : vector<14x14xf32>
    %245 = arith.addf %219, %244 : vector<14x14xf32>
    %c0_42 = arith.constant 0 : index
    %c1_43 = arith.constant 1 : index
    %c0_44 = arith.constant 0 : index
    %c0_45 = arith.constant 0 : index
    %246 = vector.load %arg3[%c0_42, %c1_43, %c0_44, %c0_45] : memref<1x3x16x16xf32, #tpu.memory_space<vmem>>, vector<1x1x14x14xf32>
    %247 = vector.shape_cast %246 : vector<1x1x14x14xf32> to vector<14x14xf32>
    %c9 = arith.constant 9 : index
    %248 = memref.load %arg1[%c9] : memref<162xf32, #tpu.memory_space<smem>>
    %249 = vector.broadcast %248 : f32 to vector<14x14xf32>
    %250 = arith.mulf %249, %247 : vector<14x14xf32>
    %251 = arith.addf %225, %250 : vector<14x14xf32>
    %c36 = arith.constant 36 : index
    %252 = memref.load %arg1[%c36] : memref<162xf32, #tpu.memory_space<smem>>
    %253 = vector.broadcast %252 : f32 to vector<14x14xf32>
    %254 = arith.mulf %253, %247 : vector<14x14xf32>
    %255 = arith.addf %229, %254 : vector<14x14xf32>
    %c63 = arith.constant 63 : index
    %256 = memref.load %arg1[%c63] : memref<162xf32, #tpu.memory_space<smem>>
    %257 = vector.broadcast %256 : f32 to vector<14x14xf32>
    %258 = arith.mulf %257, %247 : vector<14x14xf32>
    %259 = arith.addf %233, %258 : vector<14x14xf32>
    %c90 = arith.constant 90 : index
    %260 = memref.load %arg1[%c90] : memref<162xf32, #tpu.memory_space<smem>>
    %261 = vector.broadcast %260 : f32 to vector<14x14xf32>
    %262 = arith.mulf %261, %247 : vector<14x14xf32>
    %263 = arith.addf %237, %262 : vector<14x14xf32>
    %c117 = arith.constant 117 : index
    %264 = memref.load %arg1[%c117] : memref<162xf32, #tpu.memory_space<smem>>
    %265 = vector.broadcast %264 : f32 to vector<14x14xf32>
    %266 = arith.mulf %265, %247 : vector<14x14xf32>
    %267 = arith.addf %241, %266 : vector<14x14xf32>
    %c144 = arith.constant 144 : index
    %268 = memref.load %arg1[%c144] : memref<162xf32, #tpu.memory_space<smem>>
    %269 = vector.broadcast %268 : f32 to vector<14x14xf32>
    %270 = arith.mulf %269, %247 : vector<14x14xf32>
    %271 = arith.addf %245, %270 : vector<14x14xf32>
    %c0_46 = arith.constant 0 : index
    %c1_47 = arith.constant 1 : index
    %c0_48 = arith.constant 0 : index
    %c1_49 = arith.constant 1 : index
    %272 = vector.load %arg3[%c0_46, %c1_47, %c0_48, %c1_49] : memref<1x3x16x16xf32, #tpu.memory_space<vmem>>, vector<1x1x14x14xf32>
    %273 = vector.shape_cast %272 : vector<1x1x14x14xf32> to vector<14x14xf32>
    %c10 = arith.constant 10 : index
    %274 = memref.load %arg1[%c10] : memref<162xf32, #tpu.memory_space<smem>>
    %275 = vector.broadcast %274 : f32 to vector<14x14xf32>
    %276 = arith.mulf %275, %273 : vector<14x14xf32>
    %277 = arith.addf %251, %276 : vector<14x14xf32>
    %c37 = arith.constant 37 : index
    %278 = memref.load %arg1[%c37] : memref<162xf32, #tpu.memory_space<smem>>
    %279 = vector.broadcast %278 : f32 to vector<14x14xf32>
    %280 = arith.mulf %279, %273 : vector<14x14xf32>
    %281 = arith.addf %255, %280 : vector<14x14xf32>
    %c64 = arith.constant 64 : index
    %282 = memref.load %arg1[%c64] : memref<162xf32, #tpu.memory_space<smem>>
    %283 = vector.broadcast %282 : f32 to vector<14x14xf32>
    %284 = arith.mulf %283, %273 : vector<14x14xf32>
    %285 = arith.addf %259, %284 : vector<14x14xf32>
    %c91 = arith.constant 91 : index
    %286 = memref.load %arg1[%c91] : memref<162xf32, #tpu.memory_space<smem>>
    %287 = vector.broadcast %286 : f32 to vector<14x14xf32>
    %288 = arith.mulf %287, %273 : vector<14x14xf32>
    %289 = arith.addf %263, %288 : vector<14x14xf32>
    %c118 = arith.constant 118 : index
    %290 = memref.load %arg1[%c118] : memref<162xf32, #tpu.memory_space<smem>>
    %291 = vector.broadcast %290 : f32 to vector<14x14xf32>
    %292 = arith.mulf %291, %273 : vector<14x14xf32>
    %293 = arith.addf %267, %292 : vector<14x14xf32>
    %c145 = arith.constant 145 : index
    %294 = memref.load %arg1[%c145] : memref<162xf32, #tpu.memory_space<smem>>
    %295 = vector.broadcast %294 : f32 to vector<14x14xf32>
    %296 = arith.mulf %295, %273 : vector<14x14xf32>
    %297 = arith.addf %271, %296 : vector<14x14xf32>
    %c0_50 = arith.constant 0 : index
    %c1_51 = arith.constant 1 : index
    %c0_52 = arith.constant 0 : index
    %c2_53 = arith.constant 2 : index
    %298 = vector.load %arg3[%c0_50, %c1_51, %c0_52, %c2_53] : memref<1x3x16x16xf32, #tpu.memory_space<vmem>>, vector<1x1x14x14xf32>
    %299 = vector.shape_cast %298 : vector<1x1x14x14xf32> to vector<14x14xf32>
    %c11 = arith.constant 11 : index
    %300 = memref.load %arg1[%c11] : memref<162xf32, #tpu.memory_space<smem>>
    %301 = vector.broadcast %300 : f32 to vector<14x14xf32>
    %302 = arith.mulf %301, %299 : vector<14x14xf32>
    %303 = arith.addf %277, %302 : vector<14x14xf32>
    %c38 = arith.constant 38 : index
    %304 = memref.load %arg1[%c38] : memref<162xf32, #tpu.memory_space<smem>>
    %305 = vector.broadcast %304 : f32 to vector<14x14xf32>
    %306 = arith.mulf %305, %299 : vector<14x14xf32>
    %307 = arith.addf %281, %306 : vector<14x14xf32>
    %c65 = arith.constant 65 : index
    %308 = memref.load %arg1[%c65] : memref<162xf32, #tpu.memory_space<smem>>
    %309 = vector.broadcast %308 : f32 to vector<14x14xf32>
    %310 = arith.mulf %309, %299 : vector<14x14xf32>
    %311 = arith.addf %285, %310 : vector<14x14xf32>
    %c92 = arith.constant 92 : index
    %312 = memref.load %arg1[%c92] : memref<162xf32, #tpu.memory_space<smem>>
    %313 = vector.broadcast %312 : f32 to vector<14x14xf32>
    %314 = arith.mulf %313, %299 : vector<14x14xf32>
    %315 = arith.addf %289, %314 : vector<14x14xf32>
    %c119 = arith.constant 119 : index
    %316 = memref.load %arg1[%c119] : memref<162xf32, #tpu.memory_space<smem>>
    %317 = vector.broadcast %316 : f32 to vector<14x14xf32>
    %318 = arith.mulf %317, %299 : vector<14x14xf32>
    %319 = arith.addf %293, %318 : vector<14x14xf32>
    %c146 = arith.constant 146 : index
    %320 = memref.load %arg1[%c146] : memref<162xf32, #tpu.memory_space<smem>>
    %321 = vector.broadcast %320 : f32 to vector<14x14xf32>
    %322 = arith.mulf %321, %299 : vector<14x14xf32>
    %323 = arith.addf %297, %322 : vector<14x14xf32>
    %c0_54 = arith.constant 0 : index
    %c1_55 = arith.constant 1 : index
    %c1_56 = arith.constant 1 : index
    %c0_57 = arith.constant 0 : index
    %324 = vector.load %arg3[%c0_54, %c1_55, %c1_56, %c0_57] : memref<1x3x16x16xf32, #tpu.memory_space<vmem>>, vector<1x1x14x14xf32>
    %325 = vector.shape_cast %324 : vector<1x1x14x14xf32> to vector<14x14xf32>
    %c12 = arith.constant 12 : index
    %326 = memref.load %arg1[%c12] : memref<162xf32, #tpu.memory_space<smem>>
    %327 = vector.broadcast %326 : f32 to vector<14x14xf32>
    %328 = arith.mulf %327, %325 : vector<14x14xf32>
    %329 = arith.addf %303, %328 : vector<14x14xf32>
    %c39 = arith.constant 39 : index
    %330 = memref.load %arg1[%c39] : memref<162xf32, #tpu.memory_space<smem>>
    %331 = vector.broadcast %330 : f32 to vector<14x14xf32>
    %332 = arith.mulf %331, %325 : vector<14x14xf32>
    %333 = arith.addf %307, %332 : vector<14x14xf32>
    %c66 = arith.constant 66 : index
    %334 = memref.load %arg1[%c66] : memref<162xf32, #tpu.memory_space<smem>>
    %335 = vector.broadcast %334 : f32 to vector<14x14xf32>
    %336 = arith.mulf %335, %325 : vector<14x14xf32>
    %337 = arith.addf %311, %336 : vector<14x14xf32>
    %c93 = arith.constant 93 : index
    %338 = memref.load %arg1[%c93] : memref<162xf32, #tpu.memory_space<smem>>
    %339 = vector.broadcast %338 : f32 to vector<14x14xf32>
    %340 = arith.mulf %339, %325 : vector<14x14xf32>
    %341 = arith.addf %315, %340 : vector<14x14xf32>
    %c120 = arith.constant 120 : index
    %342 = memref.load %arg1[%c120] : memref<162xf32, #tpu.memory_space<smem>>
    %343 = vector.broadcast %342 : f32 to vector<14x14xf32>
    %344 = arith.mulf %343, %325 : vector<14x14xf32>
    %345 = arith.addf %319, %344 : vector<14x14xf32>
    %c147 = arith.constant 147 : index
    %346 = memref.load %arg1[%c147] : memref<162xf32, #tpu.memory_space<smem>>
    %347 = vector.broadcast %346 : f32 to vector<14x14xf32>
    %348 = arith.mulf %347, %325 : vector<14x14xf32>
    %349 = arith.addf %323, %348 : vector<14x14xf32>
    %c0_58 = arith.constant 0 : index
    %c1_59 = arith.constant 1 : index
    %c1_60 = arith.constant 1 : index
    %c1_61 = arith.constant 1 : index
    %350 = vector.load %arg3[%c0_58, %c1_59, %c1_60, %c1_61] : memref<1x3x16x16xf32, #tpu.memory_space<vmem>>, vector<1x1x14x14xf32>
    %351 = vector.shape_cast %350 : vector<1x1x14x14xf32> to vector<14x14xf32>
    %c13 = arith.constant 13 : index
    %352 = memref.load %arg1[%c13] : memref<162xf32, #tpu.memory_space<smem>>
    %353 = vector.broadcast %352 : f32 to vector<14x14xf32>
    %354 = arith.mulf %353, %351 : vector<14x14xf32>
    %355 = arith.addf %329, %354 : vector<14x14xf32>
    %c40 = arith.constant 40 : index
    %356 = memref.load %arg1[%c40] : memref<162xf32, #tpu.memory_space<smem>>
    %357 = vector.broadcast %356 : f32 to vector<14x14xf32>
    %358 = arith.mulf %357, %351 : vector<14x14xf32>
    %359 = arith.addf %333, %358 : vector<14x14xf32>
    %c67 = arith.constant 67 : index
    %360 = memref.load %arg1[%c67] : memref<162xf32, #tpu.memory_space<smem>>
    %361 = vector.broadcast %360 : f32 to vector<14x14xf32>
    %362 = arith.mulf %361, %351 : vector<14x14xf32>
    %363 = arith.addf %337, %362 : vector<14x14xf32>
    %c94 = arith.constant 94 : index
    %364 = memref.load %arg1[%c94] : memref<162xf32, #tpu.memory_space<smem>>
    %365 = vector.broadcast %364 : f32 to vector<14x14xf32>
    %366 = arith.mulf %365, %351 : vector<14x14xf32>
    %367 = arith.addf %341, %366 : vector<14x14xf32>
    %c121 = arith.constant 121 : index
    %368 = memref.load %arg1[%c121] : memref<162xf32, #tpu.memory_space<smem>>
    %369 = vector.broadcast %368 : f32 to vector<14x14xf32>
    %370 = arith.mulf %369, %351 : vector<14x14xf32>
    %371 = arith.addf %345, %370 : vector<14x14xf32>
    %c148 = arith.constant 148 : index
    %372 = memref.load %arg1[%c148] : memref<162xf32, #tpu.memory_space<smem>>
    %373 = vector.broadcast %372 : f32 to vector<14x14xf32>
    %374 = arith.mulf %373, %351 : vector<14x14xf32>
    %375 = arith.addf %349, %374 : vector<14x14xf32>
    %c0_62 = arith.constant 0 : index
    %c1_63 = arith.constant 1 : index
    %c1_64 = arith.constant 1 : index
    %c2_65 = arith.constant 2 : index
    %376 = vector.load %arg3[%c0_62, %c1_63, %c1_64, %c2_65] : memref<1x3x16x16xf32, #tpu.memory_space<vmem>>, vector<1x1x14x14xf32>
    %377 = vector.shape_cast %376 : vector<1x1x14x14xf32> to vector<14x14xf32>
    %c14 = arith.constant 14 : index
    %378 = memref.load %arg1[%c14] : memref<162xf32, #tpu.memory_space<smem>>
    %379 = vector.broadcast %378 : f32 to vector<14x14xf32>
    %380 = arith.mulf %379, %377 : vector<14x14xf32>
    %381 = arith.addf %355, %380 : vector<14x14xf32>
    %c41 = arith.constant 41 : index
    %382 = memref.load %arg1[%c41] : memref<162xf32, #tpu.memory_space<smem>>
    %383 = vector.broadcast %382 : f32 to vector<14x14xf32>
    %384 = arith.mulf %383, %377 : vector<14x14xf32>
    %385 = arith.addf %359, %384 : vector<14x14xf32>
    %c68 = arith.constant 68 : index
    %386 = memref.load %arg1[%c68] : memref<162xf32, #tpu.memory_space<smem>>
    %387 = vector.broadcast %386 : f32 to vector<14x14xf32>
    %388 = arith.mulf %387, %377 : vector<14x14xf32>
    %389 = arith.addf %363, %388 : vector<14x14xf32>
    %c95 = arith.constant 95 : index
    %390 = memref.load %arg1[%c95] : memref<162xf32, #tpu.memory_space<smem>>
    %391 = vector.broadcast %390 : f32 to vector<14x14xf32>
    %392 = arith.mulf %391, %377 : vector<14x14xf32>
    %393 = arith.addf %367, %392 : vector<14x14xf32>
    %c122 = arith.constant 122 : index
    %394 = memref.load %arg1[%c122] : memref<162xf32, #tpu.memory_space<smem>>
    %395 = vector.broadcast %394 : f32 to vector<14x14xf32>
    %396 = arith.mulf %395, %377 : vector<14x14xf32>
    %397 = arith.addf %371, %396 : vector<14x14xf32>
    %c149 = arith.constant 149 : index
    %398 = memref.load %arg1[%c149] : memref<162xf32, #tpu.memory_space<smem>>
    %399 = vector.broadcast %398 : f32 to vector<14x14xf32>
    %400 = arith.mulf %399, %377 : vector<14x14xf32>
    %401 = arith.addf %375, %400 : vector<14x14xf32>
    %c0_66 = arith.constant 0 : index
    %c1_67 = arith.constant 1 : index
    %c2_68 = arith.constant 2 : index
    %c0_69 = arith.constant 0 : index
    %402 = vector.load %arg3[%c0_66, %c1_67, %c2_68, %c0_69] : memref<1x3x16x16xf32, #tpu.memory_space<vmem>>, vector<1x1x14x14xf32>
    %403 = vector.shape_cast %402 : vector<1x1x14x14xf32> to vector<14x14xf32>
    %c15 = arith.constant 15 : index
    %404 = memref.load %arg1[%c15] : memref<162xf32, #tpu.memory_space<smem>>
    %405 = vector.broadcast %404 : f32 to vector<14x14xf32>
    %406 = arith.mulf %405, %403 : vector<14x14xf32>
    %407 = arith.addf %381, %406 : vector<14x14xf32>
    %c42 = arith.constant 42 : index
    %408 = memref.load %arg1[%c42] : memref<162xf32, #tpu.memory_space<smem>>
    %409 = vector.broadcast %408 : f32 to vector<14x14xf32>
    %410 = arith.mulf %409, %403 : vector<14x14xf32>
    %411 = arith.addf %385, %410 : vector<14x14xf32>
    %c69 = arith.constant 69 : index
    %412 = memref.load %arg1[%c69] : memref<162xf32, #tpu.memory_space<smem>>
    %413 = vector.broadcast %412 : f32 to vector<14x14xf32>
    %414 = arith.mulf %413, %403 : vector<14x14xf32>
    %415 = arith.addf %389, %414 : vector<14x14xf32>
    %c96 = arith.constant 96 : index
    %416 = memref.load %arg1[%c96] : memref<162xf32, #tpu.memory_space<smem>>
    %417 = vector.broadcast %416 : f32 to vector<14x14xf32>
    %418 = arith.mulf %417, %403 : vector<14x14xf32>
    %419 = arith.addf %393, %418 : vector<14x14xf32>
    %c123 = arith.constant 123 : index
    %420 = memref.load %arg1[%c123] : memref<162xf32, #tpu.memory_space<smem>>
    %421 = vector.broadcast %420 : f32 to vector<14x14xf32>
    %422 = arith.mulf %421, %403 : vector<14x14xf32>
    %423 = arith.addf %397, %422 : vector<14x14xf32>
    %c150 = arith.constant 150 : index
    %424 = memref.load %arg1[%c150] : memref<162xf32, #tpu.memory_space<smem>>
    %425 = vector.broadcast %424 : f32 to vector<14x14xf32>
    %426 = arith.mulf %425, %403 : vector<14x14xf32>
    %427 = arith.addf %401, %426 : vector<14x14xf32>
    %c0_70 = arith.constant 0 : index
    %c1_71 = arith.constant 1 : index
    %c2_72 = arith.constant 2 : index
    %c1_73 = arith.constant 1 : index
    %428 = vector.load %arg3[%c0_70, %c1_71, %c2_72, %c1_73] : memref<1x3x16x16xf32, #tpu.memory_space<vmem>>, vector<1x1x14x14xf32>
    %429 = vector.shape_cast %428 : vector<1x1x14x14xf32> to vector<14x14xf32>
    %c16 = arith.constant 16 : index
    %430 = memref.load %arg1[%c16] : memref<162xf32, #tpu.memory_space<smem>>
    %431 = vector.broadcast %430 : f32 to vector<14x14xf32>
    %432 = arith.mulf %431, %429 : vector<14x14xf32>
    %433 = arith.addf %407, %432 : vector<14x14xf32>
    %c43 = arith.constant 43 : index
    %434 = memref.load %arg1[%c43] : memref<162xf32, #tpu.memory_space<smem>>
    %435 = vector.broadcast %434 : f32 to vector<14x14xf32>
    %436 = arith.mulf %435, %429 : vector<14x14xf32>
    %437 = arith.addf %411, %436 : vector<14x14xf32>
    %c70 = arith.constant 70 : index
    %438 = memref.load %arg1[%c70] : memref<162xf32, #tpu.memory_space<smem>>
    %439 = vector.broadcast %438 : f32 to vector<14x14xf32>
    %440 = arith.mulf %439, %429 : vector<14x14xf32>
    %441 = arith.addf %415, %440 : vector<14x14xf32>
    %c97 = arith.constant 97 : index
    %442 = memref.load %arg1[%c97] : memref<162xf32, #tpu.memory_space<smem>>
    %443 = vector.broadcast %442 : f32 to vector<14x14xf32>
    %444 = arith.mulf %443, %429 : vector<14x14xf32>
    %445 = arith.addf %419, %444 : vector<14x14xf32>
    %c124 = arith.constant 124 : index
    %446 = memref.load %arg1[%c124] : memref<162xf32, #tpu.memory_space<smem>>
    %447 = vector.broadcast %446 : f32 to vector<14x14xf32>
    %448 = arith.mulf %447, %429 : vector<14x14xf32>
    %449 = arith.addf %423, %448 : vector<14x14xf32>
    %c151 = arith.constant 151 : index
    %450 = memref.load %arg1[%c151] : memref<162xf32, #tpu.memory_space<smem>>
    %451 = vector.broadcast %450 : f32 to vector<14x14xf32>
    %452 = arith.mulf %451, %429 : vector<14x14xf32>
    %453 = arith.addf %427, %452 : vector<14x14xf32>
    %c0_74 = arith.constant 0 : index
    %c1_75 = arith.constant 1 : index
    %c2_76 = arith.constant 2 : index
    %c2_77 = arith.constant 2 : index
    %454 = vector.load %arg3[%c0_74, %c1_75, %c2_76, %c2_77] : memref<1x3x16x16xf32, #tpu.memory_space<vmem>>, vector<1x1x14x14xf32>
    %455 = vector.shape_cast %454 : vector<1x1x14x14xf32> to vector<14x14xf32>
    %c17 = arith.constant 17 : index
    %456 = memref.load %arg1[%c17] : memref<162xf32, #tpu.memory_space<smem>>
    %457 = vector.broadcast %456 : f32 to vector<14x14xf32>
    %458 = arith.mulf %457, %455 : vector<14x14xf32>
    %459 = arith.addf %433, %458 : vector<14x14xf32>
    %c44 = arith.constant 44 : index
    %460 = memref.load %arg1[%c44] : memref<162xf32, #tpu.memory_space<smem>>
    %461 = vector.broadcast %460 : f32 to vector<14x14xf32>
    %462 = arith.mulf %461, %455 : vector<14x14xf32>
    %463 = arith.addf %437, %462 : vector<14x14xf32>
    %c71 = arith.constant 71 : index
    %464 = memref.load %arg1[%c71] : memref<162xf32, #tpu.memory_space<smem>>
    %465 = vector.broadcast %464 : f32 to vector<14x14xf32>
    %466 = arith.mulf %465, %455 : vector<14x14xf32>
    %467 = arith.addf %441, %466 : vector<14x14xf32>
    %c98 = arith.constant 98 : index
    %468 = memref.load %arg1[%c98] : memref<162xf32, #tpu.memory_space<smem>>
    %469 = vector.broadcast %468 : f32 to vector<14x14xf32>
    %470 = arith.mulf %469, %455 : vector<14x14xf32>
    %471 = arith.addf %445, %470 : vector<14x14xf32>
    %c125 = arith.constant 125 : index
    %472 = memref.load %arg1[%c125] : memref<162xf32, #tpu.memory_space<smem>>
    %473 = vector.broadcast %472 : f32 to vector<14x14xf32>
    %474 = arith.mulf %473, %455 : vector<14x14xf32>
    %475 = arith.addf %449, %474 : vector<14x14xf32>
    %c152 = arith.constant 152 : index
    %476 = memref.load %arg1[%c152] : memref<162xf32, #tpu.memory_space<smem>>
    %477 = vector.broadcast %476 : f32 to vector<14x14xf32>
    %478 = arith.mulf %477, %455 : vector<14x14xf32>
    %479 = arith.addf %453, %478 : vector<14x14xf32>
    %c0_78 = arith.constant 0 : index
    %c2_79 = arith.constant 2 : index
    %c0_80 = arith.constant 0 : index
    %c0_81 = arith.constant 0 : index
    %480 = vector.load %arg3[%c0_78, %c2_79, %c0_80, %c0_81] : memref<1x3x16x16xf32, #tpu.memory_space<vmem>>, vector<1x1x14x14xf32>
    %481 = vector.shape_cast %480 : vector<1x1x14x14xf32> to vector<14x14xf32>
    %c18 = arith.constant 18 : index
    %482 = memref.load %arg1[%c18] : memref<162xf32, #tpu.memory_space<smem>>
    %483 = vector.broadcast %482 : f32 to vector<14x14xf32>
    %484 = arith.mulf %483, %481 : vector<14x14xf32>
    %485 = arith.addf %459, %484 : vector<14x14xf32>
    %c45 = arith.constant 45 : index
    %486 = memref.load %arg1[%c45] : memref<162xf32, #tpu.memory_space<smem>>
    %487 = vector.broadcast %486 : f32 to vector<14x14xf32>
    %488 = arith.mulf %487, %481 : vector<14x14xf32>
    %489 = arith.addf %463, %488 : vector<14x14xf32>
    %c72 = arith.constant 72 : index
    %490 = memref.load %arg1[%c72] : memref<162xf32, #tpu.memory_space<smem>>
    %491 = vector.broadcast %490 : f32 to vector<14x14xf32>
    %492 = arith.mulf %491, %481 : vector<14x14xf32>
    %493 = arith.addf %467, %492 : vector<14x14xf32>
    %c99 = arith.constant 99 : index
    %494 = memref.load %arg1[%c99] : memref<162xf32, #tpu.memory_space<smem>>
    %495 = vector.broadcast %494 : f32 to vector<14x14xf32>
    %496 = arith.mulf %495, %481 : vector<14x14xf32>
    %497 = arith.addf %471, %496 : vector<14x14xf32>
    %c126 = arith.constant 126 : index
    %498 = memref.load %arg1[%c126] : memref<162xf32, #tpu.memory_space<smem>>
    %499 = vector.broadcast %498 : f32 to vector<14x14xf32>
    %500 = arith.mulf %499, %481 : vector<14x14xf32>
    %501 = arith.addf %475, %500 : vector<14x14xf32>
    %c153 = arith.constant 153 : index
    %502 = memref.load %arg1[%c153] : memref<162xf32, #tpu.memory_space<smem>>
    %503 = vector.broadcast %502 : f32 to vector<14x14xf32>
    %504 = arith.mulf %503, %481 : vector<14x14xf32>
    %505 = arith.addf %479, %504 : vector<14x14xf32>
    %c0_82 = arith.constant 0 : index
    %c2_83 = arith.constant 2 : index
    %c0_84 = arith.constant 0 : index
    %c1_85 = arith.constant 1 : index
    %506 = vector.load %arg3[%c0_82, %c2_83, %c0_84, %c1_85] : memref<1x3x16x16xf32, #tpu.memory_space<vmem>>, vector<1x1x14x14xf32>
    %507 = vector.shape_cast %506 : vector<1x1x14x14xf32> to vector<14x14xf32>
    %c19 = arith.constant 19 : index
    %508 = memref.load %arg1[%c19] : memref<162xf32, #tpu.memory_space<smem>>
    %509 = vector.broadcast %508 : f32 to vector<14x14xf32>
    %510 = arith.mulf %509, %507 : vector<14x14xf32>
    %511 = arith.addf %485, %510 : vector<14x14xf32>
    %c46 = arith.constant 46 : index
    %512 = memref.load %arg1[%c46] : memref<162xf32, #tpu.memory_space<smem>>
    %513 = vector.broadcast %512 : f32 to vector<14x14xf32>
    %514 = arith.mulf %513, %507 : vector<14x14xf32>
    %515 = arith.addf %489, %514 : vector<14x14xf32>
    %c73 = arith.constant 73 : index
    %516 = memref.load %arg1[%c73] : memref<162xf32, #tpu.memory_space<smem>>
    %517 = vector.broadcast %516 : f32 to vector<14x14xf32>
    %518 = arith.mulf %517, %507 : vector<14x14xf32>
    %519 = arith.addf %493, %518 : vector<14x14xf32>
    %c100 = arith.constant 100 : index
    %520 = memref.load %arg1[%c100] : memref<162xf32, #tpu.memory_space<smem>>
    %521 = vector.broadcast %520 : f32 to vector<14x14xf32>
    %522 = arith.mulf %521, %507 : vector<14x14xf32>
    %523 = arith.addf %497, %522 : vector<14x14xf32>
    %c127 = arith.constant 127 : index
    %524 = memref.load %arg1[%c127] : memref<162xf32, #tpu.memory_space<smem>>
    %525 = vector.broadcast %524 : f32 to vector<14x14xf32>
    %526 = arith.mulf %525, %507 : vector<14x14xf32>
    %527 = arith.addf %501, %526 : vector<14x14xf32>
    %c154 = arith.constant 154 : index
    %528 = memref.load %arg1[%c154] : memref<162xf32, #tpu.memory_space<smem>>
    %529 = vector.broadcast %528 : f32 to vector<14x14xf32>
    %530 = arith.mulf %529, %507 : vector<14x14xf32>
    %531 = arith.addf %505, %530 : vector<14x14xf32>
    %c0_86 = arith.constant 0 : index
    %c2_87 = arith.constant 2 : index
    %c0_88 = arith.constant 0 : index
    %c2_89 = arith.constant 2 : index
    %532 = vector.load %arg3[%c0_86, %c2_87, %c0_88, %c2_89] : memref<1x3x16x16xf32, #tpu.memory_space<vmem>>, vector<1x1x14x14xf32>
    %533 = vector.shape_cast %532 : vector<1x1x14x14xf32> to vector<14x14xf32>
    %c20 = arith.constant 20 : index
    %534 = memref.load %arg1[%c20] : memref<162xf32, #tpu.memory_space<smem>>
    %535 = vector.broadcast %534 : f32 to vector<14x14xf32>
    %536 = arith.mulf %535, %533 : vector<14x14xf32>
    %537 = arith.addf %511, %536 : vector<14x14xf32>
    %c47 = arith.constant 47 : index
    %538 = memref.load %arg1[%c47] : memref<162xf32, #tpu.memory_space<smem>>
    %539 = vector.broadcast %538 : f32 to vector<14x14xf32>
    %540 = arith.mulf %539, %533 : vector<14x14xf32>
    %541 = arith.addf %515, %540 : vector<14x14xf32>
    %c74 = arith.constant 74 : index
    %542 = memref.load %arg1[%c74] : memref<162xf32, #tpu.memory_space<smem>>
    %543 = vector.broadcast %542 : f32 to vector<14x14xf32>
    %544 = arith.mulf %543, %533 : vector<14x14xf32>
    %545 = arith.addf %519, %544 : vector<14x14xf32>
    %c101 = arith.constant 101 : index
    %546 = memref.load %arg1[%c101] : memref<162xf32, #tpu.memory_space<smem>>
    %547 = vector.broadcast %546 : f32 to vector<14x14xf32>
    %548 = arith.mulf %547, %533 : vector<14x14xf32>
    %549 = arith.addf %523, %548 : vector<14x14xf32>
    %c128 = arith.constant 128 : index
    %550 = memref.load %arg1[%c128] : memref<162xf32, #tpu.memory_space<smem>>
    %551 = vector.broadcast %550 : f32 to vector<14x14xf32>
    %552 = arith.mulf %551, %533 : vector<14x14xf32>
    %553 = arith.addf %527, %552 : vector<14x14xf32>
    %c155 = arith.constant 155 : index
    %554 = memref.load %arg1[%c155] : memref<162xf32, #tpu.memory_space<smem>>
    %555 = vector.broadcast %554 : f32 to vector<14x14xf32>
    %556 = arith.mulf %555, %533 : vector<14x14xf32>
    %557 = arith.addf %531, %556 : vector<14x14xf32>
    %c0_90 = arith.constant 0 : index
    %c2_91 = arith.constant 2 : index
    %c1_92 = arith.constant 1 : index
    %c0_93 = arith.constant 0 : index
    %558 = vector.load %arg3[%c0_90, %c2_91, %c1_92, %c0_93] : memref<1x3x16x16xf32, #tpu.memory_space<vmem>>, vector<1x1x14x14xf32>
    %559 = vector.shape_cast %558 : vector<1x1x14x14xf32> to vector<14x14xf32>
    %c21 = arith.constant 21 : index
    %560 = memref.load %arg1[%c21] : memref<162xf32, #tpu.memory_space<smem>>
    %561 = vector.broadcast %560 : f32 to vector<14x14xf32>
    %562 = arith.mulf %561, %559 : vector<14x14xf32>
    %563 = arith.addf %537, %562 : vector<14x14xf32>
    %c48 = arith.constant 48 : index
    %564 = memref.load %arg1[%c48] : memref<162xf32, #tpu.memory_space<smem>>
    %565 = vector.broadcast %564 : f32 to vector<14x14xf32>
    %566 = arith.mulf %565, %559 : vector<14x14xf32>
    %567 = arith.addf %541, %566 : vector<14x14xf32>
    %c75 = arith.constant 75 : index
    %568 = memref.load %arg1[%c75] : memref<162xf32, #tpu.memory_space<smem>>
    %569 = vector.broadcast %568 : f32 to vector<14x14xf32>
    %570 = arith.mulf %569, %559 : vector<14x14xf32>
    %571 = arith.addf %545, %570 : vector<14x14xf32>
    %c102 = arith.constant 102 : index
    %572 = memref.load %arg1[%c102] : memref<162xf32, #tpu.memory_space<smem>>
    %573 = vector.broadcast %572 : f32 to vector<14x14xf32>
    %574 = arith.mulf %573, %559 : vector<14x14xf32>
    %575 = arith.addf %549, %574 : vector<14x14xf32>
    %c129 = arith.constant 129 : index
    %576 = memref.load %arg1[%c129] : memref<162xf32, #tpu.memory_space<smem>>
    %577 = vector.broadcast %576 : f32 to vector<14x14xf32>
    %578 = arith.mulf %577, %559 : vector<14x14xf32>
    %579 = arith.addf %553, %578 : vector<14x14xf32>
    %c156 = arith.constant 156 : index
    %580 = memref.load %arg1[%c156] : memref<162xf32, #tpu.memory_space<smem>>
    %581 = vector.broadcast %580 : f32 to vector<14x14xf32>
    %582 = arith.mulf %581, %559 : vector<14x14xf32>
    %583 = arith.addf %557, %582 : vector<14x14xf32>
    %c0_94 = arith.constant 0 : index
    %c2_95 = arith.constant 2 : index
    %c1_96 = arith.constant 1 : index
    %c1_97 = arith.constant 1 : index
    %584 = vector.load %arg3[%c0_94, %c2_95, %c1_96, %c1_97] : memref<1x3x16x16xf32, #tpu.memory_space<vmem>>, vector<1x1x14x14xf32>
    %585 = vector.shape_cast %584 : vector<1x1x14x14xf32> to vector<14x14xf32>
    %c22 = arith.constant 22 : index
    %586 = memref.load %arg1[%c22] : memref<162xf32, #tpu.memory_space<smem>>
    %587 = vector.broadcast %586 : f32 to vector<14x14xf32>
    %588 = arith.mulf %587, %585 : vector<14x14xf32>
    %589 = arith.addf %563, %588 : vector<14x14xf32>
    %c49 = arith.constant 49 : index
    %590 = memref.load %arg1[%c49] : memref<162xf32, #tpu.memory_space<smem>>
    %591 = vector.broadcast %590 : f32 to vector<14x14xf32>
    %592 = arith.mulf %591, %585 : vector<14x14xf32>
    %593 = arith.addf %567, %592 : vector<14x14xf32>
    %c76 = arith.constant 76 : index
    %594 = memref.load %arg1[%c76] : memref<162xf32, #tpu.memory_space<smem>>
    %595 = vector.broadcast %594 : f32 to vector<14x14xf32>
    %596 = arith.mulf %595, %585 : vector<14x14xf32>
    %597 = arith.addf %571, %596 : vector<14x14xf32>
    %c103 = arith.constant 103 : index
    %598 = memref.load %arg1[%c103] : memref<162xf32, #tpu.memory_space<smem>>
    %599 = vector.broadcast %598 : f32 to vector<14x14xf32>
    %600 = arith.mulf %599, %585 : vector<14x14xf32>
    %601 = arith.addf %575, %600 : vector<14x14xf32>
    %c130 = arith.constant 130 : index
    %602 = memref.load %arg1[%c130] : memref<162xf32, #tpu.memory_space<smem>>
    %603 = vector.broadcast %602 : f32 to vector<14x14xf32>
    %604 = arith.mulf %603, %585 : vector<14x14xf32>
    %605 = arith.addf %579, %604 : vector<14x14xf32>
    %c157 = arith.constant 157 : index
    %606 = memref.load %arg1[%c157] : memref<162xf32, #tpu.memory_space<smem>>
    %607 = vector.broadcast %606 : f32 to vector<14x14xf32>
    %608 = arith.mulf %607, %585 : vector<14x14xf32>
    %609 = arith.addf %583, %608 : vector<14x14xf32>
    %c0_98 = arith.constant 0 : index
    %c2_99 = arith.constant 2 : index
    %c1_100 = arith.constant 1 : index
    %c2_101 = arith.constant 2 : index
    %610 = vector.load %arg3[%c0_98, %c2_99, %c1_100, %c2_101] : memref<1x3x16x16xf32, #tpu.memory_space<vmem>>, vector<1x1x14x14xf32>
    %611 = vector.shape_cast %610 : vector<1x1x14x14xf32> to vector<14x14xf32>
    %c23 = arith.constant 23 : index
    %612 = memref.load %arg1[%c23] : memref<162xf32, #tpu.memory_space<smem>>
    %613 = vector.broadcast %612 : f32 to vector<14x14xf32>
    %614 = arith.mulf %613, %611 : vector<14x14xf32>
    %615 = arith.addf %589, %614 : vector<14x14xf32>
    %c50 = arith.constant 50 : index
    %616 = memref.load %arg1[%c50] : memref<162xf32, #tpu.memory_space<smem>>
    %617 = vector.broadcast %616 : f32 to vector<14x14xf32>
    %618 = arith.mulf %617, %611 : vector<14x14xf32>
    %619 = arith.addf %593, %618 : vector<14x14xf32>
    %c77 = arith.constant 77 : index
    %620 = memref.load %arg1[%c77] : memref<162xf32, #tpu.memory_space<smem>>
    %621 = vector.broadcast %620 : f32 to vector<14x14xf32>
    %622 = arith.mulf %621, %611 : vector<14x14xf32>
    %623 = arith.addf %597, %622 : vector<14x14xf32>
    %c104 = arith.constant 104 : index
    %624 = memref.load %arg1[%c104] : memref<162xf32, #tpu.memory_space<smem>>
    %625 = vector.broadcast %624 : f32 to vector<14x14xf32>
    %626 = arith.mulf %625, %611 : vector<14x14xf32>
    %627 = arith.addf %601, %626 : vector<14x14xf32>
    %c131 = arith.constant 131 : index
    %628 = memref.load %arg1[%c131] : memref<162xf32, #tpu.memory_space<smem>>
    %629 = vector.broadcast %628 : f32 to vector<14x14xf32>
    %630 = arith.mulf %629, %611 : vector<14x14xf32>
    %631 = arith.addf %605, %630 : vector<14x14xf32>
    %c158 = arith.constant 158 : index
    %632 = memref.load %arg1[%c158] : memref<162xf32, #tpu.memory_space<smem>>
    %633 = vector.broadcast %632 : f32 to vector<14x14xf32>
    %634 = arith.mulf %633, %611 : vector<14x14xf32>
    %635 = arith.addf %609, %634 : vector<14x14xf32>
    %c0_102 = arith.constant 0 : index
    %c2_103 = arith.constant 2 : index
    %c2_104 = arith.constant 2 : index
    %c0_105 = arith.constant 0 : index
    %636 = vector.load %arg3[%c0_102, %c2_103, %c2_104, %c0_105] : memref<1x3x16x16xf32, #tpu.memory_space<vmem>>, vector<1x1x14x14xf32>
    %637 = vector.shape_cast %636 : vector<1x1x14x14xf32> to vector<14x14xf32>
    %c24 = arith.constant 24 : index
    %638 = memref.load %arg1[%c24] : memref<162xf32, #tpu.memory_space<smem>>
    %639 = vector.broadcast %638 : f32 to vector<14x14xf32>
    %640 = arith.mulf %639, %637 : vector<14x14xf32>
    %641 = arith.addf %615, %640 : vector<14x14xf32>
    %c51 = arith.constant 51 : index
    %642 = memref.load %arg1[%c51] : memref<162xf32, #tpu.memory_space<smem>>
    %643 = vector.broadcast %642 : f32 to vector<14x14xf32>
    %644 = arith.mulf %643, %637 : vector<14x14xf32>
    %645 = arith.addf %619, %644 : vector<14x14xf32>
    %c78 = arith.constant 78 : index
    %646 = memref.load %arg1[%c78] : memref<162xf32, #tpu.memory_space<smem>>
    %647 = vector.broadcast %646 : f32 to vector<14x14xf32>
    %648 = arith.mulf %647, %637 : vector<14x14xf32>
    %649 = arith.addf %623, %648 : vector<14x14xf32>
    %c105 = arith.constant 105 : index
    %650 = memref.load %arg1[%c105] : memref<162xf32, #tpu.memory_space<smem>>
    %651 = vector.broadcast %650 : f32 to vector<14x14xf32>
    %652 = arith.mulf %651, %637 : vector<14x14xf32>
    %653 = arith.addf %627, %652 : vector<14x14xf32>
    %c132 = arith.constant 132 : index
    %654 = memref.load %arg1[%c132] : memref<162xf32, #tpu.memory_space<smem>>
    %655 = vector.broadcast %654 : f32 to vector<14x14xf32>
    %656 = arith.mulf %655, %637 : vector<14x14xf32>
    %657 = arith.addf %631, %656 : vector<14x14xf32>
    %c159 = arith.constant 159 : index
    %658 = memref.load %arg1[%c159] : memref<162xf32, #tpu.memory_space<smem>>
    %659 = vector.broadcast %658 : f32 to vector<14x14xf32>
    %660 = arith.mulf %659, %637 : vector<14x14xf32>
    %661 = arith.addf %635, %660 : vector<14x14xf32>
    %c0_106 = arith.constant 0 : index
    %c2_107 = arith.constant 2 : index
    %c2_108 = arith.constant 2 : index
    %c1_109 = arith.constant 1 : index
    %662 = vector.load %arg3[%c0_106, %c2_107, %c2_108, %c1_109] : memref<1x3x16x16xf32, #tpu.memory_space<vmem>>, vector<1x1x14x14xf32>
    %663 = vector.shape_cast %662 : vector<1x1x14x14xf32> to vector<14x14xf32>
    %c25 = arith.constant 25 : index
    %664 = memref.load %arg1[%c25] : memref<162xf32, #tpu.memory_space<smem>>
    %665 = vector.broadcast %664 : f32 to vector<14x14xf32>
    %666 = arith.mulf %665, %663 : vector<14x14xf32>
    %667 = arith.addf %641, %666 : vector<14x14xf32>
    %c52 = arith.constant 52 : index
    %668 = memref.load %arg1[%c52] : memref<162xf32, #tpu.memory_space<smem>>
    %669 = vector.broadcast %668 : f32 to vector<14x14xf32>
    %670 = arith.mulf %669, %663 : vector<14x14xf32>
    %671 = arith.addf %645, %670 : vector<14x14xf32>
    %c79 = arith.constant 79 : index
    %672 = memref.load %arg1[%c79] : memref<162xf32, #tpu.memory_space<smem>>
    %673 = vector.broadcast %672 : f32 to vector<14x14xf32>
    %674 = arith.mulf %673, %663 : vector<14x14xf32>
    %675 = arith.addf %649, %674 : vector<14x14xf32>
    %c106 = arith.constant 106 : index
    %676 = memref.load %arg1[%c106] : memref<162xf32, #tpu.memory_space<smem>>
    %677 = vector.broadcast %676 : f32 to vector<14x14xf32>
    %678 = arith.mulf %677, %663 : vector<14x14xf32>
    %679 = arith.addf %653, %678 : vector<14x14xf32>
    %c133 = arith.constant 133 : index
    %680 = memref.load %arg1[%c133] : memref<162xf32, #tpu.memory_space<smem>>
    %681 = vector.broadcast %680 : f32 to vector<14x14xf32>
    %682 = arith.mulf %681, %663 : vector<14x14xf32>
    %683 = arith.addf %657, %682 : vector<14x14xf32>
    %c160 = arith.constant 160 : index
    %684 = memref.load %arg1[%c160] : memref<162xf32, #tpu.memory_space<smem>>
    %685 = vector.broadcast %684 : f32 to vector<14x14xf32>
    %686 = arith.mulf %685, %663 : vector<14x14xf32>
    %687 = arith.addf %661, %686 : vector<14x14xf32>
    %c0_110 = arith.constant 0 : index
    %c2_111 = arith.constant 2 : index
    %c2_112 = arith.constant 2 : index
    %c2_113 = arith.constant 2 : index
    %688 = vector.load %arg3[%c0_110, %c2_111, %c2_112, %c2_113] : memref<1x3x16x16xf32, #tpu.memory_space<vmem>>, vector<1x1x14x14xf32>
    %689 = vector.shape_cast %688 : vector<1x1x14x14xf32> to vector<14x14xf32>
    %c26 = arith.constant 26 : index
    %690 = memref.load %arg1[%c26] : memref<162xf32, #tpu.memory_space<smem>>
    %691 = vector.broadcast %690 : f32 to vector<14x14xf32>
    %692 = arith.mulf %691, %689 : vector<14x14xf32>
    %693 = arith.addf %667, %692 : vector<14x14xf32>
    %c53 = arith.constant 53 : index
    %694 = memref.load %arg1[%c53] : memref<162xf32, #tpu.memory_space<smem>>
    %695 = vector.broadcast %694 : f32 to vector<14x14xf32>
    %696 = arith.mulf %695, %689 : vector<14x14xf32>
    %697 = arith.addf %671, %696 : vector<14x14xf32>
    %c80 = arith.constant 80 : index
    %698 = memref.load %arg1[%c80] : memref<162xf32, #tpu.memory_space<smem>>
    %699 = vector.broadcast %698 : f32 to vector<14x14xf32>
    %700 = arith.mulf %699, %689 : vector<14x14xf32>
    %701 = arith.addf %675, %700 : vector<14x14xf32>
    %c107 = arith.constant 107 : index
    %702 = memref.load %arg1[%c107] : memref<162xf32, #tpu.memory_space<smem>>
    %703 = vector.broadcast %702 : f32 to vector<14x14xf32>
    %704 = arith.mulf %703, %689 : vector<14x14xf32>
    %705 = arith.addf %679, %704 : vector<14x14xf32>
    %c134 = arith.constant 134 : index
    %706 = memref.load %arg1[%c134] : memref<162xf32, #tpu.memory_space<smem>>
    %707 = vector.broadcast %706 : f32 to vector<14x14xf32>
    %708 = arith.mulf %707, %689 : vector<14x14xf32>
    %709 = arith.addf %683, %708 : vector<14x14xf32>
    %c161 = arith.constant 161 : index
    %710 = memref.load %arg1[%c161] : memref<162xf32, #tpu.memory_space<smem>>
    %711 = vector.broadcast %710 : f32 to vector<14x14xf32>
    %712 = arith.mulf %711, %689 : vector<14x14xf32>
    %713 = arith.addf %687, %712 : vector<14x14xf32>
    %c0_114 = arith.constant 0 : index
    %c0_115 = arith.constant 0 : index
    %c0_116 = arith.constant 0 : index
    %c0_117 = arith.constant 0 : index
    %714 = vector.load %arg4[%c0_114, %c0_115, %c0_116, %c0_117] : memref<1x6x14x14xf32, #tpu.memory_space<vmem>>, vector<1x1x14x14xf32>
    %715 = vector.shape_cast %714 : vector<1x1x14x14xf32> to vector<14x14xf32>
    %716 = vector.shape_cast %693 : vector<14x14xf32> to vector<1x1x14x14xf32>
    tpu.vector_store %arg4[%c0_114, %c0_115, %c0_116, %c0_117], %716 {strides = array<i32>} : memref<1x6x14x14xf32, #tpu.memory_space<vmem>>, vector<1x1x14x14xf32>,
    %c0_118 = arith.constant 0 : index
    %c1_119 = arith.constant 1 : index
    %c0_120 = arith.constant 0 : index
    %c0_121 = arith.constant 0 : index
    %717 = vector.load %arg4[%c0_118, %c1_119, %c0_120, %c0_121] : memref<1x6x14x14xf32, #tpu.memory_space<vmem>>, vector<1x1x14x14xf32>
    %718 = vector.shape_cast %717 : vector<1x1x14x14xf32> to vector<14x14xf32>
    %719 = vector.shape_cast %697 : vector<14x14xf32> to vector<1x1x14x14xf32>
    tpu.vector_store %arg4[%c0_118, %c1_119, %c0_120, %c0_121], %719 {strides = array<i32>} : memref<1x6x14x14xf32, #tpu.memory_space<vmem>>, vector<1x1x14x14xf32>,
    %c0_122 = arith.constant 0 : index
    %c2_123 = arith.constant 2 : index
    %c0_124 = arith.constant 0 : index
    %c0_125 = arith.constant 0 : index
    %720 = vector.load %arg4[%c0_122, %c2_123, %c0_124, %c0_125] : memref<1x6x14x14xf32, #tpu.memory_space<vmem>>, vector<1x1x14x14xf32>
    %721 = vector.shape_cast %720 : vector<1x1x14x14xf32> to vector<14x14xf32>
    %722 = vector.shape_cast %701 : vector<14x14xf32> to vector<1x1x14x14xf32>
    tpu.vector_store %arg4[%c0_122, %c2_123, %c0_124, %c0_125], %722 {strides = array<i32>} : memref<1x6x14x14xf32, #tpu.memory_space<vmem>>, vector<1x1x14x14xf32>,
    %c0_126 = arith.constant 0 : index
    %c3_127 = arith.constant 3 : index
    %c0_128 = arith.constant 0 : index
    %c0_129 = arith.constant 0 : index
    %723 = vector.load %arg4[%c0_126, %c3_127, %c0_128, %c0_129] : memref<1x6x14x14xf32, #tpu.memory_space<vmem>>, vector<1x1x14x14xf32>
    %724 = vector.shape_cast %723 : vector<1x1x14x14xf32> to vector<14x14xf32>
    %725 = vector.shape_cast %705 : vector<14x14xf32> to vector<1x1x14x14xf32>
    tpu.vector_store %arg4[%c0_126, %c3_127, %c0_128, %c0_129], %725 {strides = array<i32>} : memref<1x6x14x14xf32, #tpu.memory_space<vmem>>, vector<1x1x14x14xf32>,
    %c0_130 = arith.constant 0 : index
    %c4_131 = arith.constant 4 : index
    %c0_132 = arith.constant 0 : index
    %c0_133 = arith.constant 0 : index
    %726 = vector.load %arg4[%c0_130, %c4_131, %c0_132, %c0_133] : memref<1x6x14x14xf32, #tpu.memory_space<vmem>>, vector<1x1x14x14xf32>
    %727 = vector.shape_cast %726 : vector<1x1x14x14xf32> to vector<14x14xf32>
    %728 = vector.shape_cast %709 : vector<14x14xf32> to vector<1x1x14x14xf32>
    tpu.vector_store %arg4[%c0_130, %c4_131, %c0_132, %c0_133], %728 {strides = array<i32>} : memref<1x6x14x14xf32, #tpu.memory_space<vmem>>, vector<1x1x14x14xf32>,
    %c0_134 = arith.constant 0 : index
    %c5_135 = arith.constant 5 : index
    %c0_136 = arith.constant 0 : index
    %c0_137 = arith.constant 0 : index
    %729 = vector.load %arg4[%c0_134, %c5_135, %c0_136, %c0_137] : memref<1x6x14x14xf32, #tpu.memory_space<vmem>>, vector<1x1x14x14xf32>
    %730 = vector.shape_cast %729 : vector<1x1x14x14xf32> to vector<14x14xf32>
    %731 = vector.shape_cast %713 : vector<14x14xf32> to vector<1x1x14x14xf32>
    tpu.vector_store %arg4[%c0_134, %c5_135, %c0_136, %c0_137], %731 {strides = array<i32>} : memref<1x6x14x14xf32, #tpu.memory_space<vmem>>, vector<1x1x14x14xf32>,
    return
  }
  func.func @transform_0(%arg0: i32) -> i32 {
    %c0_i32 = arith.constant 0 : i32
    %c0_i32_0 = arith.constant 0 : i32
    return %c0_i32 : i32
  }
  func.func @transform_1(%arg0: i32) -> i32 {
    %c0_i32 = arith.constant 0 : i32
    %c0_i32_0 = arith.constant 0 : i32
    return %c0_i32 : i32
  }
  func.func @transform_2(%arg0: i32) -> (i32, i32, i32, i32) {
    %c0_i32 = arith.constant 0 : i32
    %c0_i32_0 = arith.constant 0 : i32
    %c0_i32_1 = arith.constant 0 : i32
    %c0_i32_2 = arith.constant 0 : i32
    return %arg0, %c0_i32, %c0_i32_0, %c0_i32_1 : i32, i32, i32, i32
  }
  func.func @transform_3(%arg0: i32) -> (i32, i32, i32, i32) {
    %c0_i32 = arith.constant 0 : i32
    %c0_i32_0 = arith.constant 0 : i32
    %c0_i32_1 = arith.constant 0 : i32
    %c0_i32_2 = arith.constant 0 : i32
    return %arg0, %c0_i32, %c0_i32_0, %c0_i32_1 : i32, i32, i32, i32
  }
}

</mosaic_0001>

<bundles_post_ra>
// kernel: tpu_custom_call.1
= control target key start
LH: loop header
LB: loop body
LE: loop exit
PB: predicated region body
PF: predicated region fallthrough
CT: control target
= control target key end

     0   :  { %8 = vsyncpa [#allocation4], 0  ;;  %s4261_s0 = inlined_call_operand.hbm [shape: f32[162], index: 0, kind: input, shape index: {}]   ;;  %s4262_s1 = inlined_call_operand.vmem [shape: f32[6], index: 1, kind: input, shape index: {}]   ;;  %s4263_s2 = inlined_call_operand.hbm [shape: f32[2,3,16,16], index: 2, kind: input, shape index: {}]   ;;  %s4264_s3 = inlined_call_operand.vmem [shape: f32[2,6,14,14], index: 3, kind: output, shape index: {}]  }
   0x1   :  { %9 = vsyncpa [#allocation5], 0 }
   0x2   :  { %10 = vsyncpa [#allocation3], 0 }
   0x3   :  { %12 = vsyncpa [#allocation3 + $0x1], 0  ;;  %s2591_s12 = smov 0   ;;  %s2593_s13 = smov 0  }
   0x4   :  { %s2595_s14 = smov 0   ;;  %s2597_s15 = smov 0  }
   0x5 LB: > { %s2610_s16 = sadd.s32 4294967295, %s2562_s15   ;;  %s2613_s17 = sadd.s32 1, %s2562_s15   ;;  %s2562_s15 = sphi %s2597_s15, %s4405_s15   ;;  %s2558_s14 = sphi %s2595_s14, %s4404_s14   ;;  %s2554_s13 = sphi %s2593_s13, %s4403_s13   ;;  %s2550_s12 = sphi %s2591_s12, %s4402_s12  }
   0x6   : > { %s64_s18 = ssub.s32 %s2562_s15, %s2613_s17  ;;  %s67_s19 = sadd.s32 1, %s2558_s14 }
   0x7   : > { %p65_p0 = scmp.eq.s32.totalorder %s64_s18, 0  ;;  %p74_p1 = scmp.ne.s32.totalorder %s2558_s14, %s2554_s13 }
   0x8   : > { %p75_p2 = scmp.eq.s32.totalorder %s2562_s15, 0  ;;  %p80_p3 = scmp.ne.s32.totalorder %s2554_s13, %s2550_s12 }
   0x9   : > { %s2623_s20 = scalar_select %p65_p0, %s2558_s14, %s67_s19  }
   0xa   : > { %p76_p4 = por %p75_p2, %p74_p1  ;;  %p4265_p5 = scmp.eq.s32.totalorder %s2610_s16, 0 }
   0xb   : > { %p2195_p6 = scmp.ge.s32.totalorder %s2562_s15, 1  ;;  %p117_p7 = scmp.lt.s32.totalorder %s2562_s15, 3 }
   0xc   : > { %p2630_p8 = por %p4265_p5, %p80_p3  ;;  %p2421_p10 = scmp.lt.s32.totalorder %s2562_s15, 2 }
   0xd   : > { %p2634_p9 = pnand %p2195_p6, %p117_p7  ;;  %s139_s25 = sshll.u32 %s4262_s1, 4  ;;  %s140_s25 = int_to_ptr.vmem [resolvable:$true] %s139_s25 }
   0xe   : > { %s4274_s21 = scalar_select %p2630_p8, 1, 0 }
   0xf   : > { %s4275_s22 = scalar_select %p2634_p9, 1, 0 }
  0x10   : > { %p2408_p11 = pneg %p2634_p9  ;;  %p2644_p12 = pnand %p2421_p10, %p76_p4 }
  0x11   : > { %s150_s28 = sand.u32 1, %s2558_s14   ;;  %s2564_s29 = smov [#allocation2]  }
  0x12   : > { %p2650_p13 = pnand %p2408_p11, %p4265_p5  ;;  %s2477_s5 = scalar_lea.vmem %s140_s25, 16 }
  0x13   : > { %p2478_p0 = scmp.ne.s32.totalorder %s140_s25, %s2477_s5  ;;  %p2485_p4 = scmp.lt.s32.totalorder %s140_s25, %s140_s25 }
  0x14   : > { %2411 = dma.hbm_to_smem (!%p2650_p13), %s4261_s0, 32, %s2564_s29, [#allocation4]  }
  0x15   : > { %p2479_p1 = pneg %p2650_p13  ;;  %p2486_p6 = scmp.lt.s32.totalorder %s2477_s5, %s2477_s5 }
  0x17   : > { %p2480_p2 = pnand %p2479_p1, %p2478_p0  ;;  %p2487_p7 = por %p2486_p6, %p2485_p4 }
  0x19   : > { %p2481_p3 = pneg %p2480_p2 }
  0x1b   : > { %p2488_p10 = pnand %p2487_p7, %p2481_p3 }
  0x1d   : > { %2491 = shalt.err (!%p2488_p10)
}
  0x1e   : > { %s2565_s6 = smov [#allocation6]   ;;  %s2394_s7 = smul.u32 48, %s150_s28 }
  0x1f   : > { %2414 = dma.vmem_to_smem (!%p2650_p13), %s140_s25, 16, %s2565_s6, [#allocation5]  }
  0x20   : > { %s2395_s8 = smul.u32 768, %s2562_s15  ;;  %s154_s12 = scalar_lea.vmem [#allocation7], %s2394_s7 }
  0x21   : > { %s161_s18 = sshll.u32 %s154_s12, 4  ;;  %s2672_s19 = scalar_lea.sflag [#allocation3], %s150_s28  ;;  %s2670_s18 = int_to_ptr.vmem [resolvable:$true] %s161_s18 }
  0x22   : > { %s2668_s11 = scalar_lea.hbm %s4263_s2, %s2395_s8  ;;  %p2494_p13 = pneg %p2644_p12 }
  0x23   : > { %s2492_s23 = scalar_lea.hbm %s2668_s11, 768  ;;  %s2497_s25 = scalar_lea.hbm %s4263_s2, 1536 }
  0x24   : > { %p2493_p11 = scmp.ne.s32.totalorder %s2668_s11, %s2492_s23  ;;  %p2498_p2 = scmp.lt.s32.totalorder %s2668_s11, %s4263_s2 }
  0x25   : > { %p2499_p3 = scmp.lt.s32.totalorder %s2497_s25, %s2492_s23 }
  0x26   : > { %p2495_p0 = pnand %p2494_p13, %p2493_p11 }
  0x27   : > { %p2500_p4 = por %p2499_p3, %p2498_p2 }
  0x28   : > { %p2496_p1 = pneg %p2495_p0 }
  0x2a   : > { %p2501_p6 = pnand %p2500_p4, %p2496_p1 }
  0x2c   : > { %2504 = shalt.err (!%p2501_p6)
}
  0x2d   : > { %s2505_s28 = scalar_lea.vmem %s2670_s18, 768  ;;  %s2566_s30 = smov [#allocation7]  }
  0x2e   : > { %p2506_p7 = scmp.ne.s32.totalorder %s2670_s18, %s2505_s28  ;;  %s2510_s4 = sshll.u32 %s2566_s30, 4  ;;  %s2511_s4 = int_to_ptr.vmem [resolvable:$false] %s2510_s4 }
  0x2f   : > { %s2512_s5 = scalar_lea.vmem %s2511_s4, 1536  ;;  %p2513_p0 = scmp.lt.s32.totalorder %s2670_s18, %s2511_s4 }
  0x30   : > { %p2508_p10 = pnand %p2506_p7, %p2494_p13  ;;  %p2514_p5 = scmp.lt.s32.totalorder %s2512_s5, %s2505_s28 }
  0x32   : > { %p2509_p11 = pneg %p2508_p10  ;;  %p2515_p8 = por %p2514_p5, %p2513_p0 }
  0x34   : > { %p2516_p9 = pnand %p2515_p8, %p2509_p11 }
  0x36   : > { %2519 = shalt.err (!%p2516_p9)
}
  0x37   : > { %s2567_s6 = smov 128   ;;  %s2568_s7 = smov 8  }
  0x38   : > { %2418 = dma.hbm_to_vmem [thread:$0]  (!%p2644_p12), %s2668_s11, 768, %s2670_s18, %s2672_s19, %s2567_s6, %s2567_s6, %s2568_s7  }
  0x39   : > { %p4278_p13 = scmp.ne.s32.totalorder %s4275_s22, 0 }
  0x3b   : > { %173 = sbr.rel (%p4278_p13) target bundleno = 633 (0x279), region = 32 }
  0x40   : > { %p4279_p1 = scmp.eq.s32.totalorder %s2610_s16, 0 }
  0x42   : > { %2537 = dma.done.wait (%p4279_p1), [#allocation4], 32   ;;  %p4280_p2 = pmov %p4279_p1 }
  0x43   : > { %p4281_p5 = pmov %p4279_p1 }
  0x44   : > { %2539 = vsyncadd (%p4280_p2), [#allocation4], 4294967264 }
  0x45   : > { %2541 = dma.done.wait (%p4281_p5), [#allocation5], 16   ;;  %p4282_p8 = pmov %p4279_p1 }
  0x46   : > { %s183_s8 = sand.u32 1, %s2554_s13   ;;  %p4283_p9 = scmp.ne.s32.totalorder %s4274_s21, 0 }
  0x47   : > { %2543 = vsyncadd (%p4282_p8), [#allocation5], 4294967280  ;;  %s2396_s26 = smul.u32 48, %s183_s8  ;;  %s184_s9 = scalar_lea.sflag [#allocation3], %s183_s8 }
  0x49   : > { %s2704_s10 = scalar_lea.vmem [#allocation7], %s2396_s26 }
  0x4a   : > { %2545 = dma.done.wait (%p4283_p9), %s184_s9, 768  }
  0x4b   : > { %2547 = vsyncadd (%p4283_p9), %s184_s9, 4294966528 }
  0x4c   : > { %192 = sfence }
  0x4d   : > { %s2215_s22 = sld [smem:[#allocation2 + $0x1c]]  ;;  %v2711_v0 = vld [vmem:[%s2704_s10] sm:$0xff]  ;;  %v2714_v1 = vld [vmem:[%s2704_s10 + $0x8] sm:$0x3f]  ;;  %s2569_s21 = smov 127   ;;  %vm2086_vm0 = vcmask 111616  }
  0x4e   : > { %s2214_s11 = sld [smem:[#allocation2 + $0x1]]  ;;  %s2570_s29 = smov 126   ;;  %v2763_v38 = vld [vmem:[%s2704_s10 + $0x9] sm:$0x3f]  ;;  %v2766_v40 = vld [vmem:[%s2704_s10 + $0x1] sm:$0xff]  ;;  %vm2084_vm1 = vcmask 113664  }
  0x4f   : > { %s2216_s12 = sld [smem:[#allocation2 + $0x37]]  ;;  %p211_p12 = scmp.lt.s32.totalorder %s2610_s16, 1 }
  0x50   : > { %s2217_s18 = sld [smem:[#allocation2 + $0x52]] }
  0x51   : > { %s2218_s19 = sld [smem:[#allocation2 + $0x6d]]  ;;  %s4407_s16 = smov (!%p211_p12, %s2610_s16), 1 }
  0x52   : > { %s2219_s23 = sld [smem:[#allocation2 + $0x88]] }
  0x53   : > { %v281_v2 = vstv %s2215_s22  ;;  %s2220_s15 = sld [smem:[#allocation2 + $0x2]] }
  0x54   : > { %v282_v3 = vmul.f32 %v281_v2, %v2711_v0  ;;  %v267_v4 = vstv %s2214_s11  ;;  %v283_v6 = vmul.f32 %v281_v2, %v2714_v1  ;;  %s2221_s24 = sld [smem:[#allocation2 + $0x1d]] }
  0x55   : > { %v268_v5 = vmul.f32 %v267_v4, %v2711_v0  ;;  %v269_v7 = vmul.f32 %v267_v4, %v2714_v1  ;;  %v295_v8 = vstv %s2216_s12  ;;  %s2222_s25 = sld [smem:[#allocation2 + $0x38]] }
  0x56   : > { %286 = vrot.lane.b32.xlu1 %v282_v3, %s2569_s21  ;;  %v297_v9 = vmul.f32 %v295_v8, %v2714_v1  ;;  %v296_v10 = vmul.f32 %v295_v8, %v2711_v0  ;;  %v309_v11 = vstv %s2217_s18  ;;  %s2223_s27 = sld [smem:[#allocation2 + $0x53]] }
  0x57   : > { %272 = vrot.lane.b32.xlu0 %v268_v5, %s2569_s21  ;;  %v311_v12 = vmul.f32 %v309_v11, %v2714_v1  ;;  %v310_v13 = vmul.f32 %v309_v11, %v2711_v0  ;;  %v323_v14 = vstv %s2218_s19  ;;  %s2224_s28 = sld [smem:[#allocation2 + $0x6e]] }
  0x58   : > { %v325_v15 = vmul.f32 %v323_v14, %v2714_v1  ;;  %v324_v16 = vmul.f32 %v323_v14, %v2711_v0  ;;  %v337_v17 = vstv %s2219_s23  ;;  %s2225_s30 = sld [smem:[#allocation2 + $0x89]]  ;;  %v2817_v14 = vld [vmem:[%s2704_s10 + $0xa] sm:$0x3f] }
  0x59   : > { %v339_v18 = vmul.f32 %v337_v17, %v2714_v1  ;;  %v338_v19 = vmul.f32 %v337_v17, %v2711_v0  ;;  %v351_v20 = vstv %s2220_s15  ;;  %s2232_s4 = sld [smem:[#allocation2 + $0x4]] }
  0x5a   : > { %288 = vrot.lane.b32.xlu1 %v283_v6, %s2569_s21  ;;  %v353_v21 = vmul.f32 %v351_v20, %v2714_v1  ;;  %v352_v22 = vmul.f32 %v351_v20, %v2711_v0  ;;  %v365_v23 = vstv %s2221_s24  ;;  %s2233_s5 = sld [smem:[#allocation2 + $0x1f]] }
  0x5b   : > { %274 = vrot.lane.b32.xlu0 %v269_v7, %s2569_s21  ;;  %v367_v24 = vmul.f32 %v365_v23, %v2714_v1  ;;  %v366_v25 = vmul.f32 %v365_v23, %v2711_v0  ;;  %v379_v26 = vstv %s2222_s25  ;;  %s2234_s6 = sld [smem:[#allocation2 + $0x3a]] }
  0x5c   : > { %v381_v27 = vmul.f32 %v379_v26, %v2714_v1  ;;  %v380_v28 = vmul.f32 %v379_v26, %v2711_v0  ;;  %v393_v29 = vstv %s2223_s27  ;;  %s2235_s7 = sld [smem:[#allocation2 + $0x55]] }
  0x5d   : > { %v395_v30 = vmul.f32 %v393_v29, %v2714_v1  ;;  %v394_v31 = vmul.f32 %v393_v29, %v2711_v0  ;;  %v407_v32 = vstv %s2224_s28  ;;  %s2236_s8 = sld [smem:[#allocation2 + $0x70]] }
  0x5e   : > { %302 = vrot.lane.b32.xlu1 %v297_v9, %s2569_s21  ;;  %v409_v33 = vmul.f32 %v407_v32, %v2714_v1  ;;  %v408_v34 = vmul.f32 %v407_v32, %v2711_v0  ;;  %v421_v35 = vstv %s2225_s30  ;;  %s2237_s26 = sld [smem:[#allocation2 + $0x8b]] }
  0x5f   : > { %300 = vrot.lane.b32.xlu0 %v296_v10, %s2569_s21  ;;  %v423_v36 = vmul.f32 %v421_v35, %v2714_v1  ;;  %v422_v37 = vmul.f32 %v421_v35, %v2711_v0  ;;  %v473_v39 = vstv %s2232_s4  ;;  %s2238_s9 = sld [smem:[#allocation2 + $0x5]] }
  0x60   : > { %v475_v41 = vmul.f32 %v473_v39, %v2763_v38  ;;  %v474_v42 = vmul.f32 %v473_v39, %v2766_v40  ;;  %v487_v43 = vstv %s2233_s5  ;;  %s2239_s22 = sld [smem:[#allocation2 + $0x20]] }
  0x61   : > { %v489_v44 = vmul.f32 %v487_v43, %v2763_v38  ;;  %v488_v45 = vmul.f32 %v487_v43, %v2766_v40  ;;  %v501_v46 = vstv %s2234_s6  ;;  %s2240_s11 = sld [smem:[#allocation2 + $0x3b]] }
  0x62   : > { %316 = vrot.lane.b32.xlu1 %v311_v12, %s2569_s21  ;;  %v503_v47 = vmul.f32 %v501_v46, %v2763_v38  ;;  %v502_v48 = vmul.f32 %v501_v46, %v2766_v40  ;;  %v515_v49 = vstv %s2235_s7  ;;  %s2241_s12 = sld [smem:[#allocation2 + $0x56]] }
  0x63   : > { %314 = vrot.lane.b32.xlu0 %v310_v13, %s2569_s21  ;;  %v517_v50 = vmul.f32 %v515_v49, %v2763_v38  ;;  %v516_v51 = vmul.f32 %v515_v49, %v2766_v40  ;;  %v529_v52 = vstv %s2236_s8  ;;  %s2242_s18 = sld [smem:[#allocation2 + $0x71]] }
  0x64   : > { %v531_v53 = vmul.f32 %v529_v52, %v2763_v38  ;;  %v530_v54 = vmul.f32 %v529_v52, %v2766_v40  ;;  %v543_v55 = vstv %s2237_s26  ;;  %s2243_s19 = sld [smem:[#allocation2 + $0x8c]] }
  0x65   : > { %v545_v56 = vmul.f32 %v543_v55, %v2763_v38  ;;  %v544_v57 = vmul.f32 %v543_v55, %v2766_v40  ;;  %v557_v58 = vstv %s2238_s9  ;;  %s2250_s23 = sld [smem:[#allocation2 + $0x7]] }
  0x66   : > { %330 = vrot.lane.b32.xlu1 %v325_v15, %s2569_s21  ;;  %v559_v59 = vmul.f32 %v557_v58, %v2763_v38  ;;  %v558_v60 = vmul.f32 %v557_v58, %v2766_v40  ;;  %v571_v61 = vstv %s2239_s22  ;;  %s2251_s15 = sld [smem:[#allocation2 + $0x22]] }
  0x67   : > { %328 = vrot.lane.b32.xlu0 %v324_v16, %s2569_s21  ;;  %v573_v62 = vmul.f32 %v571_v61, %v2763_v38  ;;  %v572_v63 = vmul.f32 %v571_v61, %v2766_v40  ;;  %v585_v2 = vstv %s2240_s11  ;;  %s2252_s24 = sld [smem:[#allocation2 + $0x3d]]  ;;  %v2820_v16 = vld [vmem:[%s2704_s10 + $0x2] sm:$0xff] }
  0x68   : > { %v587_v3 = vmul.f32 %v585_v2, %v2763_v38  ;;  %v586_v4 = vmul.f32 %v585_v2, %v2766_v40  ;;  %v599_v5 = vstv %s2241_s12  ;;  %s2253_s25 = sld [smem:[#allocation2 + $0x58]] }
  0x69   : > { %v601_v6 = vmul.f32 %v599_v5, %v2763_v38  ;;  %v600_v7 = vmul.f32 %v599_v5, %v2766_v40  ;;  %v613_v8 = vstv %s2242_s18  ;;  %s2254_s27 = sld [smem:[#allocation2 + $0x73]] }
  0x6a   : > { %344 = vrot.lane.b32.xlu1 %v339_v18, %s2569_s21  ;;  %v615_v9 = vmul.f32 %v613_v8, %v2763_v38  ;;  %v614_v10 = vmul.f32 %v613_v8, %v2766_v40  ;;  %v627_v11 = vstv %s2243_s19  ;;  %s2255_s28 = sld [smem:[#allocation2 + $0x8e]] }
  0x6b   : > { %342 = vrot.lane.b32.xlu0 %v338_v19, %s2569_s21  ;;  %v629_v12 = vmul.f32 %v627_v11, %v2763_v38  ;;  %v628_v13 = vmul.f32 %v627_v11, %v2766_v40  ;;  %v679_v15 = vstv %s2250_s23  ;;  %s2256_s30 = sld [smem:[#allocation2 + $0x8]] }
  0x6c   : > { %v681_v17 = vmul.f32 %v679_v15, %v2817_v14  ;;  %v680_v18 = vmul.f32 %v679_v15, %v2820_v16  ;;  %v693_v19 = vstv %s2251_s15  ;;  %s2257_s4 = sld [smem:[#allocation2 + $0x23]] }
  0x6d   : > { %v695_v20 = vmul.f32 %v693_v19, %v2817_v14  ;;  %s2258_s5 = sld [smem:[#allocation2 + $0x3e]] }
  0x6e   : > { %358 = vrot.lane.b32.xlu1 %v353_v21, %s2570_s29  ;;  %v694_v21 = vmul.f32 %v693_v19, %v2820_v16  ;;  %s2850_s6 = sld [smem:[#allocation2 + $0x1b]] }
  0x6f   : > { %356 = vrot.lane.b32.xlu0 %v352_v22, %s2570_s29  ;;  %v707_v22 = vstv %s2252_s24  ;;  %s2856_s7 = sld [smem:[#allocation2 + $0x59]] }
  0x70   : > { %v709_v23 = vmul.f32 %v707_v22, %v2817_v14  ;;  %s2858_s8 = sld [smem:[#allocation6 + $0x1]] }
  0x71   : > { %s2862_s26 = sld [smem:[#allocation2]] }
  0x72   : > { %372 = vrot.lane.b32.xlu1 %v367_v24, %s2570_s29  ;;  %v708_v24 = vmul.f32 %v707_v22, %v2820_v16  ;;  %s2867_s9 = sld [smem:[#allocation2 + $0x36]] }
  0x73   : > { %370 = vrot.lane.b32.xlu0 %v366_v25, %s2570_s29  ;;  %v721_v25 = vstv %s2253_s25  ;;  %v791_v46 = vstv %s2258_s5  ;;  %s2872_s22 = sld [smem:[#allocation2 + $0x74]] }
  0x74   : > { %v723_v26 = vmul.f32 %v721_v25, %v2817_v14  ;;  %s2874_s11 = sld [smem:[#allocation6]]  ;;  %v793_v49 = vmul.f32 %v791_v46, %v2817_v14  ;;  %v237_v55 = vstv %s2850_s6 }
  0x75   : > { %s2878_s12 = sld [smem:[#allocation6 + $0x2]] }
  0x76   : > { %386 = vrot.lane.b32.xlu1 %v381_v27, %s2570_s29  ;;  %v722_v27 = vmul.f32 %v721_v25, %v2820_v16  ;;  %s2883_s18 = sld [smem:[#allocation2 + $0x51]]  ;;  %v219_v5 = vstv %s2858_s8 }
  0x77   : > { %384 = vrot.lane.b32.xlu0 %v380_v28, %s2570_s29  ;;  %v735_v28 = vstv %s2254_s27  ;;  %s2889_s19 = sld [smem:[#allocation2 + $0x8f]] }
  0x78   : > { %v737_v29 = vmul.f32 %v735_v28, %v2817_v14  ;;  %s2893_s23 = sld [smem:[#allocation2 + $0x3]]  ;;  %v243_v58 = vstv %s2867_s9 }
  0x79   : > { %s2896_s15 = sld [smem:[#allocation6 + $0x3]]  ;;  %v244_v15 = vmul.f32 %v243_v58, %v2711_v0 }
  0x7a   : > { %400 = vrot.lane.b32.xlu1 %v395_v30, %s2570_s29  ;;  %v736_v30 = vmul.f32 %v735_v28, %v2820_v16  ;;  %s2902_s24 = sld [smem:[#allocation2 + $0x6c]]  ;;  %v217_v2 = vstv %s2874_s11 }
  0x7b   : > { %398 = vrot.lane.b32.xlu0 %v394_v31, %s2570_s29  ;;  %v749_v31 = vstv %s2255_s28  ;;  %s2910_s25 = sld [smem:[#allocation2 + $0xa]] }
  0x7c   : > { %v751_v32 = vmul.f32 %v749_v31, %v2817_v14  ;;  %s2915_s27 = sld [smem:[#allocation2 + $0x1e]] }
  0x7d   : > { %s2925_s28 = sld [smem:[#allocation6 + $0x4]] }
  0x7e   : > { %414 = vrot.lane.b32.xlu1 %v409_v33, %s2570_s29  ;;  %v750_v33 = vmul.f32 %v749_v31, %v2820_v16  ;;  %s2942_s5 = sld [smem:[#allocation2 + $0x87]]  ;;  %v2960_v31 = vld [vmem:[%s2704_s10 + $0x10] sm:$0xff] }
  0x7f   : > { %412 = vrot.lane.b32.xlu0 %v408_v34, %s2570_s29  ;;  %v763_v34 = vstv %s2256_s30  ;;  %s2933_s30 = sld [smem:[#allocation2 + $0x25]] }
  0x80   : > { %v764_v39 = vmul.f32 %v763_v34, %v2820_v16  ;;  %v255_v25 = vstv %s2902_s24  ;;  %s2950_s6 = sld [smem:[#allocation2 + $0x40]] }
  0x81   : > { %s2970_s8 = sld [smem:[#allocation6 + $0x5]] }
  0x82   : > { %428 = vrot.lane.b32.xlu1 %v423_v36, %s2570_s29  ;;  %s2989_s9 = sld [smem:[#allocation2 + $0x6f]] }
  0x83   : > { %426 = vrot.lane.b32.xlu0 %v422_v37, %s2570_s29  ;;  %v765_v37 = vmul.f32 %v763_v34, %v2817_v14  ;;  %s3009_s11 = sld [smem:[#allocation2 + $0x8a]] }
  0x84   : > { %s2280_s24 = sld [smem:[#allocation2 + $0x77]] }
  0x86   : > { %480 = vrot.lane.b32.xlu1 %v475_v41, %s2569_s21  ;;  %v777_v41 = vstv %s2257_s4  ;;  %s2939_s4 = sld [smem:[#allocation2 + $0x39]] }
  0x87   : > { %478 = vrot.lane.b32.xlu0 %v474_v42, %s2569_s21 }
  0x8a   : > { %494 = vrot.lane.b32.xlu1 %v489_v44, %s2569_s21  ;;  %v779_v44 = vmul.f32 %v777_v41, %v2817_v14 }
  0x8b   : > { %492 = vrot.lane.b32.xlu0 %v488_v45, %s2569_s21  ;;  %v778_v45 = vmul.f32 %v777_v41, %v2820_v16  ;;  %v443_v41 = vstv %s2915_s27  ;;  %s3091_s27 = sld [smem:[#allocation2 + $0x6]] }
  0x8e   : > { %508 = vrot.lane.b32.xlu1 %v503_v47, %s2569_s21 }
  0x8f   : > { %506 = vrot.lane.b32.xlu0 %v502_v48, %s2569_s21 }
  0x92   : > { %522 = vrot.lane.b32.xlu1 %v517_v50, %s2569_s21  ;;  %v792_v50 = vmul.f32 %v791_v46, %v2820_v16 }
  0x93   : > { %520 = vrot.lane.b32.xlu0 %v516_v51, %s2569_s21  ;;  %v805_v51 = vstv %s2856_s7  ;;  %s2966_s7 = sld [smem:[#allocation2 + $0x54]] }
  0x96   : > { %536 = vrot.lane.b32.xlu1 %v531_v53, %s2569_s21  ;;  %v231_v53 = vstv %s2862_s26  ;;  %s2979_s26 = sld [smem:[#allocation2 + $0x5b]] }
  0x97   : > { %534 = vrot.lane.b32.xlu0 %v530_v54, %s2569_s21  ;;  %v232_v61 = vmul.f32 %v231_v53, %v2711_v0 }
  0x9a   : > { %550 = vrot.lane.b32.xlu1 %v545_v56, %s2569_s21  ;;  %v807_v56 = vmul.f32 %v805_v51, %v2817_v14 }
  0x9b   : > { %548 = vrot.lane.b32.xlu0 %v544_v57, %s2569_s21  ;;  %v233_v57 = vmul.f32 %v231_v53, %v2714_v1 }
  0x9e   : > { %564 = vrot.lane.b32.xlu1 %v559_v59, %s2570_s29  ;;  %v806_v59 = vmul.f32 %v805_v51, %v2820_v16 }
  0x9f   : > { %562 = vrot.lane.b32.xlu0 %v558_v60, %s2570_s29  ;;  %v819_v60 = vstv %s2872_s22  ;;  %s2996_s22 = sld [smem:[#allocation2 + $0x76]] }
  0xa0   : > { %v821_v8 = vmul.f32 %v819_v60, %v2817_v14  ;;  %v820_v11 = vmul.f32 %v819_v60, %v2820_v16 }
  0xa2   : > { %578 = vrot.lane.b32.xlu1 %v573_v62, %s2570_s29 }
  0xa3   : > { %576 = vrot.lane.b32.xlu0 %v572_v63, %s2570_s29  ;;  %v238_v63 = vmul.f32 %v237_v55, %v2711_v0 }
  0xa5   : > { %v240_v19 = vadd.f32 %v238_v63, %v219_v5  ;;  %v444_v63 = vmul.f32 %v443_v41, %v2766_v40 }
  0xa6   : > { %592 = vrot.lane.b32.xlu1 %v587_v3, %s2570_s29  ;;  %v239_v3 = vmul.f32 %v237_v55, %v2714_v1 }
  0xa7   : > { %590 = vrot.lane.b32.xlu0 %v586_v4, %s2570_s29 }
  0xaa   : > { %606 = vrot.lane.b32.xlu1 %v601_v6, %s2570_s29  ;;  %v245_v6 = vmul.f32 %v243_v58, %v2714_v1  ;;  %v445_v58 = vmul.f32 %v443_v41, %v2763_v38 }
  0xab   : > { %604 = vrot.lane.b32.xlu0 %v600_v7, %s2570_s29  ;;  %v249_v7 = vstv %s2883_s18  ;;  %s3036_s18 = sld [smem:[#allocation2 + $0xb]] }
  0xae   : > { %620 = vrot.lane.b32.xlu1 %v615_v9, %s2570_s29  ;;  %v235_v9 = vadd.f32 %v233_v57, %v217_v2 }
  0xaf   : > { %618 = vrot.lane.b32.xlu0 %v614_v10, %s2570_s29  ;;  %v221_v10 = vstv %s2878_s12  ;;  %s3020_s12 = sld [smem:[#allocation2 + $0x91]] }
  0xb0   : > { %v246_v34 = vadd.f32 %v244_v15, %v221_v10 }
  0xb2   : > { %634 = vrot.lane.b32.xlu1 %v629_v12, %s2570_s29  ;;  %v833_v12 = vstv %s2889_s19  ;;  %s3052_s19 = sld [smem:[#allocation2 + $0x26]] }
  0xb3   : > { %632 = vrot.lane.b32.xlu0 %v628_v13, %s2570_s29  ;;  %v234_v13 = vadd.f32 %v232_v61, %v217_v2  ;;  %v834_v28 = vmul.f32 %v833_v12, %v2820_v16  ;;  %v449_v2 = vstv %s2939_s4  ;;  %s3111_s4 = sld [smem:[#allocation2 + $0x28]] }
  0xb4   : > { %v451_v15 = vmul.f32 %v449_v2, %v2763_v38 }
  0xb6   : > { %686 = vrot.lane.b32.xlu1 %v681_v17, %s2569_s21 }
  0xb7   : > { %684 = vrot.lane.b32.xlu0 %v680_v18, %s2569_s21  ;;  %v437_v18 = vstv %s2893_s23  ;;  %s2278_s23 = sld [smem:[#allocation2 + $0x41]] }
  0xba   : > { %700 = vrot.lane.b32.xlu1 %v695_v20, %s2569_s21  ;;  %v241_v20 = vadd.f32 %v239_v3, %v219_v5  ;;  %v256_v5 = vmul.f32 %v255_v25, %v2711_v0 }
  0xbb   : > { %698 = vrot.lane.b32.xlu0 %v694_v21, %s2569_s21  ;;  %v251_v21 = vmul.f32 %v249_v7, %v2714_v1 }
  0xbe   : > { %714 = vrot.lane.b32.xlu1 %v709_v23, %s2569_s21  ;;  %v247_v23 = vadd.f32 %v245_v6, %v221_v10  ;;  %v914_v10 = vstv %s2950_s6  ;;  %s3132_s6 = sld [smem:[#allocation2 + $0x43]] }
  0xbf   : > { %712 = vrot.lane.b32.xlu0 %v708_v24, %s2569_s21  ;;  %v223_v24 = vstv %s2896_s15  ;;  %s2279_s15 = sld [smem:[#allocation2 + $0x5c]] }
  0xc2   : > { %728 = vrot.lane.b32.xlu1 %v723_v26, %s2569_s21  ;;  %v835_v26 = vmul.f32 %v833_v12, %v2817_v14 }
  0xc3   : > { %726 = vrot.lane.b32.xlu0 %v722_v27, %s2569_s21 }
  0xc6   : > { %742 = vrot.lane.b32.xlu1 %v737_v29, %s2569_s21  ;;  %v2956_v29 = vld [vmem:[%s2704_s10 + $0x18] sm:$0x3f] }
  0xc7   : > { %740 = vrot.lane.b32.xlu0 %v736_v30, %s2569_s21  ;;  %v886_v30 = vstv %s2910_s25  ;;  %s2281_s25 = sld [smem:[#allocation2 + $0x92]] }
  0xc8   : > { %v2846_v35 = vpop.permute.xlu1 %286  ;;  %v888_v51 = vmul.f32 %v2956_v29, %v886_v30  ;;  %v887_v53 = vmul.f32 %v2960_v31, %v886_v30 }
  0xc9   : > { %v2848_v36 = vpop.permute.xlu0 %272 }
  0xca   : > { %756 = vrot.lane.b32.xlu1 %v751_v32, %s2569_s21  ;;  %v439_v32 = vmul.f32 %v437_v18, %v2763_v38 }
  0xcb   : > { %754 = vrot.lane.b32.xlu0 %v750_v33, %s2569_s21  ;;  %v278_v33 = vadd.f32 %v2848_v36, %v234_v13 }
  0xcc   : > { %v2860_v42 = vpop.permute.xlu1 %288 }
  0xcd   : > { %v2864_v43 = vpop.permute.xlu0 %274  ;;  %v293_v55 = vadd.f32 %v2860_v42, %v241_v20 }
  0xce   : > { %770 = vrot.lane.b32.xlu1 %v765_v37, %s2570_s29  ;;  %v279_v27 = vadd.f32 %v2864_v43, %v235_v9  ;;  %v253_v43 = vadd.f32 %v251_v21, %v223_v24  ;;  %v450_v21 = vmul.f32 %v449_v2, %v2766_v40  ;;  %v467_v2 = vstv %s3009_s11  ;;  %s3186_s11 = sld [smem:[#allocation2 + $0x94]] }
  0xcf   : > { %768 = vrot.lane.b32.xlu0 %v764_v39, %s2570_s29  ;;  %v438_v39 = vmul.f32 %v437_v18, %v2766_v40 }
  0xd0   : > { %v2876_v47 = vpop.permute.xlu1 %302 }
  0xd1   : > { %v2880_v48 = vpop.permute.xlu0 %300 }
  0xd2   : > { %784 = vrot.lane.b32.xlu1 %v779_v44, %s2570_s29  ;;  %v250_v44 = vmul.f32 %v249_v7, %v2711_v0  ;;  %v306_v18 = vadd.f32 %v2880_v48, %v246_v34  ;;  %v916_v48 = vmul.f32 %v2956_v29, %v914_v10  ;;  %v928_v34 = vstv %s2979_s26  ;;  %s3157_s26 = sld [smem:[#allocation2 + $0x72]] }
  0xd3   : > { %782 = vrot.lane.b32.xlu0 %v778_v45, %s2570_s29  ;;  %v257_v45 = vmul.f32 %v255_v25, %v2714_v1  ;;  %v227_v25 = vstv %s2970_s8  ;;  %s3146_s8 = sld [smem:[#allocation2 + $0x5e]] }
  0xd4   : > { %v2891_v52 = vpop.permute.xlu1 %316  ;;  %v252_v42 = vadd.f32 %v250_v44, %v223_v24  ;;  %v455_v24 = vstv %s2966_s7  ;;  %s3138_s7 = sld [smem:[#allocation2 + $0x57]] }
  0xd5   : > { %v2898_v54 = vpop.permute.xlu0 %314  ;;  %v456_v44 = vmul.f32 %v455_v24, %v2766_v40 }
  0xd6   : > { %798 = vrot.lane.b32.xlu1 %v793_v49, %s2570_s29 }
  0xd7   : > { %796 = vrot.lane.b32.xlu0 %v792_v50, %s2570_s29  ;;  %v225_v50 = vstv %s2925_s28  ;;  %s3099_s28 = sld [smem:[#allocation2 + $0xd]] }
  0xd8   : > { %v2913_v62 = vpop.permute.xlu1 %330  ;;  %v259_v3 = vadd.f32 %v257_v45, %v225_v50  ;;  %v461_v45 = vstv %s2989_s9  ;;  %s3166_s9 = sld [smem:[#allocation2 + $0x79]] }
  0xd9   : > { %v2920_v4 = vpop.permute.xlu0 %328 }
  0xda   : > { %812 = vrot.lane.b32.xlu1 %v807_v56, %s2570_s29  ;;  %v900_v56 = vstv %s2933_s30  ;;  %s3103_s30 = sld [smem:[#allocation2 + $0x21]] }
  0xdb   : > { %810 = vrot.lane.b32.xlu0 %v806_v59, %s2570_s29  ;;  %v292_v59 = vadd.f32 %v2846_v35, %v240_v19  ;;  %v902_v35 = vmul.f32 %v2956_v29, %v900_v56  ;;  %v901_v12 = vmul.f32 %v2960_v31, %v900_v56  ;;  %v463_v56 = vmul.f32 %v461_v45, %v2763_v38 }
  0xdc   : > { %v2936_v17 = vpop.permute.xlu1 %344 }
  0xdd   : > { %v2944_v22 = vpop.permute.xlu0 %342 }
  0xde   : > { %826 = vrot.lane.b32.xlu1 %v821_v8, %s2570_s29  ;;  %v261_v8 = vstv %s2942_s5  ;;  %s3116_s5 = sld [smem:[#allocation2 + $0x3c]] }
  0xdf   : > { %824 = vrot.lane.b32.xlu0 %v820_v11, %s2570_s29  ;;  %v307_v11 = vadd.f32 %v2876_v47, %v247_v23  ;;  %v258_v47 = vadd.f32 %v256_v5, %v225_v50  ;;  %v263_v23 = vmul.f32 %v261_v8, %v2714_v1 }
  0xe0   : > { %v359_v37 = vpop.permute.xlu1 %358 }
  0xe1   : > { %v363_v46 = vadd.f32 %v359_v37, %v279_v27  ;;  %v357_v49 = vpop.permute.xlu0 %356  ;;  %v457_v37 = vmul.f32 %v455_v24, %v2763_v38 }
  0xe2   : > { %v362_v36 = vadd.f32 %v357_v49, %v278_v33  ;;  %840 = vrot.lane.b32.xlu1 %v835_v26, %s2570_s29  ;;  %v321_v33 = vadd.f32 %v2891_v52, %v253_v43 }
  0xe3   : > { %838 = vrot.lane.b32.xlu0 %v834_v28, %s2570_s29  ;;  %v2981_v57 = vadd.f32 %v439_v32, %v363_v46  ;;  %v262_v28 = vmul.f32 %v261_v8, %v2711_v0  ;;  %v915_v32 = vmul.f32 %v2960_v31, %v914_v10  ;;  %v320_v0 = vadd.f32 %v2898_v54, %v252_v42 }
  0xe4   : > { %v373_v60 = vpop.permute.xlu1 %372  ;;  %v2985_v61 = vadd.f32 %v438_v39, %v362_v36  ;;  %v265_v46 = vadd.f32 %v263_v23, %v227_v25  ;;  %v930_v36 = vmul.f32 %v2956_v29, %v928_v34  ;;  %v929_v54 = vmul.f32 %v2960_v31, %v928_v34 }
  0xe5   : > { %v377_v6 = vadd.f32 %v373_v60, %v293_v55  ;;  %v371_v7 = vpop.permute.xlu0 %370  ;;  %v264_v49 = vadd.f32 %v262_v28, %v227_v25 }
  0xe6   : > { %v376_v9 = vadd.f32 %v371_v7, %v292_v59  ;;  %893 = vrot.lane.b32.xlu1 %v888_v51, %s2569_s21  ;;  %v942_v51 = vstv %s2996_s22  ;;  %v349_v7 = vadd.f32 %v2936_v17, %v265_v46  ;;  %s3177_s22 = sld [smem:[#allocation2 + $0x8d]] }
  0xe7   : > { %891 = vrot.lane.b32.xlu0 %v887_v53, %s2569_s21  ;;  %v3001_v13 = vadd.f32 %v445_v58, %v377_v6  ;;  %v335_v53 = vadd.f32 %v2913_v62, %v259_v3  ;;  %v334_v58 = vadd.f32 %v2920_v4, %v258_v47  ;;  %v944_v5 = vmul.f32 %v2956_v29, %v942_v51 }
  0xe8   : > { %v387_v19 = vpop.permute.xlu1 %386  ;;  %v3005_v20 = vadd.f32 %v444_v63, %v376_v9  ;;  %v462_v63 = vmul.f32 %v461_v45, %v2766_v40  ;;  %v943_v6 = vmul.f32 %v2960_v31, %v942_v51  ;;  %v956_v4 = vstv %s3020_s12  ;;  %s3204_s12 = sld [smem:[#allocation2 + $0xe]] }
  0xe9   : > { %v391_v26 = vadd.f32 %v387_v19, %v307_v11  ;;  %v385_v27 = vpop.permute.xlu0 %384  ;;  %v469_v9 = vmul.f32 %v467_v2, %v2763_v38  ;;  %v958_v19 = vmul.f32 %v2956_v29, %v956_v4  ;;  %v970_v38 = vstv %s3036_s18  ;;  %s3222_s18 = sld [smem:[#allocation2 + $0x29]] }
  0xea   : > { %v390_v30 = vadd.f32 %v385_v27, %v306_v18  ;;  %907 = vrot.lane.b32.xlu1 %v902_v35, %s2569_s21  ;;  %v348_v35 = vadd.f32 %v2944_v22, %v264_v49  ;;  %v972_v23 = vmul.f32 %v2956_v29, %v970_v38  ;;  %v971_v25 = vmul.f32 %v2960_v31, %v970_v38 }
  0xeb   : > { %905 = vrot.lane.b32.xlu0 %v901_v12, %s2569_s21  ;;  %v3022_v1 = vadd.f32 %v451_v15, %v391_v26  ;;  %v468_v12 = vmul.f32 %v467_v2, %v2766_v40  ;;  %v984_v26 = vstv %s3052_s19  ;;  %s2298_s19 = sld [smem:[#allocation2 + $0x44]] }
  0xec   : > { %v401_v39 = vpop.permute.xlu1 %400  ;;  %v3026_v41 = vadd.f32 %v450_v21, %v390_v30  ;;  %v957_v21 = vmul.f32 %v2960_v31, %v956_v4  ;;  %v986_v30 = vmul.f32 %v2956_v29, %v984_v26 }
  0xed   : > { %v405_v52 = vadd.f32 %v401_v39, %v321_v33  ;;  %v399_v43 = vpop.permute.xlu0 %398  ;;  %v1012_v39 = vstv %s2279_s15  ;;  %s2300_s15 = sld [smem:[#allocation2 + $0x7a]] }
  0xee   : > { %v404_v50 = vadd.f32 %v399_v43, %v320_v0  ;;  %921 = vrot.lane.b32.xlu1 %v916_v48, %s2569_s21  ;;  %v985_v48 = vmul.f32 %v2960_v31, %v984_v26  ;;  %v1014_v46 = vmul.f32 %v2956_v29, %v1012_v39  ;;  %v1026_v43 = vstv %s2280_s24  ;;  %s2301_s24 = sld [smem:[#allocation2 + $0x95]] }
  0xef   : > { %919 = vrot.lane.b32.xlu0 %v915_v32, %s2569_s21  ;;  %v3038_v55 = vadd.f32 %v457_v37, %v405_v52  ;;  %v998_v32 = vstv %s2278_s23  ;;  %v1013_v52 = vmul.f32 %v2960_v31, %v1012_v39  ;;  %v1027_v51 = vmul.f32 %v2960_v31, %v1026_v43  ;;  %s2299_s23 = sld [smem:[#allocation2 + $0x5f]] }
  0xf0   : > { %v415_v59 = vpop.permute.xlu1 %414  ;;  %v3042_v60 = vadd.f32 %v456_v44, %v404_v50  ;;  %v1000_v37 = vmul.f32 %v2956_v29, %v998_v32  ;;  %v999_v0 = vmul.f32 %v2960_v31, %v998_v32  ;;  %v661_v39 = vstv %s3138_s7  ;;  %s2317_s7 = sld [smem:[#allocation2 + $0x2c]] }
  0xf1   : > { %v419_v62 = vadd.f32 %v415_v59, %v335_v53  ;;  %v413_v42 = vpop.permute.xlu0 %412  ;;  %v1040_v53 = vstv %s2281_s25  ;;  %s2310_s25 = sld [smem:[#allocation2 + $0x10]] }
  0xf2   : > { %v418_v3 = vadd.f32 %v413_v42, %v334_v58  ;;  %935 = vrot.lane.b32.xlu1 %v930_v36, %s2569_s21  ;;  %v1028_v36 = vmul.f32 %v2956_v29, %v1026_v43  ;;  %v1042_v59 = vmul.f32 %v2956_v29, %v1040_v53  ;;  %v1041_v2 = vmul.f32 %v2960_v31, %v1040_v53 }
  0xf3   : > { %933 = vrot.lane.b32.xlu0 %v929_v54, %s2569_s21  ;;  %v3054_v8 = vadd.f32 %v463_v56, %v419_v62  ;;  %v643_v56 = vstv %s3091_s27  ;;  %v3126_v62 = vld [vmem:[%s2704_s10 + $0x19] sm:$0x3f]  ;;  %v1092_v42 = vstv %s3099_s28  ;;  %s2311_s27 = sld [smem:[#allocation2 + $0x2b]] }
  0xf4   : > { %v429_v10 = vpop.permute.xlu1 %428  ;;  %v3058_v11 = vadd.f32 %v462_v63, %v418_v3  ;;  %v3130_v3 = vld [vmem:[%s2704_s10 + $0x11] sm:$0xff]  ;;  %v644_v29 = vmul.f32 %v643_v56, %v2820_v16  ;;  %s2312_s28 = sld [smem:[#allocation2 + $0x46]] }
  0xf5   : > { %v433_v15 = vadd.f32 %v429_v10, %v349_v7  ;;  %v427_v18 = vpop.permute.xlu0 %426  ;;  %v1093_v10 = vmul.f32 %v3130_v3, %v1092_v42 }
  0xf6   : > { %v432_v17 = vadd.f32 %v427_v18, %v348_v35  ;;  %949 = vrot.lane.b32.xlu1 %v944_v5, %s2569_s21  ;;  %v645_v5 = vmul.f32 %v643_v56, %v2817_v14  ;;  %v1094_v35 = vmul.f32 %v3126_v62, %v1092_v42 }
  0xf7   : > { %947 = vrot.lane.b32.xlu0 %v943_v6, %s2569_s21  ;;  %v3066_v22 = vadd.f32 %v469_v9, %v433_v15 }
  0xf8   : > { %v481_v24 = vpop.permute.xlu1 %480  ;;  %v3068_v47 = vadd.f32 %v468_v12, %v432_v17 }
  0xf9   : > { %v479_v40 = vpop.permute.xlu0 %478  ;;  %v485_v63 = vadd.f32 %v481_v24, %v2981_v57  ;;  %v649_v57 = vstv %s3103_s30  ;;  %v655_v24 = vstv %s3116_s5  ;;  %s2313_s30 = sld [smem:[#allocation2 + $0x61]] }
  0xfa   : > { %963 = vrot.lane.b32.xlu1 %v958_v19, %s2569_s21  ;;  %v484_v6 = vadd.f32 %v479_v40, %v2985_v61  ;;  %v1106_v61 = vstv %s3111_s4  ;;  %v651_v18 = vmul.f32 %v649_v57, %v2817_v14  ;;  %v650_v38 = vmul.f32 %v649_v57, %v2820_v16  ;;  %s2314_s4 = sld [smem:[#allocation2 + $0x7c]] }
  0xfb   : > { %961 = vrot.lane.b32.xlu0 %v957_v21, %s2569_s21  ;;  %v1107_v26 = vmul.f32 %v3130_v3, %v1106_v61  ;;  %s2315_s5 = sld [smem:[#allocation2 + $0x97]] }
  0xfc   : > { %v495_v27 = vpop.permute.xlu1 %494 }
  0xfd   : > { %v3075_v28 = vpop.permute.xlu0 %492  ;;  %v499_v12 = vadd.f32 %v495_v27, %v3001_v13  ;;  %v1120_v27 = vstv %s3132_s6  ;;  %s2316_s6 = sld [smem:[#allocation2 + $0x11]] }
  0xfe   : > { %977 = vrot.lane.b32.xlu1 %v972_v23, %s2570_s29  ;;  %v498_v17 = vadd.f32 %v3075_v28, %v3005_v20  ;;  %v1121_v43 = vmul.f32 %v3130_v3, %v1120_v27 }
  0xff   : > { %975 = vrot.lane.b32.xlu0 %v971_v25, %s2570_s29  ;;  %v1108_v25 = vmul.f32 %v3126_v62, %v1106_v61 }
 0x100   : > { %v3081_v33 = vpop.permute.xlu1 %508 }
 0x101   : > { %v3083_v34 = vpop.permute.xlu0 %506  ;;  %v513_v20 = vadd.f32 %v3081_v33, %v3022_v1 }
 0x102   : > { %991 = vrot.lane.b32.xlu1 %v986_v30, %s2570_s29  ;;  %v657_v30 = vmul.f32 %v655_v24, %v2817_v14 }
 0x103   : > { %989 = vrot.lane.b32.xlu0 %v985_v48, %s2570_s29  ;;  %v512_v48 = vadd.f32 %v3083_v34, %v3026_v41  ;;  %v1134_v34 = vstv %s3146_s8  ;;  %s2318_s8 = sld [smem:[#allocation2 + $0x47]] }
 0x104   : > { %v3089_v44 = vpop.permute.xlu1 %522 }
 0x105   : > { %v3093_v45 = vpop.permute.xlu0 %520  ;;  %v527_v41 = vadd.f32 %v3089_v44, %v3038_v55 }
 0x106   : > { %1005 = vrot.lane.b32.xlu1 %v1000_v37, %s2570_s29  ;;  %v526_v53 = vadd.f32 %v3093_v45, %v3042_v60  ;;  %v1148_v60 = vstv %s3166_s9  ;;  %s2320_s9 = sld [smem:[#allocation2 + $0x7d]] }
 0x107   : > { %1003 = vrot.lane.b32.xlu0 %v999_v0, %s2570_s29  ;;  %v656_v0 = vmul.f32 %v655_v24, %v2820_v16  ;;  %v1149_v61 = vmul.f32 %v3130_v3, %v1148_v60 }
 0x108   : > { %v3101_v49 = vpop.permute.xlu1 %536 }
 0x109   : > { %v3105_v50 = vpop.permute.xlu0 %534 }
 0x10a   : > { %1019 = vrot.lane.b32.xlu1 %v1014_v46, %s2570_s29  ;;  %v540_v57 = vadd.f32 %v3105_v50, %v3058_v11  ;;  %v1162_v11 = vstv %s3186_s11  ;;  %s2330_s11 = sld [smem:[#allocation2 + $0x13]] }
 0x10b   : > { %1017 = vrot.lane.b32.xlu0 %v1013_v52, %s2570_s29  ;;  %v1122_v52 = vmul.f32 %v3126_v62, %v1120_v27 }
 0x10c   : > { %v3113_v54 = vpop.permute.xlu1 %550 }
 0x10d   : > { %v3118_v58 = vpop.permute.xlu0 %548 }
 0x10e   : > { %1033 = vrot.lane.b32.xlu1 %v1028_v36, %s2570_s29 }
 0x10f   : > { %1031 = vrot.lane.b32.xlu0 %v1027_v51, %s2570_s29  ;;  %v663_v51 = vmul.f32 %v661_v39, %v2817_v14 }
 0x110   : > { %v565_v7 = vpop.permute.xlu1 %564 }
 0x111   : > { %v569_v4 = vadd.f32 %v565_v7, %v485_v63  ;;  %v563_v31 = vpop.permute.xlu0 %562  ;;  %v662_v63 = vmul.f32 %v661_v39, %v2820_v16  ;;  %v541_v7 = vadd.f32 %v3101_v49, %v3054_v8 }
 0x112   : > { %v568_v9 = vadd.f32 %v563_v31, %v484_v6  ;;  %1047 = vrot.lane.b32.xlu1 %v1042_v59, %s2570_s29  ;;  %v1135_v6 = vmul.f32 %v3130_v3, %v1134_v34 }
 0x113   : > { %1045 = vrot.lane.b32.xlu0 %v1041_v2, %s2570_s29  ;;  %v3148_v15 = vadd.f32 %v645_v5, %v569_v4  ;;  %v667_v2 = vstv %s3157_s26  ;;  %v1136_v5 = vmul.f32 %v3126_v62, %v1134_v34  ;;  %s2319_s26 = sld [smem:[#allocation2 + $0x62]] }
 0x114   : > { %v579_v19 = vpop.permute.xlu1 %578  ;;  %v3153_v21 = vadd.f32 %v644_v29, %v568_v9  ;;  %v669_v29 = vmul.f32 %v667_v2, %v2817_v14  ;;  %v668_v9 = vmul.f32 %v667_v2, %v2820_v16 }
 0x115   : > { %v583_v13 = vadd.f32 %v579_v19, %v499_v12  ;;  %v577_v40 = vpop.permute.xlu0 %576  ;;  %v1150_v12 = vmul.f32 %v3126_v62, %v1148_v60  ;;  %v554_v19 = vadd.f32 %v3118_v58, %v3068_v47 }
 0x116   : > { %v582_v23 = vadd.f32 %v577_v40, %v498_v17  ;;  %1099 = vrot.lane.b32.xlu1 %v1094_v35, %s2569_s21  ;;  %v673_v35 = vstv %s3177_s22  ;;  %s2321_s22 = sld [smem:[#allocation2 + $0x98]] }
 0x117   : > { %1097 = vrot.lane.b32.xlu0 %v1093_v10, %s2569_s21  ;;  %v3168_v28 = vadd.f32 %v651_v18, %v583_v13  ;;  %v555_v18 = vadd.f32 %v3113_v54, %v3066_v22  ;;  %v675_v17 = vmul.f32 %v673_v35, %v2817_v14  ;;  %v674_v13 = vmul.f32 %v673_v35, %v2820_v16  ;;  %v3296_v35 = vld [vmem:[%s2704_s10 + $0x12] sm:$0xff] }
 0x118   : > { %v593_v32 = vpop.permute.xlu1 %592  ;;  %v3173_v37 = vadd.f32 %v650_v38, %v582_v23  ;;  %v1164_v23 = vmul.f32 %v3126_v62, %v1162_v11  ;;  %v1163_v14 = vmul.f32 %v3130_v3, %v1162_v11  ;;  %4286 = vst [vmem:[#allocation13_spill] sm:$0xff] %v3296_v35 }
 0x119   : > { %v597_v1 = vadd.f32 %v593_v32, %v513_v20  ;;  %v591_v33 = vpop.permute.xlu0 %590 }
 0x11a   : > { %v596_v46 = vadd.f32 %v591_v33, %v512_v48  ;;  %1113 = vrot.lane.b32.xlu1 %v1108_v25, %s2569_s21  ;;  %v1176_v25 = vstv %s3204_s12  ;;  %s2331_s12 = sld [smem:[#allocation2 + $0x2e]] }
 0x11b   : > { %1111 = vrot.lane.b32.xlu0 %v1107_v26, %s2569_s21  ;;  %v3188_v36 = vadd.f32 %v657_v30, %v597_v1  ;;  %v1178_v20 = vmul.f32 %v3126_v62, %v1176_v25  ;;  %v1177_v27 = vmul.f32 %v3130_v3, %v1176_v25  ;;  %v1190_v30 = vstv %s3222_s18  ;;  %s2332_s18 = sld [smem:[#allocation2 + $0x49]] }
 0x11c   : > { %v607_v56 = vpop.permute.xlu1 %606  ;;  %v3193_v59 = vadd.f32 %v656_v0, %v596_v46  ;;  %v1192_v0 = vmul.f32 %v3126_v62, %v1190_v30  ;;  %v1191_v39 = vmul.f32 %v3130_v3, %v1190_v30  ;;  %v1204_v1 = vstv %s2298_s19  ;;  %s2333_s19 = sld [smem:[#allocation2 + $0x64]] }
 0x11d   : > { %v611_v55 = vadd.f32 %v607_v56, %v527_v41  ;;  %v605_v44 = vpop.permute.xlu0 %604  ;;  %v1218_v41 = vstv %s2299_s23  ;;  %s2334_s23 = sld [smem:[#allocation2 + $0x7f]] }
 0x11e   : > { %v610_v42 = vadd.f32 %v605_v44, %v526_v53  ;;  %1127 = vrot.lane.b32.xlu1 %v1122_v52, %s2569_s21  ;;  %v1206_v52 = vmul.f32 %v3126_v62, %v1204_v1  ;;  %v1220_v53 = vmul.f32 %v3126_v62, %v1218_v41  ;;  %v1219_v56 = vmul.f32 %v3130_v3, %v1218_v41 }
 0x11f   : > { %1125 = vrot.lane.b32.xlu0 %v1121_v43, %s2569_s21  ;;  %v3206_v45 = vadd.f32 %v663_v51, %v611_v55  ;;  %v1205_v43 = vmul.f32 %v3130_v3, %v1204_v1 }
 0x120   : > { %v621_v4 = vpop.permute.xlu1 %620  ;;  %v3211_v31 = vadd.f32 %v662_v63, %v610_v42  ;;  %v1232_v63 = vstv %s2300_s15  ;;  %s2335_s15 = sld [smem:[#allocation2 + $0x9a]] }
 0x121   : > { %v625_v8 = vadd.f32 %v621_v4, %v541_v7  ;;  %v619_v49 = vpop.permute.xlu0 %618  ;;  %v1234_v44 = vmul.f32 %v3126_v62, %v1232_v63  ;;  %v1233_v42 = vmul.f32 %v3130_v3, %v1232_v63  ;;  %v1298_v4 = vstv %s2310_s25  ;;  %s3434_s25 = sld [smem:[#allocation2 + $0x9]] }
 0x122   : > { %v624_v10 = vadd.f32 %v619_v49, %v540_v57  ;;  %1141 = vrot.lane.b32.xlu1 %v1136_v5, %s2569_s21  ;;  %v1246_v5 = vstv %s2301_s24  ;;  %v3291_v57 = vld [vmem:[%s2704_s10 + $0x1a] sm:$0x3f]  ;;  %v1382_v63 = vstv %s2316_s6  ;;  %s2336_s24 = sld [smem:[#allocation2 + $0x14]] }
 0x123   : > { %1139 = vrot.lane.b32.xlu0 %v1135_v6, %s2569_s21  ;;  %v3224_v50 = vadd.f32 %v669_v29, %v625_v8  ;;  %v1248_v60 = vmul.f32 %v3126_v62, %v1246_v5  ;;  %v1247_v29 = vmul.f32 %v3130_v3, %v1246_v5  ;;  %v1300_v49 = vmul.f32 %v3291_v57, %v1298_v4  ;;  %s3458_s6 = sld [smem:[#allocation2 + $0x75]] }
 0x124   : > { %v635_v38 = vpop.permute.xlu1 %634  ;;  %v3229_v24 = vadd.f32 %v668_v9, %v624_v10  ;;  %v1299_v10 = vmul.f32 %v3296_v35, %v1298_v4  ;;  %v1384_v5 = vmul.f32 %v3291_v57, %v1382_v63 }
 0x125   : > { %v639_v40 = vadd.f32 %v635_v38, %v555_v18  ;;  %v633_v22 = vpop.permute.xlu0 %632 }
 0x126   : > { %4284 = vst [vmem:[#allocation11_spill] sm:$0xff] %v3229_v24  ;;  %v638_v54 = vadd.f32 %v633_v22, %v554_v19  ;;  %1155 = vrot.lane.b32.xlu1 %v1150_v12, %s2569_s21  ;;  %v1312_v12 = vstv %s2311_s27  ;;  %v1326_v19 = vstv %s2312_s28  ;;  %s3440_s27 = sld [smem:[#allocation2 + $0x2f]] }
 0x127   : > { %1153 = vrot.lane.b32.xlu0 %v1149_v61, %s2569_s21  ;;  %v3237_v47 = vadd.f32 %v675_v17, %v639_v40  ;;  %v1314_v11 = vmul.f32 %v3291_v57, %v1312_v12  ;;  %v1313_v17 = vmul.f32 %v3296_v35, %v1312_v12  ;;  %v1328_v40 = vmul.f32 %v3291_v57, %v1326_v19  ;;  %s3442_s28 = sld [smem:[#allocation2 + $0x24]] }
 0x128   : > { %v3239_v58 = vpop.permute.xlu1 %686  ;;  %v3241_v26 = vadd.f32 %v674_v13, %v638_v54  ;;  %v1327_v22 = vmul.f32 %v3296_v35, %v1326_v19  ;;  %v1340_v54 = vstv %s2313_s30  ;;  %s3446_s30 = sld [smem:[#allocation2 + $0x3f]] }
 0x129   : > { %v3243_v16 = vpop.permute.xlu0 %684  ;;  %v1342_v25 = vmul.f32 %v3291_v57, %v1340_v54 }
 0x12a   : > { %1169 = vrot.lane.b32.xlu1 %v1164_v23, %s2569_s21 }
 0x12b   : > { %1167 = vrot.lane.b32.xlu0 %v1163_v14, %s2569_s21 }
 0x12c   : > { %v3250_v48 = vpop.permute.xlu1 %700 }
 0x12d   : > { %v3252_v32 = vpop.permute.xlu0 %698 }
 0x12e   : > { %1183 = vrot.lane.b32.xlu1 %v1178_v20, %s2570_s29  ;;  %v1341_v20 = vmul.f32 %v3296_v35, %v1340_v54  ;;  %v1424_v54 = vstv %s2319_s26  ;;  %s3473_s26 = sld [smem:[#allocation2 + $0x65]] }
 0x12f   : > { %1181 = vrot.lane.b32.xlu0 %v1177_v27, %s2570_s29  ;;  %v1354_v27 = vstv %s2314_s4  ;;  %s3450_s4 = sld [smem:[#allocation2 + $0x5a]] }
 0x130   : > { %v3258_v33 = vpop.permute.xlu1 %714  ;;  %v1355_v1 = vmul.f32 %v3296_v35, %v1354_v27 }
 0x131   : > { %v3260_v46 = vpop.permute.xlu0 %712 }
 0x132   : > { %1197 = vrot.lane.b32.xlu1 %v1192_v0, %s2570_s29 }
 0x133   : > { %1195 = vrot.lane.b32.xlu0 %v1191_v39, %s2570_s29  ;;  %v1356_v39 = vmul.f32 %v3291_v57, %v1354_v27  ;;  %v1426_v27 = vmul.f32 %v3291_v57, %v1424_v54 }
 0x134   : > { %v3266_v34 = vpop.permute.xlu1 %728 }
 0x135   : > { %v3268_v51 = vpop.permute.xlu0 %726 }
 0x136   : > { %1211 = vrot.lane.b32.xlu1 %v1206_v52, %s2570_s29  ;;  %v1368_v52 = vstv %s2315_s5  ;;  %s3456_s5 = sld [smem:[#allocation2 + $0x4a]] }
 0x137   : > { %1209 = vrot.lane.b32.xlu0 %v1205_v43, %s2570_s29 }
 0x138   : > { %v3274_v2 = vpop.permute.xlu1 %742 }
 0x139   : > { %v3276_v55 = vpop.permute.xlu0 %740 }
 0x13a   : > { %4285 = vst [vmem:[#allocation12_spill] sm:$0xff] %v3276_v55  ;;  %1225 = vrot.lane.b32.xlu1 %v1220_v53, %s2570_s29  ;;  %v1370_v53 = vmul.f32 %v3291_v57, %v1368_v52 }
 0x13b   : > { %1223 = vrot.lane.b32.xlu0 %v1219_v56, %s2570_s29  ;;  %v1369_v56 = vmul.f32 %v3296_v35, %v1368_v52 }
 0x13c   : > { %v3282_v6 = vpop.permute.xlu1 %756 }
 0x13d   : > { %v3284_v7 = vpop.permute.xlu0 %754 }
 0x13e   : > { %1239 = vrot.lane.b32.xlu1 %v1234_v44, %s2570_s29 }
 0x13f   : > { %1237 = vrot.lane.b32.xlu0 %v1233_v42, %s2570_s29 }
 0x140   : > { %v3293_v9 = vpop.permute.xlu1 %770 }
 0x141   : > { %v3298_v8 = vpop.permute.xlu0 %768 }
 0x142   : > { %1253 = vrot.lane.b32.xlu1 %v1248_v60, %s2570_s29  ;;  %v1383_v60 = vmul.f32 %v3296_v35, %v1382_v63 }
 0x143   : > { %1251 = vrot.lane.b32.xlu0 %v1247_v29, %s2570_s29  ;;  %v1396_v29 = vstv %s2317_s7  ;;  %s3462_s7 = sld [smem:[#allocation2 + $0x90]] }
 0x144   : > { %v3304_v61 = vpop.permute.xlu1 %784  ;;  %v1397_v12 = vmul.f32 %v3296_v35, %v1396_v29 }
 0x145   : > { %v3306_v18 = vpop.permute.xlu0 %782 }
 0x146   : > { %1305 = vrot.lane.b32.xlu1 %v1300_v49, %s2569_s21 }
 0x147   : > { %1303 = vrot.lane.b32.xlu0 %v1299_v10, %s2569_s21  ;;  %v1398_v10 = vmul.f32 %v3291_v57, %v1396_v29 }
 0x148   : > { %v3312_v38 = vpop.permute.xlu1 %798 }
 0x149   : > { %v3314_v13 = vpop.permute.xlu0 %796  ;;  %v880_v24 = vstv %s3462_s7  ;;  %s3647_s7 = sld [smem:[#allocation2 + $0x9d]] }
 0x14a   : > { %1319 = vrot.lane.b32.xlu1 %v1314_v11, %s2569_s21  ;;  %v1410_v11 = vstv %s2318_s8  ;;  %s3466_s8 = sld [smem:[#allocation2 + $0xc]] }
 0x14b   : > { %1317 = vrot.lane.b32.xlu0 %v1313_v17, %s2569_s21 }
 0x14c   : > { %v3320_v23 = vpop.permute.xlu1 %812 }
 0x14d   : > { %v3322_v14 = vpop.permute.xlu0 %810 }
 0x14e   : > { %1333 = vrot.lane.b32.xlu1 %v1328_v40, %s2569_s21  ;;  %v1412_v40 = vmul.f32 %v3291_v57, %v1410_v11 }
 0x14f   : > { %1331 = vrot.lane.b32.xlu0 %v1327_v22, %s2569_s21  ;;  %v1411_v22 = vmul.f32 %v3296_v35, %v1410_v11  ;;  %v3393_v11 = vld [vmem:[%s2704_s10 + $0x28] sm:$0x3f] }
 0x150   : > { %v3328_v30 = vpop.permute.xlu1 %826  ;;  %4298 = vst [vmem:[#allocation25_spill] sm:$0xff] %v3393_v11 }
 0x151   : > { %4287 = vst [vmem:[#allocation14_spill] sm:$0xff] %v3328_v30  ;;  %v3330_v0 = vpop.permute.xlu0 %824 }
 0x152   : > { %4288 = vst [vmem:[#allocation15_spill] sm:$0xff] %v3330_v0  ;;  %1347 = vrot.lane.b32.xlu1 %v1342_v25, %s2569_s21 }
 0x153   : > { %1345 = vrot.lane.b32.xlu0 %v1341_v20, %s2569_s21 }
 0x154   : > { %v3336_v43 = vpop.permute.xlu1 %840 }
 0x155   : > { %v3338_v41 = vpop.permute.xlu0 %838 }
 0x156   : > { %1361 = vrot.lane.b32.xlu1 %v1356_v39, %s2569_s21  ;;  %v1425_v39 = vmul.f32 %v3296_v35, %v1424_v54  ;;  %v3398_v54 = vld [vmem:[%s2704_s10 + $0x20] sm:$0xff] }
 0x157   : > { %1359 = vrot.lane.b32.xlu0 %v1355_v1, %s2569_s21  ;;  %v1438_v1 = vstv %s2320_s9  ;;  %4299 = vst [vmem:[#allocation26_spill] sm:$0xff] %v3398_v54  ;;  %s3475_s9 = sld [smem:[#allocation2 + $0x27]] }
 0x158   : > { %v3344_v44 = vpop.permute.xlu1 %893  ;;  %v1439_v63 = vmul.f32 %v3296_v35, %v1438_v1 }
 0x159   : > { %v3346_v42 = vpop.permute.xlu0 %891 }
 0x15a   : > { %1375 = vrot.lane.b32.xlu1 %v1370_v53, %s2569_s21 }
 0x15b   : > { %1373 = vrot.lane.b32.xlu0 %v1369_v56, %s2569_s21  ;;  %v1440_v56 = vmul.f32 %v3291_v57, %v1438_v1 }
 0x15c   : > { %v3352_v4 = vpop.permute.xlu1 %907 }
 0x15d   : > { %4289 = vst [vmem:[#allocation16_spill] sm:$0xff] %v3352_v4  ;;  %v3354_v49 = vpop.permute.xlu0 %905  ;;  %v1056_v4 = vstv %s3466_s8  ;;  %s3663_s8 = sld [smem:[#allocation2 + $0x17]] }
 0x15e   : > { %4290 = vst [vmem:[#allocation17_spill] sm:$0xff] %v3354_v49  ;;  %1389 = vrot.lane.b32.xlu1 %v1384_v5, %s2570_s29  ;;  %v1452_v5 = vstv %s2321_s22  ;;  %s3481_s22 = sld [smem:[#allocation2 + $0x42]] }
 0x15f   : > { %1387 = vrot.lane.b32.xlu0 %v1383_v60, %s2570_s29 }
 0x160   : > { %v3360_v17 = vpop.permute.xlu1 %921 }
 0x161   : > { %4291 = vst [vmem:[#allocation18_spill] sm:$0xff] %v3360_v17  ;;  %v3362_v19 = vpop.permute.xlu0 %919  ;;  %v1631_v17 = vstv %s3473_s26  ;;  %s3789_s26 = sld [smem:[#allocation2 + $0x32]] }
 0x162   : > { %4292 = vst [vmem:[#allocation19_spill] sm:$0xff] %v3362_v19  ;;  %1403 = vrot.lane.b32.xlu1 %v1398_v10, %s2570_s29  ;;  %v1454_v10 = vmul.f32 %v3291_v57, %v1452_v5 }
 0x163   : > { %1401 = vrot.lane.b32.xlu0 %v1397_v12, %s2570_s29  ;;  %v1453_v12 = vmul.f32 %v3296_v35, %v1452_v5 }
 0x164   : > { %v3368_v25 = vpop.permute.xlu1 %935 }
 0x165   : > { %4293 = vst [vmem:[#allocation20_spill] sm:$0xff] %v3368_v25  ;;  %v3370_v20 = vpop.permute.xlu0 %933  ;;  %v1547_v25 = vstv %s2333_s19  ;;  %s3500_s19 = sld [smem:[#allocation2 + $0x93]] }
 0x166   : > { %4294 = vst [vmem:[#allocation21_spill] sm:$0xff] %v3370_v20  ;;  %1417 = vrot.lane.b32.xlu1 %v1412_v40, %s2570_s29  ;;  %v1505_v40 = vstv %s2330_s11  ;;  %s3485_s11 = sld [smem:[#allocation2 + $0x5d]] }
 0x167   : > { %1415 = vrot.lane.b32.xlu0 %v1411_v22, %s2570_s29  ;;  %v1506_v1 = vmul.f32 %v3398_v54, %v1505_v40 }
 0x168   : > { %v3376_v52 = vpop.permute.xlu1 %949 }
 0x169   : > { %4295 = vst [vmem:[#allocation22_spill] sm:$0xff] %v3376_v52  ;;  %v3378_v53 = vpop.permute.xlu0 %947  ;;  %v1533_v52 = vstv %s2332_s18  ;;  %s3494_s18 = sld [smem:[#allocation2 + $0x78]] }
 0x16a   : > { %4296 = vst [vmem:[#allocation23_spill] sm:$0xff] %v3378_v53  ;;  %1431 = vrot.lane.b32.xlu1 %v1426_v27, %s2570_s29 }
 0x16b   : > { %1429 = vrot.lane.b32.xlu0 %v1425_v39, %s2570_s29  ;;  %v1507_v39 = vmul.f32 %v3393_v11, %v1505_v40  ;;  %v1535_v40 = vmul.f32 %v3393_v11, %v1533_v52 }
 0x16c   : > { %v3384_v60 = vpop.permute.xlu1 %963 }
 0x16d   : > { %v3386_v29 = vpop.permute.xlu0 %961 }
 0x16e   : > { %4297 = vst [vmem:[#allocation24_spill] sm:$0xff] %v3386_v29  ;;  %1445 = vrot.lane.b32.xlu1 %v1440_v56, %s2570_s29  ;;  %v1519_v56 = vstv %s2331_s12  ;;  %s3490_s12 = sld [smem:[#allocation2 + $0x80]]  ;;  %v1068_v29 = vstv %s3481_s22 }
 0x16f   : > { %1443 = vrot.lane.b32.xlu0 %v1439_v63, %s2570_s29  ;;  %v1521_v53 = vmul.f32 %v3393_v11, %v1519_v56  ;;  %s3821_s22 = sld [smem:[#allocation2 + $0x4d]] }
 0x170   : > { %v3395_v22 = vpop.permute.xlu1 %977 }
 0x171   : > { %v3400_v27 = vpop.permute.xlu0 %975 }
 0x172   : > { %4300 = vst [vmem:[#allocation27_spill] sm:$0xff] %v3400_v27  ;;  %1459 = vrot.lane.b32.xlu1 %v1454_v10, %s2570_s29  ;;  %v1520_v10 = vmul.f32 %v3398_v54, %v1519_v56  ;;  %v1549_v56 = vmul.f32 %v3393_v11, %v1547_v25  ;;  %v1062_v27 = vstv %s3475_s9  ;;  %s3806_s9 = sld [smem:[#allocation2 + $0x7b]] }
 0x173   : > { %1457 = vrot.lane.b32.xlu0 %v1453_v12, %s2570_s29 }
 0x174   : > { %v3406_v63 = vpop.permute.xlu1 %991 }
 0x175   : > { %4301 = vst [vmem:[#allocation28_spill] sm:$0xff] %v3406_v63  ;;  %v3408_v5 = vpop.permute.xlu0 %989 }
 0x176   : > { %4302 = vst [vmem:[#allocation29_spill] sm:$0xff] %v3408_v5  ;;  %1512 = vrot.lane.b32.xlu1 %v1507_v39, %s2569_s21  ;;  %v1534_v39 = vmul.f32 %v3398_v54, %v1533_v52  ;;  %v2463_v5 = vld [vmem:[%s2704_s10 + $0x10] sm:$0xff] }
 0x177   : > { %1510 = vrot.lane.b32.xlu0 %v1506_v1, %s2569_s21 }
 0x178   : > { %v3414_v20 = vpop.permute.xlu1 %1005 }
 0x179   : > { %4303 = vst [vmem:[#allocation30_spill] sm:$0xff] %v3414_v20  ;;  %v3416_v12 = vpop.permute.xlu0 %1003 }
 0x17a   : > { %4304 = vst [vmem:[#allocation31_spill] sm:$0xff] %v3416_v12  ;;  %1526 = vrot.lane.b32.xlu1 %v1521_v53, %s2569_s21  ;;  %v1548_v53 = vmul.f32 %v3398_v54, %v1547_v25  ;;  %v1561_v12 = vstv %s2334_s23  ;;  %s3505_s23 = sld [smem:[#allocation2 + $0x9b]] }
 0x17b   : > { %1524 = vrot.lane.b32.xlu0 %v1520_v10, %s2569_s21  ;;  %v1563_v52 = vmul.f32 %v3393_v11, %v1561_v12 }
 0x17c   : > { %v3422_v19 = vpop.permute.xlu1 %1019 }
 0x17d   : > { %4305 = vst [vmem:[#allocation32_spill] sm:$0xff] %v3422_v19  ;;  %v3424_v1 = vpop.permute.xlu0 %1017 }
 0x17e   : > { %4306 = vst [vmem:[#allocation33_spill] sm:$0xff] %v3424_v1  ;;  %1540 = vrot.lane.b32.xlu1 %v1535_v40, %s2569_s21  ;;  %v1562_v40 = vmul.f32 %v3398_v54, %v1561_v12  ;;  %v1575_v1 = vstv %s2335_s15  ;;  %s3511_s15 = sld [smem:[#allocation2 + $0xf]] }
 0x17f   : > { %1538 = vrot.lane.b32.xlu0 %v1534_v39, %s2569_s21  ;;  %v1576_v12 = vmul.f32 %v3398_v54, %v1575_v1 }
 0x180   : > { %v3430_v20 = vpop.permute.xlu1 %1033 }
 0x181   : > { %4307 = vst [vmem:[#allocation34_spill] sm:$0xff] %v3430_v20  ;;  %v3432_v10 = vpop.permute.xlu0 %1031 }
 0x182   : > { %4308 = vst [vmem:[#allocation35_spill] sm:$0xff] %v3432_v10  ;;  %1554 = vrot.lane.b32.xlu1 %v1549_v56, %s2569_s21  ;;  %v1577_v56 = vmul.f32 %v3393_v11, %v1575_v1 }
 0x183   : > { %1552 = vrot.lane.b32.xlu0 %v1548_v53, %s2569_s21  ;;  %v1589_v53 = vstv %s2336_s24  ;;  %s3524_s24 = sld [smem:[#allocation2 + $0x16]] }
 0x184   : > { %v3444_v25 = vpop.permute.xlu1 %1047  ;;  %v1590_v1 = vmul.f32 %v3398_v54, %v1589_v53 }
 0x185   : > { %4309 = vst [vmem:[#allocation36_spill] sm:$0xff] %v3444_v25  ;;  %v3448_v39 = vpop.permute.xlu0 %1045 }
 0x186   : > { %4310 = vst [vmem:[#allocation37_spill] sm:$0xff] %v3448_v39  ;;  %1568 = vrot.lane.b32.xlu1 %v1563_v52, %s2569_s21  ;;  %v1591_v52 = vmul.f32 %v3393_v11, %v1589_v53  ;;  %v1617_v53 = vstv %s3456_s5  ;;  %v874_v39 = vstv %s3458_s6  ;;  %s3607_s5 = sld [smem:[#allocation2 + $0x82]] }
 0x187   : > { %1566 = vrot.lane.b32.xlu0 %v1562_v40, %s2569_s21  ;;  %v1603_v40 = vstv %s3440_s27  ;;  %s3543_s27 = sld [smem:[#allocation2 + $0x31]] }
 0x188   : > { %v3460_v10 = vpop.permute.xlu1 %1099  ;;  %s3625_s6 = sld [smem:[#allocation2 + $0x60]] }
 0x189   : > { %4311 = vst [vmem:[#allocation38_spill] sm:$0xff] %v3460_v10  ;;  %v3464_v20 = vpop.permute.xlu0 %1097  ;;  %v868_v10 = vstv %s3450_s4  ;;  %s3584_s4 = sld [smem:[#allocation2 + $0x67]] }
 0x18a   : > { %4312 = vst [vmem:[#allocation39_spill] sm:$0xff] %v3464_v20  ;;  %1582 = vrot.lane.b32.xlu1 %v1577_v56, %s2569_s21  ;;  %v1605_v56 = vmul.f32 %v3393_v11, %v1603_v40 }
 0x18b   : > { %1580 = vrot.lane.b32.xlu0 %v1576_v12, %s2569_s21  ;;  %v1604_v12 = vmul.f32 %v3398_v54, %v1603_v40  ;;  %v1619_v40 = vmul.f32 %v3393_v11, %v1617_v53 }
 0x18c   : > { %v3477_v19 = vpop.permute.xlu1 %1113 }
 0x18d   : > { %4313 = vst [vmem:[#allocation40_spill] sm:$0xff] %v3477_v19  ;;  %v3479_v20 = vpop.permute.xlu0 %1111 }
 0x18e   : > { %4314 = vst [vmem:[#allocation41_spill] sm:$0xff] %v3479_v20  ;;  %1596 = vrot.lane.b32.xlu1 %v1591_v52, %s2570_s29  ;;  %v850_v52 = vstv %s3434_s25  ;;  %v856_v20 = vstv %s3442_s28  ;;  %s3535_s25 = sld [smem:[#allocation2 + $0x2a]] }
 0x18f   : > { %1594 = vrot.lane.b32.xlu0 %v1590_v1, %s2570_s29  ;;  %v862_v1 = vstv %s3446_s30  ;;  %s3552_s28 = sld [smem:[#allocation2 + $0x45]] }
 0x190   : > { %v3492_v19 = vpop.permute.xlu1 %1127  ;;  %v3530_v55 = vmul.f32 %v2463_v5, %v862_v1  ;;  %s3563_s30 = sld [smem:[#allocation2 + $0x4c]] }
 0x191   : > { %4315 = vst [vmem:[#allocation42_spill] sm:$0xff] %v3492_v19  ;;  %v3498_v0 = vpop.permute.xlu0 %1125  ;;  %v1618_v19 = vmul.f32 %v3398_v54, %v1617_v53 }
 0x192   : > { %4316 = vst [vmem:[#allocation43_spill] sm:$0xff] %v3498_v0  ;;  %1610 = vrot.lane.b32.xlu1 %v1605_v56, %s2570_s29  ;;  %v2462_v0 = vld [vmem:[%s2704_s10 + $0x18] sm:$0x3f]  ;;  %v3517_v56 = vmul.f32 %v2463_v5, %v850_v52  ;;  %4319 = vst [vmem:[#allocation46_spill] sm:$0xff] %v3530_v55  ;;  %v1645_v55 = vstv %s3490_s12  ;;  %s3853_s12 = sld [smem:[#allocation2 + $0x96]] }
 0x193   : > { %1608 = vrot.lane.b32.xlu0 %v1604_v12, %s2570_s29  ;;  %v3514_v30 = vmul.f32 %v2462_v0, %v850_v52  ;;  %v3519_v63 = vmul.f32 %v2462_v0, %v856_v20  ;;  %v3526_v12 = vmul.f32 %v2463_v5, %v856_v20  ;;  %v3528_v53 = vmul.f32 %v2462_v0, %v862_v1 }
 0x194   : > { %v3522_v49 = vpop.permute.xlu1 %1141  ;;  %v3537_v52 = vmul.f32 %v2462_v0, %v868_v10  ;;  %v1633_v20 = vmul.f32 %v3393_v11, %v1631_v17  ;;  %v3547_v1 = vmul.f32 %v2462_v0, %v874_v39 }
 0x195   : > { %4317 = vst [vmem:[#allocation44_spill] sm:$0xff] %v3522_v49  ;;  %4318 = vst [vmem:[#allocation45_spill] sm:$0xff] %v3528_v53  ;;  %v3533_v25 = vpop.permute.xlu0 %1139  ;;  %v3545_v49 = vmul.f32 %v2463_v5, %v868_v10  ;;  %v3558_v53 = vmul.f32 %v2463_v5, %v880_v24 }
 0x196   : > { %4320 = vst [vmem:[#allocation47_spill] sm:$0xff] %v3533_v25  ;;  %4321 = vst [vmem:[#allocation48_spill] sm:$0xff] %v3537_v52  ;;  %1624 = vrot.lane.b32.xlu1 %v1619_v40, %s2570_s29  ;;  %v1632_v25 = vmul.f32 %v3398_v54, %v1631_v17  ;;  %v3554_v52 = vmul.f32 %v2463_v5, %v874_v39  ;;  %v3556_v40 = vmul.f32 %v2462_v0, %v880_v24 }
 0x197   : > { %4322 = vst [vmem:[#allocation49_spill] sm:$0xff] %v3545_v49  ;;  %4323 = vst [vmem:[#allocation50_spill] sm:$0xff] %v3547_v1  ;;  %1622 = vrot.lane.b32.xlu0 %v1618_v19, %s2570_s29  ;;  %v3566_v19 = vmul.f32 %v3126_v62, %v1056_v4  ;;  %v3569_v17 = vmul.f32 %v3130_v3, %v1056_v4  ;;  %v3572_v1 = vmul.f32 %v3126_v62, %v1062_v27 }
 0x198   : > { %4324 = vst [vmem:[#allocation51_spill] sm:$0xff] %v3554_v52  ;;  %v3561_v10 = vpop.permute.xlu1 %1155  ;;  %v1074_v39 = vstv %s3485_s11  ;;  %v3578_v24 = vmul.f32 %v3130_v3, %v1062_v27  ;;  %v1080_v5 = vstv %s3494_s18  ;;  %v1647_v52 = vmul.f32 %v3393_v11, %v1645_v55  ;;  %s3847_s11 = sld [smem:[#allocation2 + $0x68]] }
 0x199   : > { %4325 = vst [vmem:[#allocation52_spill] sm:$0xff] %v3561_v10  ;;  %4326 = vst [vmem:[#allocation53_spill] sm:$0xff] %v3569_v17  ;;  %v3575_v0 = vpop.permute.xlu0 %1153  ;;  %v1086_v10 = vstv %s3500_s19  ;;  %v3587_v4 = vmul.f32 %v3126_v62, %v1068_v29  ;;  %v1646_v27 = vmul.f32 %v3398_v54, %v1645_v55  ;;  %v1711_v49 = vstv %s3524_s24  ;;  %s3874_s18 = sld [smem:[#allocation2 + $0x83]] }
 0x19a   : > { %4327 = vst [vmem:[#allocation54_spill] sm:$0xff] %v3572_v1  ;;  %4328 = vst [vmem:[#allocation55_spill] sm:$0xff] %v3575_v0  ;;  %1638 = vrot.lane.b32.xlu1 %v1633_v20, %s2570_s29  ;;  %v3590_v1 = vmul.f32 %v3130_v3, %v1068_v29  ;;  %v1659_v0 = vstv %s3505_s23  ;;  %v3596_v20 = vmul.f32 %v3126_v62, %v1074_v39  ;;  %v1262_v29 = vstv %s3511_s15  ;;  %s3895_s19 = sld [smem:[#allocation2 + $0x9e]] }
 0x19b   : > { %4329 = vst [vmem:[#allocation56_spill] sm:$0xff] %v3578_v24  ;;  %4330 = vst [vmem:[#allocation57_spill] sm:$0xff] %v3587_v4  ;;  %1636 = vrot.lane.b32.xlu0 %v1632_v25, %s2570_s29  ;;  %v3599_v24 = vmul.f32 %v3130_v3, %v1074_v39  ;;  %v3604_v4 = vld [vmem:[%s2704_s10 + $0x29] sm:$0x3f]  ;;  %v3611_v25 = vmul.f32 %v3126_v62, %v1080_v5  ;;  %v3614_v55 = vmul.f32 %v3130_v3, %v1080_v5  ;;  %s3910_s23 = sld [smem:[#allocation2 + $0x19]] }
 0x19c   : > { %4331 = vst [vmem:[#allocation58_spill] sm:$0xff] %v3590_v1  ;;  %4332 = vst [vmem:[#allocation59_spill] sm:$0xff] %v3596_v20  ;;  %v3601_v17 = vpop.permute.xlu1 %1169  ;;  %v3617_v20 = vmul.f32 %v3126_v62, %v1086_v10  ;;  %v1268_v1 = vstv %s3535_s25  ;;  %v1660_v5 = vmul.f32 %v3398_v54, %v1659_v0  ;;  %v1713_v62 = vmul.f32 %v3604_v4, %v1711_v49  ;;  %s3923_s15 = sld [smem:[#allocation2 + $0x34]] }
 0x19d   : > { %4333 = vst [vmem:[#allocation60_spill] sm:$0xff] %v3599_v24  ;;  %4334 = vst [vmem:[#allocation61_spill] sm:$0xff] %v3601_v17  ;;  %v3619_v39 = vpop.permute.xlu0 %1167  ;;  %v3622_v24 = vld [vmem:[%s2704_s10 + $0x21] sm:$0xff]  ;;  %v3628_v17 = vmul.f32 %v3130_v3, %v1086_v10  ;;  %v1274_v3 = vstv %s3552_s28  ;;  %v691_v54 = vadd.f32 %v3239_v58, %v3148_v15  ;;  %v761_v58 = vadd.f32 %v3282_v6, %v3237_v47  ;;  %s3938_s24 = sld [smem:[#allocation2 + $0x4f]] }
 0x19e   : > { %4335 = vst [vmem:[#allocation62_spill] sm:$0xff] %v3611_v25  ;;  %4336 = vst [vmem:[#allocation63_spill] sm:$0xff] %v3614_v55  ;;  %1652 = vrot.lane.b32.xlu1 %v1647_v52, %s2570_s29  ;;  %v1661_v25 = vmul.f32 %v3393_v11, %v1659_v0  ;;  %v1725_v55 = vstv %s3543_s27  ;;  %v1712_v52 = vmul.f32 %v3622_v24, %v1711_v49  ;;  %v1739_v11 = vstv %s3563_s30  ;;  %s3954_s25 = sld [smem:[#allocation2 + $0x6a]] }
 0x19f   : > { %4337 = vst [vmem:[#allocation64_spill] sm:$0xff] %v3617_v20  ;;  %4338 = vst [vmem:[#allocation65_spill] sm:$0xff] %v3619_v39  ;;  %1650 = vrot.lane.b32.xlu0 %v1646_v27, %s2570_s29  ;;  %v3637_v39 = vmul.f32 %v3291_v57, %v1262_v29  ;;  %v3640_v20 = vmul.f32 %v3296_v35, %v1262_v29  ;;  %v3650_v0 = vmul.f32 %v3291_v57, %v1268_v1  ;;  %s3967_s27 = sld [smem:[#allocation2 + $0x85]] }
 0x1a0   : > { %v3643_v10 = vpop.permute.xlu1 %1183  ;;  %v3653_v27 = vmul.f32 %v3296_v35, %v1268_v1  ;;  %v690_v29 = vadd.f32 %v3243_v16, %v3153_v21  ;;  %v1726_v49 = vmul.f32 %v3622_v24, %v1725_v55  ;;  %v1753_v1 = vstv %s3584_s4  ;;  %s3969_s28 = sld [smem:[#allocation2 + $0x12]] }
 0x1a1   : > { %4339 = vst [vmem:[#allocation66_spill] sm:$0xff] %v3637_v39  ;;  %4340 = vst [vmem:[#allocation67_spill] sm:$0xff] %v3640_v20  ;;  %v3659_v20 = vpop.permute.xlu0 %1181  ;;  %v1727_v39 = vmul.f32 %v3604_v4, %v1725_v55  ;;  %v3670_v15 = vmul.f32 %v3291_v57, %v1274_v3  ;;  %v3673_v21 = vmul.f32 %v3296_v35, %v1274_v3  ;;  %s3982_s30 = sld [smem:[#allocation2 + $0xa0]] }
 0x1a2   : > { %4341 = vst [vmem:[#allocation68_spill] sm:$0xff] %v3650_v0  ;;  %v705_v0 = vadd.f32 %v3250_v48, %v3168_v28  ;;  %1666 = vrot.lane.b32.xlu1 %v1661_v25, %s2570_s29  ;;  %v775_v16 = vadd.f32 %v3293_v9, %v691_v54  ;;  %v1741_v55 = vmul.f32 %v3604_v4, %v1739_v11  ;;  %s3984_s4 = sld [smem:[#allocation2 + $0x2d]] }
 0x1a3   : > { %4342 = vst [vmem:[#allocation69_spill] sm:$0xff] %v3673_v21  ;;  %1664 = vrot.lane.b32.xlu0 %v1660_v5, %s2570_s29  ;;  %v1740_v28 = vmul.f32 %v3622_v24, %v1739_v11  ;;  %v704_v48 = vadd.f32 %v3252_v32, %v3173_v37  ;;  %v760_v25 = vadd.f32 %v3284_v7, %v3241_v26  ;;  %v1767_v21 = vstv %s3607_s5  ;;  %s3997_s5 = sld [smem:[#allocation2 + $0x1a]] }
 0x1a4   : > { %v774_v3 = vadd.f32 %v3298_v8, %v690_v29  ;;  %v3686_v35 = vpop.permute.xlu1 %1197  ;;  %v719_v47 = vadd.f32 %v3258_v33, %v3188_v36  ;;  %v845_v6 = vadd.f32 %v3336_v43, %v761_v58  ;;  %v3695_v11 = vmul.f32 %v3604_v4, %v1753_v1 }
 0x1a5   : > { %v3692_v9 = vpop.permute.xlu0 %1195  ;;  %v1280_v37 = vstv %s3625_s6  ;;  %v789_v32 = vadd.f32 %v3304_v61, %v705_v0  ;;  %v788_v26 = vadd.f32 %v3306_v18, %v704_v48  ;;  %v844_v7 = vadd.f32 %v3338_v41, %v760_v25  ;;  %v4350_v25 = vld [vmem:[#allocation37_spill] sm:$0xff]  ;;  %s4000_s6 = sld [smem:[#allocation2 + $0x48]] }
 0x1a6   : > { %1718 = vrot.lane.b32.xlu1 %v1713_v62, %s2569_s21  ;;  %v3703_v36 = vmul.f32 %v3622_v24, %v1753_v1  ;;  %v718_v33 = vadd.f32 %v3260_v46, %v3193_v59  ;;  %v733_v8 = vadd.f32 %v3266_v34, %v3206_v45  ;;  %v854_v43 = vadd.f32 %v3514_v30, %v775_v16  ;;  %v4349_v16 = vld [vmem:[#allocation17_spill] sm:$0xff] }
 0x1a7   : > { %1716 = vrot.lane.b32.xlu0 %v1712_v52, %s2569_s21  ;;  %v3712_v61 = vmul.f32 %v3604_v4, %v1767_v21  ;;  %v732_v18 = vadd.f32 %v3268_v51, %v3211_v31  ;;  %v853_v41 = vadd.f32 %v3517_v56, %v774_v3  ;;  %v3720_v5 = vmul.f32 %v3622_v24, %v1767_v21 }
 0x1a8   : > { %v3717_v54 = vpop.permute.xlu1 %1211  ;;  %v1781_v59 = vstv %s3647_s7  ;;  %v747_v45 = vadd.f32 %v3274_v2, %v3224_v50  ;;  %v898_v46 = vadd.f32 %v3344_v44, %v854_v43  ;;  %v884_v34 = vadd.f32 %v3556_v40, %v845_v6  ;;  %v4351_v6 = vld [vmem:[#allocation45_spill] sm:$0xff]  ;;  %s4014_s7 = sld [smem:[#allocation2 + $0x35]] }
 0x1a9   : > { %v3727_v30 = vpop.permute.xlu0 %1209  ;;  %v1795_v62 = vstv %s3663_s8  ;;  %v897_v31 = vadd.f32 %v3346_v42, %v853_v41  ;;  %v860_v51 = vadd.f32 %v3519_v63, %v789_v32  ;;  %v859_v56 = vadd.f32 %v3526_v12, %v788_v26  ;;  %v4343_v12 = vld [vmem:[#allocation24_spill] sm:$0xff]  ;;  %v4352_v26 = vld [vmem:[#allocation46_spill] sm:$0xff]  ;;  %s4018_s8 = sld [smem:[#allocation2 + $0x63]] }
 0x1aa   : > { %v883_v52 = vadd.f32 %v3558_v53, %v844_v7  ;;  %1732 = vrot.lane.b32.xlu1 %v1727_v39, %s2569_s21  ;;  %v803_v0 = vadd.f32 %v3312_v38, %v719_v47  ;;  %v802_v50 = vadd.f32 %v3314_v13, %v718_v33  ;;  %v968_v2 = vadd.f32 %v3384_v60, %v884_v34  ;;  %v4344_v53 = vld [vmem:[#allocation27_spill] sm:$0xff]  ;;  %v4345_v38 = vld [vmem:[#allocation16_spill] sm:$0xff]  ;;  %v4356_v34 = vld [vmem:[#allocation29_spill] sm:$0xff] }
 0x1ab   : > { %v982_v44 = vadd.f32 %v3395_v22, %v898_v46  ;;  %1730 = vrot.lane.b32.xlu0 %v1726_v49, %s2569_s21  ;;  %v817_v42 = vadd.f32 %v3320_v23, %v733_v8  ;;  %v816_v63 = vadd.f32 %v3322_v14, %v732_v18  ;;  %v981_v29 = vadd.f32 %v4344_v53, %v897_v31  ;;  %v4346_v13 = vld [vmem:[#allocation36_spill] sm:$0xff]  ;;  %v4347_v23 = vld [vmem:[#allocation11_spill] sm:$0xff]  ;;  %v4357_v31 = vld [vmem:[#allocation53_spill] sm:$0xff] }
 0x1ac   : > { %v967_v40 = vadd.f32 %v4343_v12, %v883_v52  ;;  %v3744_v39 = vpop.permute.xlu1 %1225  ;;  %v912_v1 = vadd.f32 %v4345_v38, %v860_v51  ;;  %v1052_v21 = vadd.f32 %v4346_v13, %v968_v2  ;;  %v3751_v22 = vmul.f32 %v3604_v4, %v1781_v59  ;;  %v4348_v14 = vld [vmem:[#allocation12_spill] sm:$0xff]  ;;  %v4358_v52 = vld [vmem:[#allocation14_spill] sm:$0xff]  ;;  %v4363_v38 = vld [vmem:[#allocation19_spill] sm:$0xff] }
 0x1ad   : > { %v3748_v60 = vpop.permute.xlu0 %1223  ;;  %v3754_v49 = vmul.f32 %v3622_v24, %v1781_v59  ;;  %v746_v58 = vadd.f32 %v4348_v14, %v4347_v23  ;;  %v911_v48 = vadd.f32 %v4349_v16, %v859_v56  ;;  %v3764_v47 = vmul.f32 %v3604_v4, %v1795_v62  ;;  %v4353_v33 = vld [vmem:[#allocation28_spill] sm:$0xff]  ;;  %v4355_v59 = vld [vmem:[#allocation49_spill] sm:$0xff]  ;;  %v4359_v2 = vld [vmem:[#allocation18_spill] sm:$0xff] }
 0x1ae   : > { %v1051_v3 = vadd.f32 %v4350_v25, %v967_v40  ;;  %1746 = vrot.lane.b32.xlu1 %v1741_v55, %s2569_s21  ;;  %v866_v32 = vadd.f32 %v4351_v6, %v803_v0  ;;  %v865_v7 = vadd.f32 %v4352_v26, %v802_v50  ;;  %v996_v8 = vadd.f32 %v4353_v33, %v912_v1  ;;  %v4354_v18 = vld [vmem:[#allocation48_spill] sm:$0xff]  ;;  %v4360_v12 = vld [vmem:[#allocation38_spill] sm:$0xff]  ;;  %v4364_v1 = vld [vmem:[#allocation39_spill] sm:$0xff] }
 0x1af   : > { %v1060_v43 = vadd.f32 %v3566_v19, %v982_v44  ;;  %1744 = vrot.lane.b32.xlu0 %v1740_v28, %s2569_s21  ;;  %v872_v41 = vadd.f32 %v4354_v18, %v817_v42  ;;  %v871_v46 = vadd.f32 %v4355_v59, %v816_v63  ;;  %v995_v55 = vadd.f32 %v4356_v34, %v911_v48  ;;  %v4361_v53 = vld [vmem:[#allocation64_spill] sm:$0xff]  ;;  %v4362_v28 = vld [vmem:[#allocation15_spill] sm:$0xff]  ;;  %v4366_v14 = vld [vmem:[#allocation54_spill] sm:$0xff] }
 0x1b0   : > { %v1059_v51 = vadd.f32 %v4357_v31, %v981_v29  ;;  %v3775_v56 = vpop.permute.xlu1 %1239  ;;  %v831_v0 = vadd.f32 %v4358_v52, %v747_v45  ;;  %v926_v50 = vadd.f32 %v4359_v2, %v866_v32  ;;  %v1090_v19 = vadd.f32 %v4361_v53, %v1052_v21  ;;  %v4365_v45 = vld [vmem:[#allocation30_spill] sm:$0xff]  ;;  %v4367_v21 = vld [vmem:[#allocation61_spill] sm:$0xff]  ;;  %v4369_v32 = vld [vmem:[#allocation56_spill] sm:$0xff] }
 0x1b1   : > { %v1104_v40 = vadd.f32 %v4360_v12, %v1060_v43  ;;  %v3781_v44 = vpop.permute.xlu0 %1237  ;;  %v830_v42 = vadd.f32 %v4362_v28, %v746_v58  ;;  %v925_v63 = vadd.f32 %v4363_v38, %v865_v7  ;;  %v1089_v29 = vadd.f32 %v3628_v17, %v1051_v3  ;;  %v4368_v58 = vld [vmem:[#allocation31_spill] sm:$0xff]  ;;  %v4370_v3 = vld [vmem:[#allocation65_spill] sm:$0xff]  ;;  %v4371_v33 = vld [vmem:[#allocation20_spill] sm:$0xff] }
 0x1b2   : > { %v1103_v13 = vadd.f32 %v4364_v1, %v1059_v51  ;;  %1760 = vrot.lane.b32.xlu1 %v3695_v11, %s2569_s21  ;;  %v1010_v23 = vadd.f32 %v4365_v45, %v926_v50  ;;  %v1066_v16 = vadd.f32 %v4366_v14, %v996_v8  ;;  %v1174_v48 = vadd.f32 %v4367_v21, %v1090_v19  ;;  %v4372_v18 = vld [vmem:[#allocation50_spill] sm:$0xff]  ;;  %v4373_v59 = vld [vmem:[#allocation40_spill] sm:$0xff]  ;;  %v4375_v52 = vld [vmem:[#allocation51_spill] sm:$0xff] }
 0x1b3   : > { %v1188_v25 = vadd.f32 %v3643_v10, %v1104_v40  ;;  %1758 = vrot.lane.b32.xlu0 %v3703_v36, %s2569_s21  ;;  %v1009_v6 = vadd.f32 %v4368_v58, %v925_v63  ;;  %v1065_v17 = vadd.f32 %v4369_v32, %v995_v55  ;;  %v1173_v26 = vadd.f32 %v4370_v3, %v1089_v29  ;;  %v4374_v36 = vld [vmem:[#allocation21_spill] sm:$0xff]  ;;  %v4381_v38 = vld [vmem:[#allocation58_spill] sm:$0xff]  ;;  %v4386_v58 = vld [vmem:[#allocation43_spill] sm:$0xff] }
 0x1b4   : > { %v1187_v11 = vadd.f32 %v3659_v20, %v1103_v13  ;;  %v1254_v7 = vpop.permute.xlu1 %1253  ;;  %v940_v43 = vadd.f32 %v4371_v33, %v872_v41  ;;  %v878_v8 = vadd.f32 %v4372_v18, %v831_v0  ;;  %v1118_v34 = vadd.f32 %v4373_v59, %v1066_v16  ;;  %v4376_v2 = vld [vmem:[#allocation41_spill] sm:$0xff]  ;;  %v4377_v20 = vld [vmem:[#allocation32_spill] sm:$0xff]  ;;  %v4382_v13 = vld [vmem:[#allocation67_spill] sm:$0xff] }
 0x1b5   : > { %v3804_v31 = vadd.f32 %v1254_v7, %v1174_v48  ;;  %v1252_v10 = vpop.permute.xlu0 %1251  ;;  %v939_v51 = vadd.f32 %v4374_v36, %v871_v46  ;;  %v877_v55 = vadd.f32 %v4375_v52, %v830_v42  ;;  %v1117_v50 = vadd.f32 %v4376_v2, %v1065_v17  ;;  %v4378_v0 = vld [vmem:[#allocation57_spill] sm:$0xff]  ;;  %v4379_v46 = vld [vmem:[#allocation66_spill] sm:$0xff]  ;;  %v4385_v48 = vld [vmem:[#allocation23_spill] sm:$0xff] }
 0x1b6   : > { %v3811_v12 = vadd.f32 %v1252_v10, %v1173_v26  ;;  %1774 = vrot.lane.b32.xlu1 %v3712_v61, %s2569_s21  ;;  %v1024_v41 = vadd.f32 %v4377_v20, %v940_v43  ;;  %v1072_v40 = vadd.f32 %v4378_v0, %v1010_v23  ;;  %v1202_v53 = vadd.f32 %v3686_v35, %v1118_v34  ;;  %v4380_v28 = vld [vmem:[#allocation33_spill] sm:$0xff]  ;;  %v4383_v45 = vld [vmem:[#allocation22_spill] sm:$0xff]  ;;  %v4388_v26 = vld [vmem:[#allocation59_spill] sm:$0xff] }
 0x1b7   : > { %1772 = vrot.lane.b32.xlu0 %v3720_v5, %s2569_s21  ;;  %v1266_v19 = vadd.f32 %v4379_v46, %v1188_v25  ;;  %v1023_v42 = vadd.f32 %v4380_v28, %v939_v51  ;;  %v1071_v63 = vadd.f32 %v4381_v38, %v1009_v6  ;;  %v1201_v61 = vadd.f32 %v3692_v9, %v1117_v50  ;;  %v4384_v35 = vld [vmem:[#allocation42_spill] sm:$0xff]  ;;  %v4390_v43 = vld [vmem:[#allocation35_spill] sm:$0xff]  ;;  %v4396_v38 = vld [vmem:[#allocation69_spill] sm:$0xff] }
 0x1b8   : > { %v1306_v1 = vpop.permute.xlu1 %1305  ;;  %v1265_v29 = vadd.f32 %v4382_v13, %v1187_v11  ;;  %v954_v23 = vadd.f32 %v4383_v45, %v878_v8  ;;  %v1132_v14 = vadd.f32 %v4384_v35, %v1072_v40  ;;  %v1796_v21 = vmul.f32 %v3622_v24, %v1795_v62  ;;  %v4387_v17 = vld [vmem:[#allocation34_spill] sm:$0xff]  ;;  %v4389_v62 = vld [vmem:[#allocation68_spill] sm:$0xff]  ;;  %v4393_v2 = vld [vmem:[#allocation47_spill] sm:$0xff] }
 0x1b9   : > { %v3829_v16 = vadd.f32 %v1306_v1, %v1266_v19  ;;  %v1304_v5 = vpop.permute.xlu0 %1303  ;;  %v953_v25 = vadd.f32 %v4385_v48, %v877_v55  ;;  %v1131_v32 = vadd.f32 %v4386_v58, %v1071_v63  ;;  %v1809_v9 = vstv %s3789_s26  ;;  %v4391_v8 = vld [vmem:[#allocation60_spill] sm:$0xff]  ;;  %v4395_v19 = vld [vmem:[#allocation63_spill] sm:$0xff]  ;;  %s4033_s26 = sld [smem:[#allocation2 + $0x50]] }
 0x1ba   : > { %v3836_v6 = vadd.f32 %v1304_v5, %v1265_v29  ;;  %1788 = vrot.lane.b32.xlu1 %v3751_v22, %s2569_s21  ;;  %v1038_v3 = vadd.f32 %v4387_v17, %v954_v23  ;;  %v1078_v11 = vadd.f32 %v4388_v26, %v1024_v41  ;;  %v1216_v7 = vadd.f32 %v3717_v54, %v1132_v14  ;;  %v4392_v54 = vld [vmem:[#allocation44_spill] sm:$0xff]  ;;  %v4394_v41 = vld [vmem:[#allocation62_spill] sm:$0xff] }
 0x1bb   : > { %1786 = vrot.lane.b32.xlu0 %v3754_v49, %s2569_s21  ;;  %v1272_v33 = vadd.f32 %v4389_v62, %v1202_v53  ;;  %v1037_v18 = vadd.f32 %v4390_v43, %v953_v25  ;;  %v1077_v22 = vadd.f32 %v4391_v8, %v1023_v42  ;;  %v1215_v59 = vadd.f32 %v3727_v30, %v1131_v32  ;;  %v4398_v13 = vld [vmem:[#allocation52_spill] sm:$0xff] }
 0x1bc   : > { %v1320_v34 = vpop.permute.xlu1 %1319  ;;  %v1271_v10 = vadd.f32 %v3653_v27, %v1201_v61  ;;  %v1146_v36 = vadd.f32 %v4392_v54, %v1078_v11  ;;  %v1282_v52 = vmul.f32 %v3291_v57, %v1280_v37  ;;  %v1286_v55 = vstv %s3806_s9  ;;  %v4397_v61 = vld [vmem:[#allocation13_spill] sm:$0xff]  ;;  %s4038_s9 = sld [smem:[#allocation2 + $0x7e]] }
 0x1bd   : > { %v3856_v51 = vadd.f32 %v1320_v34, %v1272_v33  ;;  %v1318_v49 = vpop.permute.xlu0 %1317  ;;  %v1145_v50 = vadd.f32 %v4393_v2, %v1077_v22  ;;  %v1811_v27 = vmul.f32 %v3604_v4, %v1809_v9  ;;  %v1810_v30 = vmul.f32 %v3622_v24, %v1809_v9 }
 0x1be   : > { %v3863_v20 = vadd.f32 %v1318_v49, %v1271_v10  ;;  %1802 = vrot.lane.b32.xlu1 %v3764_v47, %s2570_s29  ;;  %v1084_v0 = vadd.f32 %v4394_v41, %v1038_v3  ;;  %v1230_v40 = vadd.f32 %v3744_v39, %v1146_v36  ;;  %v1278_v53 = vadd.f32 %v3670_v15, %v1216_v7  ;;  %v4399_v15 = vld [vmem:[#allocation55_spill] sm:$0xff] }
 0x1bf   : > { %1800 = vrot.lane.b32.xlu0 %v1796_v21, %s2570_s29  ;;  %v1823_v46 = vstv %s3821_s22  ;;  %v1083_v28 = vadd.f32 %v4395_v19, %v1037_v18  ;;  %v1229_v42 = vadd.f32 %v3748_v60, %v1145_v50  ;;  %v1277_v63 = vadd.f32 %v4396_v38, %v1215_v59  ;;  %s4051_s22 = sld [smem:[#allocation2 + $0x6b]] }
 0x1c0   : > { %v1334_v47 = vpop.permute.xlu1 %1333  ;;  %v1281_v1 = vmul.f32 %v4397_v61, %v1280_v37  ;;  %v1160_v39 = vadd.f32 %v4398_v13, %v1084_v0  ;;  %v1825_v60 = vmul.f32 %v3604_v4, %v1823_v46  ;;  %v1288_v14 = vmul.f32 %v3291_v57, %v1286_v55  ;;  %v3941_v0 = vld [vmem:[%s2704_s10 + $0x22] sm:$0xff] }
 0x1c1   : > { %v3883_v29 = vadd.f32 %v1334_v47, %v1278_v53  ;;  %v1332_v45 = vpop.permute.xlu0 %1331  ;;  %v1159_v23 = vadd.f32 %v4399_v15, %v1083_v28  ;;  %v1284_v37 = vadd.f32 %v1282_v52, %v1230_v40  ;;  %v1824_v21 = vmul.f32 %v3622_v24, %v1823_v46 }
 0x1c2   : > { %v3886_v35 = vadd.f32 %v1332_v45, %v1277_v63  ;;  %1816 = vrot.lane.b32.xlu1 %v1811_v27, %s2570_s29  ;;  %v1244_v5 = vadd.f32 %v3775_v56, %v1160_v39  ;;  %v1837_v48 = vstv %s3847_s11  ;;  %v1283_v32 = vadd.f32 %v1281_v1, %v1229_v42  ;;  %s4056_s11 = sld [smem:[#allocation2 + $0x99]] }
 0x1c3   : > { %1814 = vrot.lane.b32.xlu0 %v1810_v30, %s2570_s29  ;;  %v1243_v25 = vadd.f32 %v3781_v44, %v1159_v23  ;;  %v1287_v9 = vmul.f32 %v4397_v61, %v1286_v55  ;;  %v1292_v17 = vstv %s3853_s12  ;;  %v1839_v11 = vmul.f32 %v3604_v4, %v1837_v48  ;;  %v3935_v30 = vld [vmem:[%s2704_s10 + $0x2a] sm:$0x3f]  ;;  %s4081_s12 = sld [smem:[#allocation2 + $0xa1]] }
 0x1c4   : > { %v1348_v58 = vpop.permute.xlu1 %1347  ;;  %v1290_v7 = vadd.f32 %v1288_v14, %v1244_v5  ;;  %v1838_v44 = vmul.f32 %v3622_v24, %v1837_v48  ;;  %v1294_v62 = vmul.f32 %v3291_v57, %v1292_v17  ;;  %v1851_v33 = vstv %s3874_s18  ;;  %s2345_s18 = sld [smem:[#allocation2 + $0x30]] }
 0x1c5   : > { %v3900_v3 = vadd.f32 %v1348_v58, %v1284_v37  ;;  %v1346_v26 = vpop.permute.xlu0 %1345  ;;  %v1289_v18 = vadd.f32 %v1287_v9, %v1243_v25  ;;  %v1293_v8 = vmul.f32 %v4397_v61, %v1292_v17  ;;  %v1853_v10 = vmul.f32 %v3604_v4, %v1851_v33 }
 0x1c6   : > { %v3902_v56 = vadd.f32 %v1346_v26, %v1283_v32  ;;  %1830 = vrot.lane.b32.xlu1 %v1825_v60, %s2570_s29  ;;  %v1296_v57 = vadd.f32 %v1294_v62, %v3804_v31  ;;  %v1852_v54 = vmul.f32 %v3622_v24, %v1851_v33  ;;  %v1865_v36 = vstv %s3895_s19  ;;  %v4400_v26 = vld [vmem:[#allocation25_spill] sm:$0xff]  ;;  %s2346_s19 = sld [smem:[#allocation2 + $0x4b]] }
 0x1c7   : > { %1828 = vrot.lane.b32.xlu0 %v1824_v21, %s2570_s29  ;;  %v1295_v52 = vadd.f32 %v1293_v8, %v3811_v12  ;;  %v1867_v27 = vmul.f32 %v3604_v4, %v1865_v36  ;;  %v1866_v31 = vmul.f32 %v3622_v24, %v1865_v36  ;;  %v1917_v41 = vstv %s3910_s23  ;;  %s2348_s23 = sld [smem:[#allocation2 + $0x81]] }
 0x1c8   : > { %v1362_v43 = vpop.permute.xlu1 %1361  ;;  %v1919_v19 = vmul.f32 %v3935_v30, %v1917_v41  ;;  %v1918_v28 = vmul.f32 %v3941_v0, %v1917_v41  ;;  %v1931_v42 = vstv %s3923_s15  ;;  %v1945_v1 = vstv %s3938_s24  ;;  %s2349_s15 = sld [smem:[#allocation2 + $0x9c]] }
 0x1c9   : > { %v3913_v22 = vadd.f32 %v1362_v43, %v1290_v7  ;;  %v1360_v59 = vpop.permute.xlu0 %1359  ;;  %v1932_v61 = vmul.f32 %v3941_v0, %v1931_v42  ;;  %v1947_v45 = vmul.f32 %v3935_v30, %v1945_v1  ;;  %v1946_v15 = vmul.f32 %v3941_v0, %v1945_v1  ;;  %s2364_s24 = sld [smem:[#allocation2 + $0x18]] }
 0x1ca   : > { %v3915_v34 = vadd.f32 %v1360_v59, %v1289_v18  ;;  %1844 = vrot.lane.b32.xlu1 %v1839_v11, %s2570_s29  ;;  %v1959_v23 = vstv %s3954_s25  ;;  %v1973_v21 = vstv %s3967_s27  ;;  %v1469_v25 = vstv %s3969_s28  ;;  %s2365_s25 = sld [smem:[#allocation2 + $0x33]] }
 0x1cb   : > { %1842 = vrot.lane.b32.xlu0 %v1838_v44, %s2570_s29  ;;  %v1961_v5 = vmul.f32 %v3935_v30, %v1959_v23  ;;  %v1960_v37 = vmul.f32 %v3941_v0, %v1959_v23  ;;  %v1975_v17 = vmul.f32 %v3935_v30, %v1973_v21  ;;  %v1987_v11 = vstv %s3982_s30  ;;  %v4401_v44 = vld [vmem:[#allocation26_spill] sm:$0xff]  ;;  %s4161_s27 = sld [smem:[#allocation2 + $0x4e]]  ;;  %s2397_s30 = smul.u32 96, %s4407_s16 }
 0x1cc   : > { %v1376_v49 = vpop.permute.xlu1 %1375  ;;  %v1470_v62 = vmul.f32 %v4401_v44, %v1469_v25  ;;  %v1475_v33 = vstv %s3984_s4  ;;  %v2029_v1 = vstv %s4033_s26  ;;  %s4165_s28 = sld [smem:[#allocation2 + $0x69]] }
 0x1cd   : > { %v3926_v55 = vadd.f32 %v1376_v49, %v1296_v57  ;;  %v1374_v2 = vpop.permute.xlu0 %1373  ;;  %v2001_v57 = vstv %s3997_s5  ;;  %v1476_v49 = vmul.f32 %v4401_v44, %v1475_v33  ;;  %s4181_s4 = sld [smem:[#allocation2 + $0x84]] }
 0x1ce   : > { %v3928_v50 = vadd.f32 %v1374_v2, %v1295_v52  ;;  %1858 = vrot.lane.b32.xlu1 %v1853_v10, %s2570_s29  ;;  %v1477_v10 = vmul.f32 %v4400_v26, %v1475_v33  ;;  %v1481_v52 = vstv %s4000_s6  ;;  %v2002_v41 = vmul.f32 %v3941_v0, %v2001_v57  ;;  %s4192_s6 = scalar_lea.vmem %s4264_s3, %s2397_s30 }
 0x1cf   : > { %1856 = vrot.lane.b32.xlu0 %v1852_v54, %s2570_s29 }
 0x1d0   : > { %v1390_v12 = vpop.permute.xlu1 %1389 }
 0x1d1   : > { %v3944_v40 = vadd.f32 %v1390_v12, %v3829_v16  ;;  %v1388_v53 = vpop.permute.xlu0 %1387  ;;  %v1483_v12 = vmul.f32 %v4400_v26, %v1481_v52 }
 0x1d2   : > { %v3947_v46 = vadd.f32 %v1388_v53, %v3836_v6  ;;  %1872 = vrot.lane.b32.xlu1 %v1867_v27, %s2570_s29  ;;  %v1933_v6 = vmul.f32 %v3935_v30, %v1931_v42  ;;  %v2003_v27 = vmul.f32 %v3935_v30, %v2001_v57 }
 0x1d3   : > { %1870 = vrot.lane.b32.xlu0 %v1866_v31, %s2570_s29 }
 0x1d4   : > { %v1404_v47 = vpop.permute.xlu1 %1403  ;;  %v1472_v36 = vadd.f32 %v1470_v62, %v3947_v46  ;;  %v2464_v62 = vld [vmem:[%s2704_s10 + $0x28] sm:$0x3f] }
 0x1d5   : > { %v3957_v16 = vadd.f32 %v1404_v47, %v3856_v51  ;;  %v1402_v38 = vpop.permute.xlu0 %1401 }
 0x1d6   : > { %v3960_v63 = vadd.f32 %v1402_v38, %v3863_v20  ;;  %1924 = vrot.lane.b32.xlu1 %v1919_v19, %s2569_s21  ;;  %v1482_v19 = vmul.f32 %v4401_v44, %v1481_v52 }
 0x1d7   : > { %1922 = vrot.lane.b32.xlu0 %v1918_v28, %s2569_s21  ;;  %v1479_v31 = vadd.f32 %v1477_v10, %v3957_v16  ;;  %v1487_v28 = vstv %s4018_s8 }
 0x1d8   : > { %v1418_v13 = vpop.permute.xlu1 %1417  ;;  %v1478_v46 = vadd.f32 %v1476_v49, %v3960_v63  ;;  %v2071_v49 = vstv %s4081_s12 }
 0x1d9   : > { %v3972_v51 = vadd.f32 %v1418_v13, %v3883_v29  ;;  %v1416_v20 = vpop.permute.xlu0 %1415 }
 0x1da   : > { %v3975_v39 = vadd.f32 %v1416_v20, %v3886_v35  ;;  %1938 = vrot.lane.b32.xlu1 %v1933_v6, %s2569_s21 }
 0x1db   : > { %1936 = vrot.lane.b32.xlu0 %v1932_v61, %s2569_s21  ;;  %v1485_v6 = vadd.f32 %v1483_v12, %v3972_v51  ;;  %v1489_v61 = vmul.f32 %v4400_v26, %v1487_v28  ;;  %v2031_v51 = vmul.f32 %v3935_v30, %v2029_v1  ;;  %v2072_v12 = vmul.f32 %v3941_v0, %v2071_v49 }
 0x1dc   : > { %v1432_v60 = vpop.permute.xlu1 %1431  ;;  %v1484_v20 = vadd.f32 %v1482_v19, %v3975_v39 }
 0x1dd   : > { %v3987_v29 = vadd.f32 %v1432_v60, %v3900_v3  ;;  %v1430_v35 = vpop.permute.xlu0 %1429  ;;  %v1974_v3 = vmul.f32 %v3941_v0, %v1973_v21  ;;  %v2043_v21 = vstv %s4051_s22 }
 0x1de   : > { %v3990_v14 = vadd.f32 %v1430_v35, %v3902_v56  ;;  %1952 = vrot.lane.b32.xlu1 %v1947_v45, %s2569_s21  ;;  %v1471_v56 = vmul.f32 %v4400_v26, %v1469_v25  ;;  %v1488_v45 = vmul.f32 %v4401_v44, %v1487_v28 }
 0x1df   : > { %1950 = vrot.lane.b32.xlu0 %v1946_v15, %s2569_s21  ;;  %v1493_v15 = vstv %s4038_s9 }
 0x1e0   : > { %v1446_v48 = vpop.permute.xlu1 %1445  ;;  %v1473_v59 = vadd.f32 %v1471_v56, %v3944_v40  ;;  %v2015_v40 = vstv %s4014_s7  ;;  %v1495_v39 = vmul.f32 %v4400_v26, %v1493_v15  ;;  %v1490_v25 = vadd.f32 %v1488_v45, %v3990_v14  ;;  %s4197_s7 = sld [smem:[#allocation2 + $0x9f]] }
 0x1e1   : > { %v4003_v58 = vadd.f32 %v1446_v48, %v3913_v22  ;;  %v1444_v32 = vpop.permute.xlu0 %1443  ;;  %v1989_v22 = vmul.f32 %v3935_v30, %v1987_v11  ;;  %v2017_v38 = vmul.f32 %v3935_v30, %v2015_v40  ;;  %v2016_v63 = vmul.f32 %v3941_v0, %v2015_v40 }
 0x1e2   : > { %v4006_v9 = vadd.f32 %v1444_v32, %v3915_v34  ;;  %1966 = vrot.lane.b32.xlu1 %v1961_v5, %s2569_s21  ;;  %v1988_v34 = vmul.f32 %v3941_v0, %v1987_v11  ;;  %v1491_v5 = vadd.f32 %v1489_v61, %v3987_v29  ;;  %v1494_v32 = vmul.f32 %v4401_v44, %v1493_v15 }
 0x1e3   : > { %1964 = vrot.lane.b32.xlu0 %v1960_v37, %s2569_s21  ;;  %v2030_v37 = vmul.f32 %v3941_v0, %v2029_v1  ;;  %v2045_v29 = vmul.f32 %v3935_v30, %v2043_v21  ;;  %v1497_v26 = vadd.f32 %v1495_v39, %v4003_v58 }
 0x1e4   : > { %v1460_v7 = vpop.permute.xlu1 %1459  ;;  %v1496_v44 = vadd.f32 %v1494_v32, %v4006_v9 }
 0x1e5   : > { %v4021_v43 = vadd.f32 %v1460_v7, %v3926_v55  ;;  %v1458_v18 = vpop.permute.xlu0 %1457  ;;  %v2044_v7 = vmul.f32 %v3941_v0, %v2043_v21 }
 0x1e6   : > { %v4024_v8 = vadd.f32 %v1458_v18, %v3928_v50  ;;  %1980 = vrot.lane.b32.xlu1 %v1975_v17, %s2569_s21  ;;  %v1499_v17 = vstv %s4056_s11 }
 0x1e7   : > { %1978 = vrot.lane.b32.xlu0 %v1974_v3, %s2569_s21  ;;  %v1501_v14 = vmul.f32 %v2464_v62, %v1499_v17 }
 0x1e8   : > { %v1513_v54 = vpop.permute.xlu1 %1512 }
 0x1e9   : > { %v4040_v55 = vadd.f32 %v1513_v54, %v1473_v59  ;;  %v1511_v2 = vpop.permute.xlu0 %1510  ;;  %v1503_v58 = vadd.f32 %v1501_v14, %v4021_v43 }
 0x1ea   : > { %v4042_v50 = vadd.f32 %v1511_v2, %v1472_v36  ;;  %1994 = vrot.lane.b32.xlu1 %v1989_v22, %s2569_s21  ;;  %v2465_v22 = vld [vmem:[%s2704_s10 + $0x20] sm:$0xff]  ;;  %s2344_s10 = sld [smem:[#allocation2 + $0x15]] }
 0x1eb   : > { %1992 = vrot.lane.b32.xlu0 %v1988_v34, %s2569_s21  ;;  %s4069_s21 = sld [smem:[#allocation2 + $0x86]]  ;;  %v1500_v59 = vmul.f32 %v2465_v22, %v1499_v17 }
 0x1ec   : > { %v1527_v53 = vpop.permute.xlu1 %1526 }
 0x1ed   : > { %v4058_v42 = vadd.f32 %v1527_v53, %v1479_v31  ;;  %v1525_v47 = vpop.permute.xlu0 %1524  ;;  %v1502_v2 = vadd.f32 %v1500_v59, %v4024_v8 }
 0x1ee   : > { %v4060_v16 = vadd.f32 %v1525_v47, %v1478_v46  ;;  %2008 = vrot.lane.b32.xlu1 %v2003_v27, %s2570_s29 }
 0x1ef   : > { %2006 = vrot.lane.b32.xlu0 %v2002_v41, %s2570_s29  ;;  %v2073_v41 = vmul.f32 %v3935_v30, %v2071_v49 }
 0x1f0   : > { %v1541_v13 = vpop.permute.xlu1 %1540  ;;  %v1675_v45 = vstv %s2344_s10 }
 0x1f1   : > { %v1545_v23 = vadd.f32 %v1541_v13, %v1485_v6  ;;  %v1539_v60 = vpop.permute.xlu0 %1538  ;;  %v2057_v33 = vstv %s4069_s21 }
 0x1f2   : > { %v1544_v35 = vadd.f32 %v1539_v60, %v1484_v20  ;;  %2022 = vrot.lane.b32.xlu1 %v2017_v38, %s2570_s29  ;;  %v2059_v54 = vmul.f32 %v3935_v30, %v2057_v33  ;;  %v2058_v36 = vmul.f32 %v3941_v0, %v2057_v33 }
 0x1f3   : > { %2020 = vrot.lane.b32.xlu0 %v2016_v63, %s2570_s29 }
 0x1f4   : > { %v1555_v48 = vpop.permute.xlu1 %1554 }
 0x1f5   : > { %v1559_v3 = vadd.f32 %v1555_v48, %v1491_v5  ;;  %v1553_v56 = vpop.permute.xlu0 %1552 }
 0x1f6   : > { %v1558_v11 = vadd.f32 %v1553_v56, %v1490_v25  ;;  %2036 = vrot.lane.b32.xlu1 %v2031_v51, %s2570_s29 }
 0x1f7   : > { %2034 = vrot.lane.b32.xlu0 %v2030_v37, %s2570_s29  ;;  %v1681_v37 = vstv %s2345_s18 }
 0x1f8   : > { %v1569_v18 = vpop.permute.xlu1 %1568  ;;  %v1683_v48 = vmul.f32 %v3604_v4, %v1681_v37  ;;  %v1682_v17 = vmul.f32 %v3622_v24, %v1681_v37 }
 0x1f9   : > { %v1573_v34 = vadd.f32 %v1569_v18, %v1497_v26  ;;  %v1567_v10 = vpop.permute.xlu0 %1566 }
 0x1fa   : > { %v1572_v57 = vadd.f32 %v1567_v10, %v1496_v44  ;;  %2050 = vrot.lane.b32.xlu1 %v2045_v29, %s2570_s29 }
 0x1fb   : > { %2048 = vrot.lane.b32.xlu0 %v2044_v7, %s2570_s29 }
 0x1fc   : > { %v1583_v52 = vpop.permute.xlu1 %1582 }
 0x1fd   : > { %v1587_v9 = vadd.f32 %v1583_v52, %v1503_v58  ;;  %v1581_v27 = vpop.permute.xlu0 %1580 }
 0x1fe   : > { %v1586_v31 = vadd.f32 %v1581_v27, %v1502_v2  ;;  %2064 = vrot.lane.b32.xlu1 %v2059_v54, %s2570_s29 }
 0x1ff   : > { %2062 = vrot.lane.b32.xlu0 %v2058_v36, %s2570_s29  ;;  %v1699_v36 = vstv %s2348_s23 }
 0x200   : > { %v1597_v40 = vpop.permute.xlu1 %1596  ;;  %v1701_v27 = vmul.f32 %v3604_v4, %v1699_v36 }
 0x201   : > { %v1601_v43 = vadd.f32 %v1597_v40, %v4040_v55  ;;  %v1595_v53 = vpop.permute.xlu0 %1594  ;;  %v1705_v40 = vstv %s2349_s15 }
 0x202   : > { %v1600_v46 = vadd.f32 %v1595_v53, %v4042_v50  ;;  %2078 = vrot.lane.b32.xlu1 %v2073_v41, %s2570_s29 }
 0x203   : > { %2076 = vrot.lane.b32.xlu0 %v2072_v12, %s2570_s29  ;;  %s2347_s29 = sld [smem:[#allocation2 + $0x66]]  ;;  %v1700_v12 = vmul.f32 %v3622_v24, %v1699_v36 }
 0x204   : > { %v1611_v8 = vpop.permute.xlu1 %1610 }
 0x205   : > { %v1615_v19 = vadd.f32 %v1611_v8, %v4058_v42  ;;  %v1609_v28 = vpop.permute.xlu0 %1608  ;;  %v1677_v42 = vmul.f32 %v3604_v4, %v1675_v45 }
 0x206   : > { %v1614_v47 = vadd.f32 %v1609_v28, %v4060_v16  ;;  %v1676_v16 = vmul.f32 %v3622_v24, %v1675_v45 }
 0x207   : > { %v1679_v21 = vadd.f32 %v1677_v42, %v1601_v43  ;;  %v1685_v26 = vadd.f32 %v1683_v48, %v1615_v19  ;;  %v1707_v19 = vmul.f32 %v3604_v4, %v1705_v40 }
 0x208   : > { %v1625_v38 = vpop.permute.xlu1 %1624  ;;  %v1678_v32 = vadd.f32 %v1676_v16, %v1600_v46  ;;  %v1684_v14 = vadd.f32 %v1682_v17, %v1614_v47 }
 0x209   : > { %v1629_v6 = vadd.f32 %v1625_v38, %v1545_v23  ;;  %v1623_v63 = vpop.permute.xlu0 %1622  ;;  %v1693_v18 = vstv %s2347_s29  ;;  %v1706_v38 = vmul.f32 %v3622_v24, %v1705_v40  ;;  %v1899_v40 = vstv %s4165_s28 }
 0x20a   : > { %v1628_v61 = vadd.f32 %v1623_v63, %v1544_v35  ;;  %v1695_v10 = vmul.f32 %v3604_v4, %v1693_v18  ;;  %v1694_v58 = vmul.f32 %v3622_v24, %v1693_v18 }
 0x20c   : > { %v1639_v1 = vpop.permute.xlu1 %1638 }
 0x20d   : > { %v1643_v55 = vadd.f32 %v1639_v1, %v1559_v3  ;;  %v1637_v13 = vpop.permute.xlu0 %1636  ;;  %v1687_v3 = vstv %s2346_s19 }
 0x20e   : > { %v1642_v50 = vadd.f32 %v1637_v13, %v1558_v11  ;;  %v1689_v7 = vmul.f32 %v3604_v4, %v1687_v3  ;;  %v1688_v33 = vmul.f32 %v3622_v24, %v1687_v3 }
 0x210   : > { %v1653_v20 = vpop.permute.xlu1 %1652  ;;  %v1690_v54 = vadd.f32 %v1688_v33, %v1628_v61  ;;  %v1696_v41 = vadd.f32 %v1694_v58, %v1642_v50 }
 0x211   : > { %v1657_v15 = vadd.f32 %v1653_v20, %v1573_v34  ;;  %v1651_v60 = vpop.permute.xlu0 %1650  ;;  %v1691_v34 = vadd.f32 %v1689_v7, %v1629_v6  ;;  %v1881_v7 = vstv %s2364_s24 }
 0x212   : > { %v1656_v51 = vadd.f32 %v1651_v60, %v1572_v57  ;;  %v1883_v33 = vmul.f32 %v3935_v30, %v1881_v7 }
 0x213   : > { %v1703_v8 = vadd.f32 %v1701_v27, %v1657_v15 }
 0x214   : > { %v1667_v5 = vpop.permute.xlu1 %1666  ;;  %v1702_v47 = vadd.f32 %v1700_v12, %v1656_v51 }
 0x215   : > { %v1671_v23 = vadd.f32 %v1667_v5, %v1587_v9  ;;  %v1665_v35 = vpop.permute.xlu0 %1664  ;;  %v1697_v9 = vadd.f32 %v1695_v10, %v1643_v55  ;;  %v1887_v10 = vstv %s2365_s25 }
 0x216   : > { %v1670_v39 = vadd.f32 %v1665_v35, %v1586_v31  ;;  %v1889_v36 = vmul.f32 %v3935_v30, %v1887_v10  ;;  %v1888_v27 = vmul.f32 %v3941_v0, %v1887_v10 }
 0x217   : > { %v1709_v1 = vadd.f32 %v1707_v19, %v1671_v23 }
 0x218   : > { %v1719_v25 = vpop.permute.xlu1 %1718  ;;  %v1708_v13 = vadd.f32 %v1706_v38, %v1670_v39 }
 0x219   : > { %v4116_v56 = vadd.f32 %v1719_v25, %v1679_v21  ;;  %v1717_v11 = vpop.permute.xlu0 %1716 }
 0x21a   : > { %v4118_v29 = vadd.f32 %v1717_v11, %v1678_v32 }
 0x21c   : > { %v1733_v62 = vpop.permute.xlu1 %1732 }
 0x21d   : > { %v4122_v44 = vadd.f32 %v1733_v62, %v1685_v26  ;;  %v1731_v22 = vpop.permute.xlu0 %1730 }
 0x21e   : > { %v4124_v59 = vadd.f32 %v1731_v22, %v1684_v14 }
 0x220   : > { %v1747_v57 = vpop.permute.xlu1 %1746 }
 0x221   : > { %v4128_v49 = vadd.f32 %v1747_v57, %v1691_v34  ;;  %v1745_v52 = vpop.permute.xlu0 %1744  ;;  %v1882_v34 = vmul.f32 %v3941_v0, %v1881_v7 }
 0x222   : > { %v4130_v2 = vadd.f32 %v1745_v52, %v1690_v54  ;;  %v1893_v52 = vstv %s4161_s27 }
 0x223   : > { %v1895_v12 = vmul.f32 %v3935_v30, %v1893_v52  ;;  %v1894_v38 = vmul.f32 %v3941_v0, %v1893_v52 }
 0x224   : > { %v1761_v31 = vpop.permute.xlu1 %1760 }
 0x225   : > { %v4134_v43 = vadd.f32 %v1761_v31, %v1697_v9  ;;  %v1759_v53 = vpop.permute.xlu0 %1758 }
 0x226   : > { %v4136_v46 = vadd.f32 %v1759_v53, %v1696_v41 }
 0x228   : > { %v1775_v28 = vpop.permute.xlu1 %1774 }
 0x229   : > { %v4140_v6 = vadd.f32 %v1775_v28, %v1703_v8  ;;  %v1773_v63 = vpop.permute.xlu0 %1772 }
 0x22a   : > { %v4142_v61 = vadd.f32 %v1773_v63, %v1702_v47 }
 0x22c   : > { %v1789_v55 = vpop.permute.xlu1 %1788 }
 0x22d   : > { %v4144_v50 = vadd.f32 %v1789_v55, %v1709_v1  ;;  %v1787_v20 = vpop.permute.xlu0 %1786 }
 0x22e   : > { %v4146_v45 = vadd.f32 %v1787_v20, %v1708_v13 }
 0x230   : > { %v1803_v15 = vpop.permute.xlu1 %1802 }
 0x231   : > { %v1801_v60 = vpop.permute.xlu0 %1800  ;;  %v1807_v14 = vadd.f32 %v1803_v15, %v4116_v56  ;;  %v1905_v15 = vstv %s4181_s4 }
 0x232   : > { %v1806_v22 = vadd.f32 %v1801_v60, %v4118_v29 }
 0x233   : > { %v1885_v58 = vadd.f32 %v1883_v33, %v1807_v14 }
 0x234   : > { %v1817_v4 = vpop.permute.xlu1 %1816  ;;  %v1884_v29 = vadd.f32 %v1882_v34, %v1806_v22  ;;  %v1911_v22 = vstv %s4197_s7 }
 0x235   : > { %v1815_v42 = vpop.permute.xlu0 %1814  ;;  %v1821_v54 = vadd.f32 %v1817_v4, %v4122_v44  ;;  %v1912_v52 = vmul.f32 %v3941_v0, %v1911_v22 }
 0x236   : > { %v1820_v9 = vadd.f32 %v1815_v42, %v4124_v59 }
 0x237   : > { %v1891_v59 = vadd.f32 %v1889_v36, %v1821_v54 }
 0x238   : > { %v1831_v51 = vpop.permute.xlu1 %1830  ;;  %v1890_v47 = vadd.f32 %v1888_v27, %v1820_v9 }
 0x239   : > { %v1829_v5 = vpop.permute.xlu0 %1828  ;;  %v1835_v53 = vadd.f32 %v1831_v51, %v4128_v49  ;;  %v1901_v49 = vmul.f32 %v3935_v30, %v1899_v40 }
 0x23a   : > { %v1834_v28 = vadd.f32 %v1829_v5, %v4130_v2  ;;  %v1900_v5 = vmul.f32 %v3941_v0, %v1899_v40 }
 0x23b   : > { %v1897_v2 = vadd.f32 %v1895_v12, %v1835_v53 }
 0x23c   : > { %v1845_v24 = vpop.permute.xlu1 %1844  ;;  %v1896_v51 = vadd.f32 %v1894_v38, %v1834_v28 }
 0x23d   : > { %v4148_v16 = vpop.permute.xlu0 %1842  ;;  %v1849_v20 = vadd.f32 %v1845_v24, %v4134_v43  ;;  %v1907_v43 = vmul.f32 %v3935_v30, %v1905_v15 }
 0x23e   : > { %v1848_v42 = vadd.f32 %v4148_v16, %v4136_v46  ;;  %v1906_v16 = vmul.f32 %v3941_v0, %v1905_v15 }
 0x23f   : > { %v1903_v46 = vadd.f32 %v1901_v49, %v1849_v20 }
 0x240   : > { %v4150_v37 = vpop.permute.xlu1 %1858  ;;  %v1902_v33 = vadd.f32 %v1900_v5, %v1848_v42 }
 0x241   : > { %v4152_v23 = vpop.permute.xlu0 %1856 }
 0x244   : > { %v4154_v35 = vpop.permute.xlu1 %1872 }
 0x245   : > { %v4156_v39 = vpop.permute.xlu0 %1870 }
 0x248   : > { %v1925_v21 = vpop.permute.xlu1 %1924 }
 0x249   : > { %v1923_v48 = vpop.permute.xlu0 %1922  ;;  %v1929_v31 = vadd.f32 %v1925_v21, %v1885_v58 }
 0x24a   : > { %v1928_v41 = vadd.f32 %v1923_v48, %v1884_v29 }
 0x24c   : > { %v1939_v25 = vpop.permute.xlu1 %1938 }
 0x24d   : > { %v1937_v32 = vpop.permute.xlu0 %1936  ;;  %v1943_v1 = vadd.f32 %v1939_v25, %v1891_v59 }
 0x24e   : > { %v1942_v55 = vadd.f32 %v1937_v32, %v1890_v47  ;;  %v1863_v32 = vadd.f32 %v4150_v37, %v4140_v6  ;;  %v1877_v37 = vadd.f32 %v4154_v35, %v4144_v50 }
 0x250   : > { %v1953_v17 = vpop.permute.xlu1 %1952  ;;  %v1909_v54 = vadd.f32 %v1907_v43, %v1863_v32 }
 0x251   : > { %v1951_v3 = vpop.permute.xlu0 %1950  ;;  %v1957_v48 = vadd.f32 %v1953_v17, %v1897_v2  ;;  %v1862_v17 = vadd.f32 %v4152_v23, %v4142_v61  ;;  %v1913_v61 = vmul.f32 %v3935_v30, %v1911_v22 }
 0x252   : > { %v1956_v25 = vadd.f32 %v1951_v3, %v1896_v51 }
 0x253   : > { %v1908_v36 = vadd.f32 %v1906_v16, %v1862_v17  ;;  %v1915_v35 = vadd.f32 %v1913_v61, %v1877_v37 }
 0x254   : > { %v4158_v11 = vpop.permute.xlu1 %1966 }
 0x255   : > { %v4163_v26 = vpop.permute.xlu0 %1964  ;;  %v1971_v34 = vadd.f32 %v4158_v11, %v1903_v46  ;;  %v1876_v11 = vadd.f32 %v4156_v39, %v4146_v45 }
 0x256   : > { %v1970_v10 = vadd.f32 %v4163_v26, %v1902_v33 }
 0x257   : > { %v1914_v45 = vadd.f32 %v1912_v52, %v1876_v11 }
 0x258   : > { %v4167_v62 = vpop.permute.xlu1 %1980 }
 0x259   : > { %v4172_v18 = vpop.permute.xlu0 %1978  ;;  %v1985_v9 = vadd.f32 %v4167_v62, %v1909_v54 }
 0x25a   : > { %v1984_v50 = vadd.f32 %v4172_v18, %v1908_v36 }
 0x25c   : > { %v4176_v57 = vpop.permute.xlu1 %1994 }
 0x25d   : > { %v4183_v56 = vpop.permute.xlu0 %1992 }
 0x25e   : > { %v1998_v0 = vadd.f32 %v4183_v56, %v1914_v45 }
 0x260   : > { %v2009_v44 = vpop.permute.xlu1 %2008 }
 0x261   : > { %v2013_v8 = vadd.f32 %v2009_v44, %v1929_v31  ;;  %v2007_v19 = vpop.permute.xlu0 %2006  ;;  %v1999_v31 = vadd.f32 %v4176_v57, %v1915_v35 }
 0x262   : > { %v2012_v63 = vadd.f32 %v2007_v19, %v1928_v41 }
 0x263   : > { %2087 = vst.msk [vmem:[%s4192_s6 + $0x8] sm:$0x3f] %vm2086_vm0, %v2013_v8 }
 0x264   : > { %2085 = vst.msk [vmem:[%s4192_s6] sm:$0xff] %vm2084_vm1, %v2012_v63  ;;  %v2023_v13 = vpop.permute.xlu1 %2022 }
 0x265   : > { %v2027_v60 = vadd.f32 %v2023_v13, %v1943_v1  ;;  %v2021_v4 = vpop.permute.xlu0 %2020 }
 0x266   : > { %v2026_v21 = vadd.f32 %v2021_v4, %v1942_v55 }
 0x267   : > { %2383 = vst.msk [vmem:[%s4192_s6 + $0x18] sm:$0x3f] %vm2086_vm0, %v2027_v60 }
 0x268   : > { %2382 = vst.msk [vmem:[%s4192_s6 + $0x10] sm:$0xff] %vm2084_vm1, %v2026_v21  ;;  %v2037_v24 = vpop.permute.xlu1 %2036 }
 0x269   : > { %v2041_v7 = vadd.f32 %v2037_v24, %v1957_v48  ;;  %v2035_v14 = vpop.permute.xlu0 %2034 }
 0x26a   : > { %v2040_v3 = vadd.f32 %v2035_v14, %v1956_v25 }
 0x26b   : > { %2385 = vst.msk [vmem:[%s4192_s6 + $0x28] sm:$0x3f] %vm2086_vm0, %v2041_v7 }
 0x26c   : > { %2384 = vst.msk [vmem:[%s4192_s6 + $0x20] sm:$0xff] %vm2084_vm1, %v2040_v3  ;;  %v2051_v6 = vpop.permute.xlu1 %2050 }
 0x26d   : > { %v2055_v23 = vadd.f32 %v2051_v6, %v1971_v34  ;;  %v2049_v58 = vpop.permute.xlu0 %2048 }
 0x26e   : > { %v2054_v26 = vadd.f32 %v2049_v58, %v1970_v10 }
 0x26f   : > { %2387 = vst.msk [vmem:[%s4192_s6 + $0x38] sm:$0x3f] %vm2086_vm0, %v2055_v23 }
 0x270   : > { %2386 = vst.msk [vmem:[%s4192_s6 + $0x30] sm:$0xff] %vm2084_vm1, %v2054_v26  ;;  %v2065_v30 = vpop.permute.xlu1 %2064 }
 0x271   : > { %v2069_v29 = vadd.f32 %v2065_v30, %v1985_v9  ;;  %v2063_v27 = vpop.permute.xlu0 %2062 }
 0x272   : > { %v2068_v39 = vadd.f32 %v2063_v27, %v1984_v50 }
 0x273   : > { %2389 = vst.msk [vmem:[%s4192_s6 + $0x48] sm:$0x3f] %vm2086_vm0, %v2069_v29 }
 0x274   : > { %2388 = vst.msk [vmem:[%s4192_s6 + $0x40] sm:$0xff] %vm2084_vm1, %v2068_v39  ;;  %v2079_v62 = vpop.permute.xlu1 %2078 }
 0x275   : > { %v2083_v18 = vadd.f32 %v2079_v62, %v1999_v31  ;;  %v2077_v41 = vpop.permute.xlu0 %2076 }
 0x276   : > { %v2082_v12 = vadd.f32 %v2077_v41, %v1998_v0 }
 0x277   : > { %2391 = vst.msk [vmem:[%s4192_s6 + $0x58] sm:$0x3f] %vm2086_vm0, %v2083_v18 }
 0x278   : > { %2390 = vst.msk [vmem:[%s4192_s6 + $0x50] sm:$0xff] %vm2084_vm1, %v2082_v12 }
 0x279 PF: > { %p15_p3 = scmp.ge.s32.totalorder %s2613_s17, 4   ;;  %s4402_s12 = smov %s2554_s13 }
 0x27a   : > { %s4403_s13 = smov %s2558_s14  ;;  %s4404_s14 = smov %s2623_s20 }
 0x27b   : > { %s4405_s15 = smov %s2613_s17  ;;  %17 = sbr.rel (!%p15_p3) target bundleno = 5 (0x5), region = 89 }
 0x280   :  { %2124 = vsyncpa [#allocation3], 1 }
 0x281   :  { %2126 = vsyncpa [#allocation3 + $0x1], 1 }
 0x282   :  { %2127 = vsyncpa [#allocation4], 1 }
 0x283   :  { %2129 = vsyncpa [#allocation4 + $0x1], 1 }
 0x284   :  { %2130 = vsyncpa [#allocation5], 1 }
 0x285   :  { %2132 = vsyncpa [#allocation5 + $0x1], 1 }

</bundles_post_ra>
